<compile_context>
chip_gen: v6e
topology: v6e:2x2x1
jax: 0.10.0
libtpu: 0.0.40
codegen_flags: <defaults>
</compile_context>

<pallas_src>
import math
import numpy as np

import jax
import jax.numpy as jnp
from jax.experimental import pallas as pl
from jax.experimental.pallas import tpu as pltpu


_KSIZE = 7
_PAD = (_KSIZE - 1) // 2  # 3


# ---------------------------------------------------------------------------------
# Phase 1: ChannelPool + 7x7 conv (+ folded BatchNorm)  ->  x_out (N, H, W) f32
# ---------------------------------------------------------------------------------
def _pool_conv_bn_kernel(params_ref, x_ref, xout_ref, pmax_ref, pmean_ref):
    # params_ref : SMEM (99,) f32   [w_max(49), w_mean(49), bias]  (BN folded)
    # x_ref      : VMEM (Nb, C, H, W)    input block (f32 or bf16)
    # xout_ref   : VMEM (Nb, H, W) f32   conv+BN output
    # pmax_ref / pmean_ref : VMEM scratch (Nb, H+6, W+6) f32  zero-padded pooled maps
    nb, C, H, W = x_ref.shape

    # Channel pool (max & mean over C), accumulated in f32.
    mx = x_ref[:, 0].astype(jnp.float32)
    sm = mx
    for c in range(1, C):
        xc = x_ref[:, c].astype(jnp.float32)
        mx = jnp.maximum(mx, xc)
        sm = sm + xc
    mean = sm * (1.0 / C)

    # Zero-padded pooled maps (padding = 3 on each side) in VMEM scratch.
    pmax_ref[...] = jnp.zeros_like(pmax_ref)
    pmean_ref[...] = jnp.zeros_like(pmean_ref)
    pmax_ref[:, _PAD:_PAD + H, _PAD:_PAD + W] = mx
    pmean_ref[:, _PAD:_PAD + H, _PAD:_PAD + W] = mean

    # 7x7 cross-correlation, 2 in-channels (max, mean) -> 1 out-channel, unrolled taps.
    acc = jnp.full((nb, H, W), params_ref[2 * _KSIZE * _KSIZE], dtype=jnp.float32)
    for ky in range(_KSIZE):
        for kx in range(_KSIZE):
            w_mx = params_ref[ky * _KSIZE + kx]
            w_mn = params_ref[_KSIZE * _KSIZE + ky * _KSIZE + kx]
            acc = acc + pmax_ref[:, ky:ky + H, kx:kx + W] * w_mx
            acc = acc + pmean_ref[:, ky:ky + H, kx:kx + W] * w_mn

    xout_ref[...] = acc


# ---------------------------------------------------------------------------------
# Phase 2: GaussProjection gate + x * scale
# ---------------------------------------------------------------------------------
def _gauss_scale_kernel(stats_ref, x_ref, xout_ref, o_ref):
    # stats_ref : SMEM (3,) f32  [mean, 1/(2*var), 1/(sqrt(2*pi)*std)]
    # x_ref     : VMEM (Nb, C, H, W)
    # xout_ref  : VMEM (Nb, H, W) f32
    # o_ref     : VMEM (Nb, C, H, W)   same dtype as x
    nb, C, H, W = x_ref.shape
    mu = stats_ref[0]
    inv_two_var = stats_ref[1]
    inv_sigma = stats_ref[2]

    d = xout_ref[...] - mu
    scale = jnp.exp(-(d * d) * inv_two_var) * inv_sigma          # (Nb, H, W) f32 (EUP exp)

    for c in range(C):   # keep vreg working set to one channel slab; scale reused across C
        o_ref[:, c] = (x_ref[:, c].astype(jnp.float32) * scale).astype(o_ref.dtype)


# ---------------------------------------------------------------------------------
# Wrapper
# ---------------------------------------------------------------------------------
def _pick_batch_block(n, per_sample_bytes, max_nb=8, vmem_budget=8 << 20):
    cap = max(1, min(max_nb, vmem_budget // max(per_sample_bytes, 1)))
    for d in range(min(n, int(cap)), 0, -1):
        if n % d == 0:
            return d
    return 1


def spatial_gate(x, conv_w, bn_gamma, bn_beta, bn_mean, bn_var, *, eps=1e-5):
    """x: (N, C, H, W) f32/bf16.  conv_w: (1, 2, 7, 7).  bn_*: (1,).  Returns x.dtype."""
    N, C, H, W = x.shape
    itemsize = jnp.dtype(x.dtype).itemsize

    # Fold inference BatchNorm into the conv weights + a single bias scalar.
    a = (bn_gamma.astype(jnp.float32) / jnp.sqrt(bn_var.astype(jnp.float32) + eps)).reshape(())
    b = (bn_beta.astype(jnp.float32) - bn_mean.astype(jnp.float32) * a).reshape((1,))
    w = conv_w.astype(jnp.float32).reshape(2, _KSIZE, _KSIZE) * a
    params = jnp.concatenate([w.reshape(-1), b])                     # (99,) f32 -> SMEM

    # Batch Nb samples per grid step (amortise per-step overhead, stay inside scoped VMEM).
    nb = _pick_batch_block(N, per_sample_bytes=4 * C * H * W * itemsize)
    grid = (N // nb,)

    # ---- phase 1: ChannelPool + conv + BN ----------------------------------------
    xout = pl.pallas_call(
        _pool_conv_bn_kernel,
        out_shape=jax.ShapeDtypeStruct((N, H, W), jnp.float32),
        grid_spec=pltpu.PrefetchScalarGridSpec(
            num_scalar_prefetch=0,
            grid=grid,
            in_specs=[
                pl.BlockSpec(memory_space=pltpu.MemorySpace.SMEM),        # params
                pl.BlockSpec((nb, C, H, W), lambda i: (i, 0, 0, 0)),      # x
            ],
            out_specs=pl.BlockSpec((nb, H, W), lambda i: (i, 0, 0)),
            scratch_shapes=[
                pltpu.VMEM((nb, H + 2 * _PAD, W + 2 * _PAD), jnp.float32),
                pltpu.VMEM((nb, H + 2 * _PAD, W + 2 * _PAD), jnp.float32),
            ],
        ),
        compiler_params=pltpu.CompilerParams(dimension_semantics=("parallel",)),
        cost_estimate=pl.CostEstimate(
            flops=2 * N * C * H * W + 4 * N * H * W * _KSIZE * _KSIZE,
            transcendentals=0,
            bytes_accessed=N * C * H * W * itemsize + N * H * W * 4,
        ),
    )(params, x)

    # ---- tiny global reduction (torch.mean / torch.std of x_out) ------------------
    # 3 scalars from an O(N*H*W) tensor; computed in plain JAX because every output
    # element of phase 2 depends on them.
    n_el = N * H * W
    mu = jnp.mean(xout)
    var = jnp.sum((xout - mu) ** 2) / max(n_el - 1, 1)     # unbiased, as torch.std default
    std = jnp.sqrt(var)
    sigma = math.sqrt(2.0 * math.pi) * std
    stats = jnp.stack([mu, 1.0 / (2.0 * var), 1.0 / sigma]).astype(jnp.float32)

    # ---- phase 2: Gauss gate + x * scale -------------------------------------------
    out = pl.pallas_call(
        _gauss_scale_kernel,
        out_shape=jax.ShapeDtypeStruct((N, C, H, W), x.dtype),
        grid_spec=pltpu.PrefetchScalarGridSpec(
            num_scalar_prefetch=0,
            grid=grid,
            in_specs=[
                pl.BlockSpec(memory_space=pltpu.MemorySpace.SMEM),        # stats
                pl.BlockSpec((nb, C, H, W), lambda i: (i, 0, 0, 0)),      # x
                pl.BlockSpec((nb, H, W), lambda i: (i, 0, 0)),            # x_out
            ],
            out_specs=pl.BlockSpec((nb, C, H, W), lambda i: (i, 0, 0, 0)),
        ),
        compiler_params=pltpu.CompilerParams(dimension_semantics=("parallel",)),
        cost_estimate=pl.CostEstimate(
            flops=2 * N * C * H * W + 5 * N * H * W,
            transcendentals=N * H * W,
            bytes_accessed=2 * N * C * H * W * itemsize + N * H * W * 4,
        ),
    )(stats, x, xout)

    return out


# ---------------------------------------------------------------------------------
# Pure-JAX reference (for correctness check)
# ---------------------------------------------------------------------------------
def spatial_gate_ref(x, conv_w, bn_gamma, bn_beta, bn_mean, bn_var, eps=1e-5):
    xf = x.astype(jnp.float32)
    mx = jnp.max(xf, axis=1, keepdims=True)
    mn = jnp.mean(xf, axis=1, keepdims=True)
    pooled = jnp.concatenate([mx, mn], axis=1)                            # (N, 2, H, W)
    xo = jax.lax.conv_general_dilated(
        pooled, conv_w.astype(jnp.float32), window_strides=(1, 1),
        padding=((_PAD, _PAD), (_PAD, _PAD)),
        dimension_numbers=("NCHW", "OIHW", "NCHW"))                       # (N, 1, H, W)
    a = bn_gamma.astype(jnp.float32) / jnp.sqrt(bn_var.astype(jnp.float32) + eps)
    xo = xo * a + (bn_beta.astype(jnp.float32) - bn_mean.astype(jnp.float32) * a)
    mu = jnp.mean(xo)
    std = jnp.sqrt(jnp.sum((xo - mu) ** 2) / (xo.size - 1))
    sigma = math.sqrt(2.0 * math.pi) * std
    scale = jnp.exp(-((xo - mu) ** 2) / (2.0 * std ** 2)) / sigma
    return (xf * scale).astype(x.dtype)


if __name__ == "__main__":
    N, C, H, W = 2, 4, 16, 16
    key = jax.random.PRNGKey(0)
    kx, kw, kg, kb, km, kv = jax.random.split(key, 6)

    x = jax.random.normal(kx, (N, C, H, W), dtype=jnp.float32)

    fan_in = 2 * _KSIZE * _KSIZE
    bound = 1.0 / math.sqrt(fan_in)
    conv_w = jax.random.uniform(kw, (1, 2, _KSIZE, _KSIZE), jnp.float32, -bound, bound)
    bn_gamma = jax.random.uniform(kg, (1,), jnp.float32, 0.5, 1.5)
    bn_beta = jax.random.uniform(kb, (1,), jnp.float32, -0.5, 0.5)
    bn_mean = jax.random.uniform(km, (1,), jnp.float32, -0.1, 0.1)
    bn_var = jax.random.uniform(kv, (1,), jnp.float32, 0.5, 1.5)

    fwd = jax.jit(spatial_gate)

    # f32 data path
    out = jax.block_until_ready(fwd(x, conv_w, bn_gamma, bn_beta, bn_mean, bn_var))
    ref = spatial_gate_ref(x, conv_w, bn_gamma, bn_beta, bn_mean, bn_var)
    np.testing.assert_allclose(np.asarray(out), np.asarray(ref), rtol=1e-4, atol=1e-5)

    # bf16 data path (halved HBM traffic; internal compute stays f32)
    xb = x.astype(jnp.bfloat16)
    outb = jax.block_until_ready(fwd(xb, conv_w, bn_gamma, bn_beta, bn_mean, bn_var))
    refb = spatial_gate_ref(xb, conv_w, bn_gamma, bn_beta, bn_mean, bn_var)
    np.testing.assert_allclose(np.asarray(outb.astype(jnp.float32)),
                               np.asarray(refb.astype(jnp.float32)),
                               rtol=2e-2, atol=2e-2)

    print("KERNEL_OK")
</pallas_src>

<mosaic_0001>
module attributes {stable_mosaic.version = 11 : i64} {
  func.func @_gauss_scale_kernel(%arg0: i32, %arg1: memref<3xf32, #tpu.memory_space<smem>>, %arg2: memref<2x4x16x16xf32, #tpu.memory_space<vmem>>, %arg3: memref<2x16x16xf32, #tpu.memory_space<vmem>>, %arg4: memref<2x4x16x16xf32, #tpu.memory_space<vmem>>) attributes {dimension_semantics = [#tpu.dimension_semantics<parallel>], iteration_bounds = array<i64: 1>, scalar_prefetch = 0 : i64, scratch_operands = 0 : i64, tpu.core_type = #tpu.core_type<tc>, window_params = [{transform_indices = @transform_0, window_bounds = array<i64: 3>}, {transform_indices = @transform_1, window_bounds = array<i64: 2, 4, 16, 16>}, {transform_indices = @transform_2, window_bounds = array<i64: 2, 16, 16>}, {transform_indices = @transform_3, window_bounds = array<i64: 2, 4, 16, 16>}]} {
    %c0 = arith.constant 0 : index
    %0 = memref.load %arg1[%c0] : memref<3xf32, #tpu.memory_space<smem>>
    %c1 = arith.constant 1 : index
    %1 = memref.load %arg1[%c1] : memref<3xf32, #tpu.memory_space<smem>>
    %c2 = arith.constant 2 : index
    %2 = memref.load %arg1[%c2] : memref<3xf32, #tpu.memory_space<smem>>
    %c0_0 = arith.constant 0 : index
    %c0_1 = arith.constant 0 : index
    %c0_2 = arith.constant 0 : index
    %3 = vector.load %arg3[%c0_0, %c0_1, %c0_2] : memref<2x16x16xf32, #tpu.memory_space<vmem>>, vector<2x16x16xf32>
    %4 = vector.broadcast %0 : f32 to vector<2x16x16xf32>
    %5 = arith.subf %3, %4 : vector<2x16x16xf32>
    %6 = arith.mulf %5, %5 : vector<2x16x16xf32>
    %cst = arith.constant 0.000000e+00 : f32
    %7 = vector.broadcast %cst : f32 to vector<2x16x16xf32>
    %8 = arith.subf %7, %6 : vector<2x16x16xf32>
    %9 = vector.broadcast %1 : f32 to vector<2x16x16xf32>
    %10 = arith.mulf %8, %9 : vector<2x16x16xf32>
    %11 = math.exp %10 : vector<2x16x16xf32>
    %12 = vector.broadcast %2 : f32 to vector<2x16x16xf32>
    %13 = arith.mulf %11, %12 : vector<2x16x16xf32>
    %c0_3 = arith.constant 0 : index
    %c0_4 = arith.constant 0 : index
    %c0_5 = arith.constant 0 : index
    %c0_6 = arith.constant 0 : index
    %14 = vector.load %arg2[%c0_3, %c0_4, %c0_5, %c0_6] : memref<2x4x16x16xf32, #tpu.memory_space<vmem>>, vector<2x1x16x16xf32>
    %15 = vector.shape_cast %14 : vector<2x1x16x16xf32> to vector<2x16x16xf32>
    %16 = arith.mulf %15, %13 : vector<2x16x16xf32>
    %c0_7 = arith.constant 0 : index
    %c0_8 = arith.constant 0 : index
    %c0_9 = arith.constant 0 : index
    %c0_10 = arith.constant 0 : index
    %17 = vector.load %arg4[%c0_7, %c0_8, %c0_9, %c0_10] : memref<2x4x16x16xf32, #tpu.memory_space<vmem>>, vector<2x1x16x16xf32>
    %18 = vector.shape_cast %17 : vector<2x1x16x16xf32> to vector<2x16x16xf32>
    %19 = vector.shape_cast %16 : vector<2x16x16xf32> to vector<2x1x16x16xf32>
    tpu.vector_store %arg4[%c0_7, %c0_8, %c0_9, %c0_10], %19 {strides = array<i32>} : memref<2x4x16x16xf32, #tpu.memory_space<vmem>>, vector<2x1x16x16xf32>,
    %c0_11 = arith.constant 0 : index
    %c1_12 = arith.constant 1 : index
    %c0_13 = arith.constant 0 : index
    %c0_14 = arith.constant 0 : index
    %20 = vector.load %arg2[%c0_11, %c1_12, %c0_13, %c0_14] : memref<2x4x16x16xf32, #tpu.memory_space<vmem>>, vector<2x1x16x16xf32>
    %21 = vector.shape_cast %20 : vector<2x1x16x16xf32> to vector<2x16x16xf32>
    %22 = arith.mulf %21, %13 : vector<2x16x16xf32>
    %c0_15 = arith.constant 0 : index
    %c1_16 = arith.constant 1 : index
    %c0_17 = arith.constant 0 : index
    %c0_18 = arith.constant 0 : index
    %23 = vector.load %arg4[%c0_15, %c1_16, %c0_17, %c0_18] : memref<2x4x16x16xf32, #tpu.memory_space<vmem>>, vector<2x1x16x16xf32>
    %24 = vector.shape_cast %23 : vector<2x1x16x16xf32> to vector<2x16x16xf32>
    %25 = vector.shape_cast %22 : vector<2x16x16xf32> to vector<2x1x16x16xf32>
    tpu.vector_store %arg4[%c0_15, %c1_16, %c0_17, %c0_18], %25 {strides = array<i32>} : memref<2x4x16x16xf32, #tpu.memory_space<vmem>>, vector<2x1x16x16xf32>,
    %c0_19 = arith.constant 0 : index
    %c2_20 = arith.constant 2 : index
    %c0_21 = arith.constant 0 : index
    %c0_22 = arith.constant 0 : index
    %26 = vector.load %arg2[%c0_19, %c2_20, %c0_21, %c0_22] : memref<2x4x16x16xf32, #tpu.memory_space<vmem>>, vector<2x1x16x16xf32>
    %27 = vector.shape_cast %26 : vector<2x1x16x16xf32> to vector<2x16x16xf32>
    %28 = arith.mulf %27, %13 : vector<2x16x16xf32>
    %c0_23 = arith.constant 0 : index
    %c2_24 = arith.constant 2 : index
    %c0_25 = arith.constant 0 : index
    %c0_26 = arith.constant 0 : index
    %29 = vector.load %arg4[%c0_23, %c2_24, %c0_25, %c0_26] : memref<2x4x16x16xf32, #tpu.memory_space<vmem>>, vector<2x1x16x16xf32>
    %30 = vector.shape_cast %29 : vector<2x1x16x16xf32> to vector<2x16x16xf32>
    %31 = vector.shape_cast %28 : vector<2x16x16xf32> to vector<2x1x16x16xf32>
    tpu.vector_store %arg4[%c0_23, %c2_24, %c0_25, %c0_26], %31 {strides = array<i32>} : memref<2x4x16x16xf32, #tpu.memory_space<vmem>>, vector<2x1x16x16xf32>,
    %c0_27 = arith.constant 0 : index
    %c3 = arith.constant 3 : index
    %c0_28 = arith.constant 0 : index
    %c0_29 = arith.constant 0 : index
    %32 = vector.load %arg2[%c0_27, %c3, %c0_28, %c0_29] : memref<2x4x16x16xf32, #tpu.memory_space<vmem>>, vector<2x1x16x16xf32>
    %33 = vector.shape_cast %32 : vector<2x1x16x16xf32> to vector<2x16x16xf32>
    %34 = arith.mulf %33, %13 : vector<2x16x16xf32>
    %c0_30 = arith.constant 0 : index
    %c3_31 = arith.constant 3 : index
    %c0_32 = arith.constant 0 : index
    %c0_33 = arith.constant 0 : index
    %35 = vector.load %arg4[%c0_30, %c3_31, %c0_32, %c0_33] : memref<2x4x16x16xf32, #tpu.memory_space<vmem>>, vector<2x1x16x16xf32>
    %36 = vector.shape_cast %35 : vector<2x1x16x16xf32> to vector<2x16x16xf32>
    %37 = vector.shape_cast %34 : vector<2x16x16xf32> to vector<2x1x16x16xf32>
    tpu.vector_store %arg4[%c0_30, %c3_31, %c0_32, %c0_33], %37 {strides = array<i32>} : memref<2x4x16x16xf32, #tpu.memory_space<vmem>>, vector<2x1x16x16xf32>,
    return
  }
  func.func @transform_0(%arg0: i32) -> i32 {
    %c0_i32 = arith.constant 0 : i32
    %c0_i32_0 = arith.constant 0 : i32
    return %c0_i32 : i32
  }
  func.func @transform_1(%arg0: i32) -> (i32, i32, i32, i32) {
    %c0_i32 = arith.constant 0 : i32
    %c0_i32_0 = arith.constant 0 : i32
    %c0_i32_1 = arith.constant 0 : i32
    %c0_i32_2 = arith.constant 0 : i32
    return %arg0, %c0_i32, %c0_i32_0, %c0_i32_1 : i32, i32, i32, i32
  }
  func.func @transform_2(%arg0: i32) -> (i32, i32, i32) {
    %c0_i32 = arith.constant 0 : i32
    %c0_i32_0 = arith.constant 0 : i32
    %c0_i32_1 = arith.constant 0 : i32
    return %arg0, %c0_i32, %c0_i32_0 : i32, i32, i32
  }
  func.func @transform_3(%arg0: i32) -> (i32, i32, i32, i32) {
    %c0_i32 = arith.constant 0 : i32
    %c0_i32_0 = arith.constant 0 : i32
    %c0_i32_1 = arith.constant 0 : i32
    %c0_i32_2 = arith.constant 0 : i32
    return %arg0, %c0_i32, %c0_i32_0, %c0_i32_1 : i32, i32, i32, i32
  }
}

module attributes {stable_mosaic.version = 11 : i64} {
  func.func @_pool_conv_bn_kernel(%arg0: i32, %arg1: memref<99xf32, #tpu.memory_space<smem>>, %arg2: memref<2x4x16x16xf32, #tpu.memory_space<vmem>>, %arg3: memref<2x16x16xf32, #tpu.memory_space<vmem>>, %arg4: memref<2x22x22xf32, #tpu.memory_space<vmem>>, %arg5: memref<2x22x22xf32, #tpu.memory_space<vmem>>) attributes {dimension_semantics = [#tpu.dimension_semantics<parallel>], iteration_bounds = array<i64: 1>, scalar_prefetch = 0 : i64, scratch_operands = 2 : i64, tpu.core_type = #tpu.core_type<tc>, window_params = [{transform_indices = @transform_0, window_bounds = array<i64: 99>}, {transform_indices = @transform_1, window_bounds = array<i64: 2, 4, 16, 16>}, {transform_indices = @transform_2, window_bounds = array<i64: 2, 16, 16>}]} {
    %c0 = arith.constant 0 : index
    %c0_0 = arith.constant 0 : index
    %c0_1 = arith.constant 0 : index
    %c0_2 = arith.constant 0 : index
    %0 = vector.load %arg2[%c0, %c0_0, %c0_1, %c0_2] : memref<2x4x16x16xf32, #tpu.memory_space<vmem>>, vector<2x1x16x16xf32>
    %1 = vector.shape_cast %0 : vector<2x1x16x16xf32> to vector<2x16x16xf32>
    %c0_3 = arith.constant 0 : index
    %c1 = arith.constant 1 : index
    %c0_4 = arith.constant 0 : index
    %c0_5 = arith.constant 0 : index
    %2 = vector.load %arg2[%c0_3, %c1, %c0_4, %c0_5] : memref<2x4x16x16xf32, #tpu.memory_space<vmem>>, vector<2x1x16x16xf32>
    %3 = vector.shape_cast %2 : vector<2x1x16x16xf32> to vector<2x16x16xf32>
    %4 = arith.maximumf %1, %3 : vector<2x16x16xf32>
    %5 = arith.addf %1, %3 : vector<2x16x16xf32>
    %c0_6 = arith.constant 0 : index
    %c2 = arith.constant 2 : index
    %c0_7 = arith.constant 0 : index
    %c0_8 = arith.constant 0 : index
    %6 = vector.load %arg2[%c0_6, %c2, %c0_7, %c0_8] : memref<2x4x16x16xf32, #tpu.memory_space<vmem>>, vector<2x1x16x16xf32>
    %7 = vector.shape_cast %6 : vector<2x1x16x16xf32> to vector<2x16x16xf32>
    %8 = arith.maximumf %4, %7 : vector<2x16x16xf32>
    %9 = arith.addf %5, %7 : vector<2x16x16xf32>
    %c0_9 = arith.constant 0 : index
    %c3 = arith.constant 3 : index
    %c0_10 = arith.constant 0 : index
    %c0_11 = arith.constant 0 : index
    %10 = vector.load %arg2[%c0_9, %c3, %c0_10, %c0_11] : memref<2x4x16x16xf32, #tpu.memory_space<vmem>>, vector<2x1x16x16xf32>
    %11 = vector.shape_cast %10 : vector<2x1x16x16xf32> to vector<2x16x16xf32>
    %12 = arith.maximumf %8, %11 : vector<2x16x16xf32>
    %13 = arith.addf %9, %11 : vector<2x16x16xf32>
    %cst = arith.constant 2.500000e-01 : f32
    %14 = vector.broadcast %cst : f32 to vector<2x16x16xf32>
    %15 = arith.mulf %13, %14 : vector<2x16x16xf32>
    %cst_12 = arith.constant 0.000000e+00 : f32
    %16 = vector.broadcast %cst_12 : f32 to vector<2x22x22xf32>
    %c0_13 = arith.constant 0 : index
    %c0_14 = arith.constant 0 : index
    %c0_15 = arith.constant 0 : index
    %17 = vector.load %arg4[%c0_13, %c0_14, %c0_15] : memref<2x22x22xf32, #tpu.memory_space<vmem>>, vector<2x22x22xf32>
    tpu.vector_store %arg4[%c0_13, %c0_14, %c0_15], %16 {strides = array<i32>} : memref<2x22x22xf32, #tpu.memory_space<vmem>>, vector<2x22x22xf32>,
    %cst_16 = arith.constant 0.000000e+00 : f32
    %18 = vector.broadcast %cst_16 : f32 to vector<2x22x22xf32>
    %c0_17 = arith.constant 0 : index
    %c0_18 = arith.constant 0 : index
    %c0_19 = arith.constant 0 : index
    %19 = vector.load %arg5[%c0_17, %c0_18, %c0_19] : memref<2x22x22xf32, #tpu.memory_space<vmem>>, vector<2x22x22xf32>
    tpu.vector_store %arg5[%c0_17, %c0_18, %c0_19], %18 {strides = array<i32>} : memref<2x22x22xf32, #tpu.memory_space<vmem>>, vector<2x22x22xf32>,
    %c0_20 = arith.constant 0 : index
    %c3_21 = arith.constant 3 : index
    %c3_22 = arith.constant 3 : index
    %20 = vector.load %arg4[%c0_20, %c3_21, %c3_22] : memref<2x22x22xf32, #tpu.memory_space<vmem>>, vector<2x16x16xf32>
    tpu.vector_store %arg4[%c0_20, %c3_21, %c3_22], %12 {strides = array<i32>} : memref<2x22x22xf32, #tpu.memory_space<vmem>>, vector<2x16x16xf32>,
    %c0_23 = arith.constant 0 : index
    %c3_24 = arith.constant 3 : index
    %c3_25 = arith.constant 3 : index
    %21 = vector.load %arg5[%c0_23, %c3_24, %c3_25] : memref<2x22x22xf32, #tpu.memory_space<vmem>>, vector<2x16x16xf32>
    tpu.vector_store %arg5[%c0_23, %c3_24, %c3_25], %15 {strides = array<i32>} : memref<2x22x22xf32, #tpu.memory_space<vmem>>, vector<2x16x16xf32>,
    %c98 = arith.constant 98 : index
    %22 = memref.load %arg1[%c98] : memref<99xf32, #tpu.memory_space<smem>>
    %23 = vector.broadcast %22 : f32 to vector<2x16x16xf32>
    %c0_26 = arith.constant 0 : index
    %24 = memref.load %arg1[%c0_26] : memref<99xf32, #tpu.memory_space<smem>>
    %c49 = arith.constant 49 : index
    %25 = memref.load %arg1[%c49] : memref<99xf32, #tpu.memory_space<smem>>
    %c0_27 = arith.constant 0 : index
    %c0_28 = arith.constant 0 : index
    %c0_29 = arith.constant 0 : index
    %26 = vector.load %arg4[%c0_27, %c0_28, %c0_29] : memref<2x22x22xf32, #tpu.memory_space<vmem>>, vector<2x16x16xf32>
    %27 = vector.broadcast %24 : f32 to vector<2x16x16xf32>
    %28 = arith.mulf %26, %27 : vector<2x16x16xf32>
    %29 = arith.addf %23, %28 : vector<2x16x16xf32>
    %c0_30 = arith.constant 0 : index
    %c0_31 = arith.constant 0 : index
    %c0_32 = arith.constant 0 : index
    %30 = vector.load %arg5[%c0_30, %c0_31, %c0_32] : memref<2x22x22xf32, #tpu.memory_space<vmem>>, vector<2x16x16xf32>
    %31 = vector.broadcast %25 : f32 to vector<2x16x16xf32>
    %32 = arith.mulf %30, %31 : vector<2x16x16xf32>
    %33 = arith.addf %29, %32 : vector<2x16x16xf32>
    %c1_33 = arith.constant 1 : index
    %34 = memref.load %arg1[%c1_33] : memref<99xf32, #tpu.memory_space<smem>>
    %c50 = arith.constant 50 : index
    %35 = memref.load %arg1[%c50] : memref<99xf32, #tpu.memory_space<smem>>
    %c0_34 = arith.constant 0 : index
    %c0_35 = arith.constant 0 : index
    %c1_36 = arith.constant 1 : index
    %36 = vector.load %arg4[%c0_34, %c0_35, %c1_36] : memref<2x22x22xf32, #tpu.memory_space<vmem>>, vector<2x16x16xf32>
    %37 = vector.broadcast %34 : f32 to vector<2x16x16xf32>
    %38 = arith.mulf %36, %37 : vector<2x16x16xf32>
    %39 = arith.addf %33, %38 : vector<2x16x16xf32>
    %c0_37 = arith.constant 0 : index
    %c0_38 = arith.constant 0 : index
    %c1_39 = arith.constant 1 : index
    %40 = vector.load %arg5[%c0_37, %c0_38, %c1_39] : memref<2x22x22xf32, #tpu.memory_space<vmem>>, vector<2x16x16xf32>
    %41 = vector.broadcast %35 : f32 to vector<2x16x16xf32>
    %42 = arith.mulf %40, %41 : vector<2x16x16xf32>
    %43 = arith.addf %39, %42 : vector<2x16x16xf32>
    %c2_40 = arith.constant 2 : index
    %44 = memref.load %arg1[%c2_40] : memref<99xf32, #tpu.memory_space<smem>>
    %c51 = arith.constant 51 : index
    %45 = memref.load %arg1[%c51] : memref<99xf32, #tpu.memory_space<smem>>
    %c0_41 = arith.constant 0 : index
    %c0_42 = arith.constant 0 : index
    %c2_43 = arith.constant 2 : index
    %46 = vector.load %arg4[%c0_41, %c0_42, %c2_43] : memref<2x22x22xf32, #tpu.memory_space<vmem>>, vector<2x16x16xf32>
    %47 = vector.broadcast %44 : f32 to vector<2x16x16xf32>
    %48 = arith.mulf %46, %47 : vector<2x16x16xf32>
    %49 = arith.addf %43, %48 : vector<2x16x16xf32>
    %c0_44 = arith.constant 0 : index
    %c0_45 = arith.constant 0 : index
    %c2_46 = arith.constant 2 : index
    %50 = vector.load %arg5[%c0_44, %c0_45, %c2_46] : memref<2x22x22xf32, #tpu.memory_space<vmem>>, vector<2x16x16xf32>
    %51 = vector.broadcast %45 : f32 to vector<2x16x16xf32>
    %52 = arith.mulf %50, %51 : vector<2x16x16xf32>
    %53 = arith.addf %49, %52 : vector<2x16x16xf32>
    %c3_47 = arith.constant 3 : index
    %54 = memref.load %arg1[%c3_47] : memref<99xf32, #tpu.memory_space<smem>>
    %c52 = arith.constant 52 : index
    %55 = memref.load %arg1[%c52] : memref<99xf32, #tpu.memory_space<smem>>
    %c0_48 = arith.constant 0 : index
    %c0_49 = arith.constant 0 : index
    %c3_50 = arith.constant 3 : index
    %56 = vector.load %arg4[%c0_48, %c0_49, %c3_50] : memref<2x22x22xf32, #tpu.memory_space<vmem>>, vector<2x16x16xf32>
    %57 = vector.broadcast %54 : f32 to vector<2x16x16xf32>
    %58 = arith.mulf %56, %57 : vector<2x16x16xf32>
    %59 = arith.addf %53, %58 : vector<2x16x16xf32>
    %c0_51 = arith.constant 0 : index
    %c0_52 = arith.constant 0 : index
    %c3_53 = arith.constant 3 : index
    %60 = vector.load %arg5[%c0_51, %c0_52, %c3_53] : memref<2x22x22xf32, #tpu.memory_space<vmem>>, vector<2x16x16xf32>
    %61 = vector.broadcast %55 : f32 to vector<2x16x16xf32>
    %62 = arith.mulf %60, %61 : vector<2x16x16xf32>
    %63 = arith.addf %59, %62 : vector<2x16x16xf32>
    %c4 = arith.constant 4 : index
    %64 = memref.load %arg1[%c4] : memref<99xf32, #tpu.memory_space<smem>>
    %c53 = arith.constant 53 : index
    %65 = memref.load %arg1[%c53] : memref<99xf32, #tpu.memory_space<smem>>
    %c0_54 = arith.constant 0 : index
    %c0_55 = arith.constant 0 : index
    %c4_56 = arith.constant 4 : index
    %66 = vector.load %arg4[%c0_54, %c0_55, %c4_56] : memref<2x22x22xf32, #tpu.memory_space<vmem>>, vector<2x16x16xf32>
    %67 = vector.broadcast %64 : f32 to vector<2x16x16xf32>
    %68 = arith.mulf %66, %67 : vector<2x16x16xf32>
    %69 = arith.addf %63, %68 : vector<2x16x16xf32>
    %c0_57 = arith.constant 0 : index
    %c0_58 = arith.constant 0 : index
    %c4_59 = arith.constant 4 : index
    %70 = vector.load %arg5[%c0_57, %c0_58, %c4_59] : memref<2x22x22xf32, #tpu.memory_space<vmem>>, vector<2x16x16xf32>
    %71 = vector.broadcast %65 : f32 to vector<2x16x16xf32>
    %72 = arith.mulf %70, %71 : vector<2x16x16xf32>
    %73 = arith.addf %69, %72 : vector<2x16x16xf32>
    %c5 = arith.constant 5 : index
    %74 = memref.load %arg1[%c5] : memref<99xf32, #tpu.memory_space<smem>>
    %c54 = arith.constant 54 : index
    %75 = memref.load %arg1[%c54] : memref<99xf32, #tpu.memory_space<smem>>
    %c0_60 = arith.constant 0 : index
    %c0_61 = arith.constant 0 : index
    %c5_62 = arith.constant 5 : index
    %76 = vector.load %arg4[%c0_60, %c0_61, %c5_62] : memref<2x22x22xf32, #tpu.memory_space<vmem>>, vector<2x16x16xf32>
    %77 = vector.broadcast %74 : f32 to vector<2x16x16xf32>
    %78 = arith.mulf %76, %77 : vector<2x16x16xf32>
    %79 = arith.addf %73, %78 : vector<2x16x16xf32>
    %c0_63 = arith.constant 0 : index
    %c0_64 = arith.constant 0 : index
    %c5_65 = arith.constant 5 : index
    %80 = vector.load %arg5[%c0_63, %c0_64, %c5_65] : memref<2x22x22xf32, #tpu.memory_space<vmem>>, vector<2x16x16xf32>
    %81 = vector.broadcast %75 : f32 to vector<2x16x16xf32>
    %82 = arith.mulf %80, %81 : vector<2x16x16xf32>
    %83 = arith.addf %79, %82 : vector<2x16x16xf32>
    %c6 = arith.constant 6 : index
    %84 = memref.load %arg1[%c6] : memref<99xf32, #tpu.memory_space<smem>>
    %c55 = arith.constant 55 : index
    %85 = memref.load %arg1[%c55] : memref<99xf32, #tpu.memory_space<smem>>
    %c0_66 = arith.constant 0 : index
    %c0_67 = arith.constant 0 : index
    %c6_68 = arith.constant 6 : index
    %86 = vector.load %arg4[%c0_66, %c0_67, %c6_68] : memref<2x22x22xf32, #tpu.memory_space<vmem>>, vector<2x16x16xf32>
    %87 = vector.broadcast %84 : f32 to vector<2x16x16xf32>
    %88 = arith.mulf %86, %87 : vector<2x16x16xf32>
    %89 = arith.addf %83, %88 : vector<2x16x16xf32>
    %c0_69 = arith.constant 0 : index
    %c0_70 = arith.constant 0 : index
    %c6_71 = arith.constant 6 : index
    %90 = vector.load %arg5[%c0_69, %c0_70, %c6_71] : memref<2x22x22xf32, #tpu.memory_space<vmem>>, vector<2x16x16xf32>
    %91 = vector.broadcast %85 : f32 to vector<2x16x16xf32>
    %92 = arith.mulf %90, %91 : vector<2x16x16xf32>
    %93 = arith.addf %89, %92 : vector<2x16x16xf32>
    %c7 = arith.constant 7 : index
    %94 = memref.load %arg1[%c7] : memref<99xf32, #tpu.memory_space<smem>>
    %c56 = arith.constant 56 : index
    %95 = memref.load %arg1[%c56] : memref<99xf32, #tpu.memory_space<smem>>
    %c0_72 = arith.constant 0 : index
    %c1_73 = arith.constant 1 : index
    %c0_74 = arith.constant 0 : index
    %96 = vector.load %arg4[%c0_72, %c1_73, %c0_74] : memref<2x22x22xf32, #tpu.memory_space<vmem>>, vector<2x16x16xf32>
    %97 = vector.broadcast %94 : f32 to vector<2x16x16xf32>
    %98 = arith.mulf %96, %97 : vector<2x16x16xf32>
    %99 = arith.addf %93, %98 : vector<2x16x16xf32>
    %c0_75 = arith.constant 0 : index
    %c1_76 = arith.constant 1 : index
    %c0_77 = arith.constant 0 : index
    %100 = vector.load %arg5[%c0_75, %c1_76, %c0_77] : memref<2x22x22xf32, #tpu.memory_space<vmem>>, vector<2x16x16xf32>
    %101 = vector.broadcast %95 : f32 to vector<2x16x16xf32>
    %102 = arith.mulf %100, %101 : vector<2x16x16xf32>
    %103 = arith.addf %99, %102 : vector<2x16x16xf32>
    %c8 = arith.constant 8 : index
    %104 = memref.load %arg1[%c8] : memref<99xf32, #tpu.memory_space<smem>>
    %c57 = arith.constant 57 : index
    %105 = memref.load %arg1[%c57] : memref<99xf32, #tpu.memory_space<smem>>
    %c0_78 = arith.constant 0 : index
    %c1_79 = arith.constant 1 : index
    %c1_80 = arith.constant 1 : index
    %106 = vector.load %arg4[%c0_78, %c1_79, %c1_80] : memref<2x22x22xf32, #tpu.memory_space<vmem>>, vector<2x16x16xf32>
    %107 = vector.broadcast %104 : f32 to vector<2x16x16xf32>
    %108 = arith.mulf %106, %107 : vector<2x16x16xf32>
    %109 = arith.addf %103, %108 : vector<2x16x16xf32>
    %c0_81 = arith.constant 0 : index
    %c1_82 = arith.constant 1 : index
    %c1_83 = arith.constant 1 : index
    %110 = vector.load %arg5[%c0_81, %c1_82, %c1_83] : memref<2x22x22xf32, #tpu.memory_space<vmem>>, vector<2x16x16xf32>
    %111 = vector.broadcast %105 : f32 to vector<2x16x16xf32>
    %112 = arith.mulf %110, %111 : vector<2x16x16xf32>
    %113 = arith.addf %109, %112 : vector<2x16x16xf32>
    %c9 = arith.constant 9 : index
    %114 = memref.load %arg1[%c9] : memref<99xf32, #tpu.memory_space<smem>>
    %c58 = arith.constant 58 : index
    %115 = memref.load %arg1[%c58] : memref<99xf32, #tpu.memory_space<smem>>
    %c0_84 = arith.constant 0 : index
    %c1_85 = arith.constant 1 : index
    %c2_86 = arith.constant 2 : index
    %116 = vector.load %arg4[%c0_84, %c1_85, %c2_86] : memref<2x22x22xf32, #tpu.memory_space<vmem>>, vector<2x16x16xf32>
    %117 = vector.broadcast %114 : f32 to vector<2x16x16xf32>
    %118 = arith.mulf %116, %117 : vector<2x16x16xf32>
    %119 = arith.addf %113, %118 : vector<2x16x16xf32>
    %c0_87 = arith.constant 0 : index
    %c1_88 = arith.constant 1 : index
    %c2_89 = arith.constant 2 : index
    %120 = vector.load %arg5[%c0_87, %c1_88, %c2_89] : memref<2x22x22xf32, #tpu.memory_space<vmem>>, vector<2x16x16xf32>
    %121 = vector.broadcast %115 : f32 to vector<2x16x16xf32>
    %122 = arith.mulf %120, %121 : vector<2x16x16xf32>
    %123 = arith.addf %119, %122 : vector<2x16x16xf32>
    %c10 = arith.constant 10 : index
    %124 = memref.load %arg1[%c10] : memref<99xf32, #tpu.memory_space<smem>>
    %c59 = arith.constant 59 : index
    %125 = memref.load %arg1[%c59] : memref<99xf32, #tpu.memory_space<smem>>
    %c0_90 = arith.constant 0 : index
    %c1_91 = arith.constant 1 : index
    %c3_92 = arith.constant 3 : index
    %126 = vector.load %arg4[%c0_90, %c1_91, %c3_92] : memref<2x22x22xf32, #tpu.memory_space<vmem>>, vector<2x16x16xf32>
    %127 = vector.broadcast %124 : f32 to vector<2x16x16xf32>
    %128 = arith.mulf %126, %127 : vector<2x16x16xf32>
    %129 = arith.addf %123, %128 : vector<2x16x16xf32>
    %c0_93 = arith.constant 0 : index
    %c1_94 = arith.constant 1 : index
    %c3_95 = arith.constant 3 : index
    %130 = vector.load %arg5[%c0_93, %c1_94, %c3_95] : memref<2x22x22xf32, #tpu.memory_space<vmem>>, vector<2x16x16xf32>
    %131 = vector.broadcast %125 : f32 to vector<2x16x16xf32>
    %132 = arith.mulf %130, %131 : vector<2x16x16xf32>
    %133 = arith.addf %129, %132 : vector<2x16x16xf32>
    %c11 = arith.constant 11 : index
    %134 = memref.load %arg1[%c11] : memref<99xf32, #tpu.memory_space<smem>>
    %c60 = arith.constant 60 : index
    %135 = memref.load %arg1[%c60] : memref<99xf32, #tpu.memory_space<smem>>
    %c0_96 = arith.constant 0 : index
    %c1_97 = arith.constant 1 : index
    %c4_98 = arith.constant 4 : index
    %136 = vector.load %arg4[%c0_96, %c1_97, %c4_98] : memref<2x22x22xf32, #tpu.memory_space<vmem>>, vector<2x16x16xf32>
    %137 = vector.broadcast %134 : f32 to vector<2x16x16xf32>
    %138 = arith.mulf %136, %137 : vector<2x16x16xf32>
    %139 = arith.addf %133, %138 : vector<2x16x16xf32>
    %c0_99 = arith.constant 0 : index
    %c1_100 = arith.constant 1 : index
    %c4_101 = arith.constant 4 : index
    %140 = vector.load %arg5[%c0_99, %c1_100, %c4_101] : memref<2x22x22xf32, #tpu.memory_space<vmem>>, vector<2x16x16xf32>
    %141 = vector.broadcast %135 : f32 to vector<2x16x16xf32>
    %142 = arith.mulf %140, %141 : vector<2x16x16xf32>
    %143 = arith.addf %139, %142 : vector<2x16x16xf32>
    %c12 = arith.constant 12 : index
    %144 = memref.load %arg1[%c12] : memref<99xf32, #tpu.memory_space<smem>>
    %c61 = arith.constant 61 : index
    %145 = memref.load %arg1[%c61] : memref<99xf32, #tpu.memory_space<smem>>
    %c0_102 = arith.constant 0 : index
    %c1_103 = arith.constant 1 : index
    %c5_104 = arith.constant 5 : index
    %146 = vector.load %arg4[%c0_102, %c1_103, %c5_104] : memref<2x22x22xf32, #tpu.memory_space<vmem>>, vector<2x16x16xf32>
    %147 = vector.broadcast %144 : f32 to vector<2x16x16xf32>
    %148 = arith.mulf %146, %147 : vector<2x16x16xf32>
    %149 = arith.addf %143, %148 : vector<2x16x16xf32>
    %c0_105 = arith.constant 0 : index
    %c1_106 = arith.constant 1 : index
    %c5_107 = arith.constant 5 : index
    %150 = vector.load %arg5[%c0_105, %c1_106, %c5_107] : memref<2x22x22xf32, #tpu.memory_space<vmem>>, vector<2x16x16xf32>
    %151 = vector.broadcast %145 : f32 to vector<2x16x16xf32>
    %152 = arith.mulf %150, %151 : vector<2x16x16xf32>
    %153 = arith.addf %149, %152 : vector<2x16x16xf32>
    %c13 = arith.constant 13 : index
    %154 = memref.load %arg1[%c13] : memref<99xf32, #tpu.memory_space<smem>>
    %c62 = arith.constant 62 : index
    %155 = memref.load %arg1[%c62] : memref<99xf32, #tpu.memory_space<smem>>
    %c0_108 = arith.constant 0 : index
    %c1_109 = arith.constant 1 : index
    %c6_110 = arith.constant 6 : index
    %156 = vector.load %arg4[%c0_108, %c1_109, %c6_110] : memref<2x22x22xf32, #tpu.memory_space<vmem>>, vector<2x16x16xf32>
    %157 = vector.broadcast %154 : f32 to vector<2x16x16xf32>
    %158 = arith.mulf %156, %157 : vector<2x16x16xf32>
    %159 = arith.addf %153, %158 : vector<2x16x16xf32>
    %c0_111 = arith.constant 0 : index
    %c1_112 = arith.constant 1 : index
    %c6_113 = arith.constant 6 : index
    %160 = vector.load %arg5[%c0_111, %c1_112, %c6_113] : memref<2x22x22xf32, #tpu.memory_space<vmem>>, vector<2x16x16xf32>
    %161 = vector.broadcast %155 : f32 to vector<2x16x16xf32>
    %162 = arith.mulf %160, %161 : vector<2x16x16xf32>
    %163 = arith.addf %159, %162 : vector<2x16x16xf32>
    %c14 = arith.constant 14 : index
    %164 = memref.load %arg1[%c14] : memref<99xf32, #tpu.memory_space<smem>>
    %c63 = arith.constant 63 : index
    %165 = memref.load %arg1[%c63] : memref<99xf32, #tpu.memory_space<smem>>
    %c0_114 = arith.constant 0 : index
    %c2_115 = arith.constant 2 : index
    %c0_116 = arith.constant 0 : index
    %166 = vector.load %arg4[%c0_114, %c2_115, %c0_116] : memref<2x22x22xf32, #tpu.memory_space<vmem>>, vector<2x16x16xf32>
    %167 = vector.broadcast %164 : f32 to vector<2x16x16xf32>
    %168 = arith.mulf %166, %167 : vector<2x16x16xf32>
    %169 = arith.addf %163, %168 : vector<2x16x16xf32>
    %c0_117 = arith.constant 0 : index
    %c2_118 = arith.constant 2 : index
    %c0_119 = arith.constant 0 : index
    %170 = vector.load %arg5[%c0_117, %c2_118, %c0_119] : memref<2x22x22xf32, #tpu.memory_space<vmem>>, vector<2x16x16xf32>
    %171 = vector.broadcast %165 : f32 to vector<2x16x16xf32>
    %172 = arith.mulf %170, %171 : vector<2x16x16xf32>
    %173 = arith.addf %169, %172 : vector<2x16x16xf32>
    %c15 = arith.constant 15 : index
    %174 = memref.load %arg1[%c15] : memref<99xf32, #tpu.memory_space<smem>>
    %c64 = arith.constant 64 : index
    %175 = memref.load %arg1[%c64] : memref<99xf32, #tpu.memory_space<smem>>
    %c0_120 = arith.constant 0 : index
    %c2_121 = arith.constant 2 : index
    %c1_122 = arith.constant 1 : index
    %176 = vector.load %arg4[%c0_120, %c2_121, %c1_122] : memref<2x22x22xf32, #tpu.memory_space<vmem>>, vector<2x16x16xf32>
    %177 = vector.broadcast %174 : f32 to vector<2x16x16xf32>
    %178 = arith.mulf %176, %177 : vector<2x16x16xf32>
    %179 = arith.addf %173, %178 : vector<2x16x16xf32>
    %c0_123 = arith.constant 0 : index
    %c2_124 = arith.constant 2 : index
    %c1_125 = arith.constant 1 : index
    %180 = vector.load %arg5[%c0_123, %c2_124, %c1_125] : memref<2x22x22xf32, #tpu.memory_space<vmem>>, vector<2x16x16xf32>
    %181 = vector.broadcast %175 : f32 to vector<2x16x16xf32>
    %182 = arith.mulf %180, %181 : vector<2x16x16xf32>
    %183 = arith.addf %179, %182 : vector<2x16x16xf32>
    %c16 = arith.constant 16 : index
    %184 = memref.load %arg1[%c16] : memref<99xf32, #tpu.memory_space<smem>>
    %c65 = arith.constant 65 : index
    %185 = memref.load %arg1[%c65] : memref<99xf32, #tpu.memory_space<smem>>
    %c0_126 = arith.constant 0 : index
    %c2_127 = arith.constant 2 : index
    %c2_128 = arith.constant 2 : index
    %186 = vector.load %arg4[%c0_126, %c2_127, %c2_128] : memref<2x22x22xf32, #tpu.memory_space<vmem>>, vector<2x16x16xf32>
    %187 = vector.broadcast %184 : f32 to vector<2x16x16xf32>
    %188 = arith.mulf %186, %187 : vector<2x16x16xf32>
    %189 = arith.addf %183, %188 : vector<2x16x16xf32>
    %c0_129 = arith.constant 0 : index
    %c2_130 = arith.constant 2 : index
    %c2_131 = arith.constant 2 : index
    %190 = vector.load %arg5[%c0_129, %c2_130, %c2_131] : memref<2x22x22xf32, #tpu.memory_space<vmem>>, vector<2x16x16xf32>
    %191 = vector.broadcast %185 : f32 to vector<2x16x16xf32>
    %192 = arith.mulf %190, %191 : vector<2x16x16xf32>
    %193 = arith.addf %189, %192 : vector<2x16x16xf32>
    %c17 = arith.constant 17 : index
    %194 = memref.load %arg1[%c17] : memref<99xf32, #tpu.memory_space<smem>>
    %c66 = arith.constant 66 : index
    %195 = memref.load %arg1[%c66] : memref<99xf32, #tpu.memory_space<smem>>
    %c0_132 = arith.constant 0 : index
    %c2_133 = arith.constant 2 : index
    %c3_134 = arith.constant 3 : index
    %196 = vector.load %arg4[%c0_132, %c2_133, %c3_134] : memref<2x22x22xf32, #tpu.memory_space<vmem>>, vector<2x16x16xf32>
    %197 = vector.broadcast %194 : f32 to vector<2x16x16xf32>
    %198 = arith.mulf %196, %197 : vector<2x16x16xf32>
    %199 = arith.addf %193, %198 : vector<2x16x16xf32>
    %c0_135 = arith.constant 0 : index
    %c2_136 = arith.constant 2 : index
    %c3_137 = arith.constant 3 : index
    %200 = vector.load %arg5[%c0_135, %c2_136, %c3_137] : memref<2x22x22xf32, #tpu.memory_space<vmem>>, vector<2x16x16xf32>
    %201 = vector.broadcast %195 : f32 to vector<2x16x16xf32>
    %202 = arith.mulf %200, %201 : vector<2x16x16xf32>
    %203 = arith.addf %199, %202 : vector<2x16x16xf32>
    %c18 = arith.constant 18 : index
    %204 = memref.load %arg1[%c18] : memref<99xf32, #tpu.memory_space<smem>>
    %c67 = arith.constant 67 : index
    %205 = memref.load %arg1[%c67] : memref<99xf32, #tpu.memory_space<smem>>
    %c0_138 = arith.constant 0 : index
    %c2_139 = arith.constant 2 : index
    %c4_140 = arith.constant 4 : index
    %206 = vector.load %arg4[%c0_138, %c2_139, %c4_140] : memref<2x22x22xf32, #tpu.memory_space<vmem>>, vector<2x16x16xf32>
    %207 = vector.broadcast %204 : f32 to vector<2x16x16xf32>
    %208 = arith.mulf %206, %207 : vector<2x16x16xf32>
    %209 = arith.addf %203, %208 : vector<2x16x16xf32>
    %c0_141 = arith.constant 0 : index
    %c2_142 = arith.constant 2 : index
    %c4_143 = arith.constant 4 : index
    %210 = vector.load %arg5[%c0_141, %c2_142, %c4_143] : memref<2x22x22xf32, #tpu.memory_space<vmem>>, vector<2x16x16xf32>
    %211 = vector.broadcast %205 : f32 to vector<2x16x16xf32>
    %212 = arith.mulf %210, %211 : vector<2x16x16xf32>
    %213 = arith.addf %209, %212 : vector<2x16x16xf32>
    %c19 = arith.constant 19 : index
    %214 = memref.load %arg1[%c19] : memref<99xf32, #tpu.memory_space<smem>>
    %c68 = arith.constant 68 : index
    %215 = memref.load %arg1[%c68] : memref<99xf32, #tpu.memory_space<smem>>
    %c0_144 = arith.constant 0 : index
    %c2_145 = arith.constant 2 : index
    %c5_146 = arith.constant 5 : index
    %216 = vector.load %arg4[%c0_144, %c2_145, %c5_146] : memref<2x22x22xf32, #tpu.memory_space<vmem>>, vector<2x16x16xf32>
    %217 = vector.broadcast %214 : f32 to vector<2x16x16xf32>
    %218 = arith.mulf %216, %217 : vector<2x16x16xf32>
    %219 = arith.addf %213, %218 : vector<2x16x16xf32>
    %c0_147 = arith.constant 0 : index
    %c2_148 = arith.constant 2 : index
    %c5_149 = arith.constant 5 : index
    %220 = vector.load %arg5[%c0_147, %c2_148, %c5_149] : memref<2x22x22xf32, #tpu.memory_space<vmem>>, vector<2x16x16xf32>
    %221 = vector.broadcast %215 : f32 to vector<2x16x16xf32>
    %222 = arith.mulf %220, %221 : vector<2x16x16xf32>
    %223 = arith.addf %219, %222 : vector<2x16x16xf32>
    %c20 = arith.constant 20 : index
    %224 = memref.load %arg1[%c20] : memref<99xf32, #tpu.memory_space<smem>>
    %c69 = arith.constant 69 : index
    %225 = memref.load %arg1[%c69] : memref<99xf32, #tpu.memory_space<smem>>
    %c0_150 = arith.constant 0 : index
    %c2_151 = arith.constant 2 : index
    %c6_152 = arith.constant 6 : index
    %226 = vector.load %arg4[%c0_150, %c2_151, %c6_152] : memref<2x22x22xf32, #tpu.memory_space<vmem>>, vector<2x16x16xf32>
    %227 = vector.broadcast %224 : f32 to vector<2x16x16xf32>
    %228 = arith.mulf %226, %227 : vector<2x16x16xf32>
    %229 = arith.addf %223, %228 : vector<2x16x16xf32>
    %c0_153 = arith.constant 0 : index
    %c2_154 = arith.constant 2 : index
    %c6_155 = arith.constant 6 : index
    %230 = vector.load %arg5[%c0_153, %c2_154, %c6_155] : memref<2x22x22xf32, #tpu.memory_space<vmem>>, vector<2x16x16xf32>
    %231 = vector.broadcast %225 : f32 to vector<2x16x16xf32>
    %232 = arith.mulf %230, %231 : vector<2x16x16xf32>
    %233 = arith.addf %229, %232 : vector<2x16x16xf32>
    %c21 = arith.constant 21 : index
    %234 = memref.load %arg1[%c21] : memref<99xf32, #tpu.memory_space<smem>>
    %c70 = arith.constant 70 : index
    %235 = memref.load %arg1[%c70] : memref<99xf32, #tpu.memory_space<smem>>
    %c0_156 = arith.constant 0 : index
    %c3_157 = arith.constant 3 : index
    %c0_158 = arith.constant 0 : index
    %236 = vector.load %arg4[%c0_156, %c3_157, %c0_158] : memref<2x22x22xf32, #tpu.memory_space<vmem>>, vector<2x16x16xf32>
    %237 = vector.broadcast %234 : f32 to vector<2x16x16xf32>
    %238 = arith.mulf %236, %237 : vector<2x16x16xf32>
    %239 = arith.addf %233, %238 : vector<2x16x16xf32>
    %c0_159 = arith.constant 0 : index
    %c3_160 = arith.constant 3 : index
    %c0_161 = arith.constant 0 : index
    %240 = vector.load %arg5[%c0_159, %c3_160, %c0_161] : memref<2x22x22xf32, #tpu.memory_space<vmem>>, vector<2x16x16xf32>
    %241 = vector.broadcast %235 : f32 to vector<2x16x16xf32>
    %242 = arith.mulf %240, %241 : vector<2x16x16xf32>
    %243 = arith.addf %239, %242 : vector<2x16x16xf32>
    %c22 = arith.constant 22 : index
    %244 = memref.load %arg1[%c22] : memref<99xf32, #tpu.memory_space<smem>>
    %c71 = arith.constant 71 : index
    %245 = memref.load %arg1[%c71] : memref<99xf32, #tpu.memory_space<smem>>
    %c0_162 = arith.constant 0 : index
    %c3_163 = arith.constant 3 : index
    %c1_164 = arith.constant 1 : index
    %246 = vector.load %arg4[%c0_162, %c3_163, %c1_164] : memref<2x22x22xf32, #tpu.memory_space<vmem>>, vector<2x16x16xf32>
    %247 = vector.broadcast %244 : f32 to vector<2x16x16xf32>
    %248 = arith.mulf %246, %247 : vector<2x16x16xf32>
    %249 = arith.addf %243, %248 : vector<2x16x16xf32>
    %c0_165 = arith.constant 0 : index
    %c3_166 = arith.constant 3 : index
    %c1_167 = arith.constant 1 : index
    %250 = vector.load %arg5[%c0_165, %c3_166, %c1_167] : memref<2x22x22xf32, #tpu.memory_space<vmem>>, vector<2x16x16xf32>
    %251 = vector.broadcast %245 : f32 to vector<2x16x16xf32>
    %252 = arith.mulf %250, %251 : vector<2x16x16xf32>
    %253 = arith.addf %249, %252 : vector<2x16x16xf32>
    %c23 = arith.constant 23 : index
    %254 = memref.load %arg1[%c23] : memref<99xf32, #tpu.memory_space<smem>>
    %c72 = arith.constant 72 : index
    %255 = memref.load %arg1[%c72] : memref<99xf32, #tpu.memory_space<smem>>
    %c0_168 = arith.constant 0 : index
    %c3_169 = arith.constant 3 : index
    %c2_170 = arith.constant 2 : index
    %256 = vector.load %arg4[%c0_168, %c3_169, %c2_170] : memref<2x22x22xf32, #tpu.memory_space<vmem>>, vector<2x16x16xf32>
    %257 = vector.broadcast %254 : f32 to vector<2x16x16xf32>
    %258 = arith.mulf %256, %257 : vector<2x16x16xf32>
    %259 = arith.addf %253, %258 : vector<2x16x16xf32>
    %c0_171 = arith.constant 0 : index
    %c3_172 = arith.constant 3 : index
    %c2_173 = arith.constant 2 : index
    %260 = vector.load %arg5[%c0_171, %c3_172, %c2_173] : memref<2x22x22xf32, #tpu.memory_space<vmem>>, vector<2x16x16xf32>
    %261 = vector.broadcast %255 : f32 to vector<2x16x16xf32>
    %262 = arith.mulf %260, %261 : vector<2x16x16xf32>
    %263 = arith.addf %259, %262 : vector<2x16x16xf32>
    %c24 = arith.constant 24 : index
    %264 = memref.load %arg1[%c24] : memref<99xf32, #tpu.memory_space<smem>>
    %c73 = arith.constant 73 : index
    %265 = memref.load %arg1[%c73] : memref<99xf32, #tpu.memory_space<smem>>
    %c0_174 = arith.constant 0 : index
    %c3_175 = arith.constant 3 : index
    %c3_176 = arith.constant 3 : index
    %266 = vector.load %arg4[%c0_174, %c3_175, %c3_176] : memref<2x22x22xf32, #tpu.memory_space<vmem>>, vector<2x16x16xf32>
    %267 = vector.broadcast %264 : f32 to vector<2x16x16xf32>
    %268 = arith.mulf %266, %267 : vector<2x16x16xf32>
    %269 = arith.addf %263, %268 : vector<2x16x16xf32>
    %c0_177 = arith.constant 0 : index
    %c3_178 = arith.constant 3 : index
    %c3_179 = arith.constant 3 : index
    %270 = vector.load %arg5[%c0_177, %c3_178, %c3_179] : memref<2x22x22xf32, #tpu.memory_space<vmem>>, vector<2x16x16xf32>
    %271 = vector.broadcast %265 : f32 to vector<2x16x16xf32>
    %272 = arith.mulf %270, %271 : vector<2x16x16xf32>
    %273 = arith.addf %269, %272 : vector<2x16x16xf32>
    %c25 = arith.constant 25 : index
    %274 = memref.load %arg1[%c25] : memref<99xf32, #tpu.memory_space<smem>>
    %c74 = arith.constant 74 : index
    %275 = memref.load %arg1[%c74] : memref<99xf32, #tpu.memory_space<smem>>
    %c0_180 = arith.constant 0 : index
    %c3_181 = arith.constant 3 : index
    %c4_182 = arith.constant 4 : index
    %276 = vector.load %arg4[%c0_180, %c3_181, %c4_182] : memref<2x22x22xf32, #tpu.memory_space<vmem>>, vector<2x16x16xf32>
    %277 = vector.broadcast %274 : f32 to vector<2x16x16xf32>
    %278 = arith.mulf %276, %277 : vector<2x16x16xf32>
    %279 = arith.addf %273, %278 : vector<2x16x16xf32>
    %c0_183 = arith.constant 0 : index
    %c3_184 = arith.constant 3 : index
    %c4_185 = arith.constant 4 : index
    %280 = vector.load %arg5[%c0_183, %c3_184, %c4_185] : memref<2x22x22xf32, #tpu.memory_space<vmem>>, vector<2x16x16xf32>
    %281 = vector.broadcast %275 : f32 to vector<2x16x16xf32>
    %282 = arith.mulf %280, %281 : vector<2x16x16xf32>
    %283 = arith.addf %279, %282 : vector<2x16x16xf32>
    %c26 = arith.constant 26 : index
    %284 = memref.load %arg1[%c26] : memref<99xf32, #tpu.memory_space<smem>>
    %c75 = arith.constant 75 : index
    %285 = memref.load %arg1[%c75] : memref<99xf32, #tpu.memory_space<smem>>
    %c0_186 = arith.constant 0 : index
    %c3_187 = arith.constant 3 : index
    %c5_188 = arith.constant 5 : index
    %286 = vector.load %arg4[%c0_186, %c3_187, %c5_188] : memref<2x22x22xf32, #tpu.memory_space<vmem>>, vector<2x16x16xf32>
    %287 = vector.broadcast %284 : f32 to vector<2x16x16xf32>
    %288 = arith.mulf %286, %287 : vector<2x16x16xf32>
    %289 = arith.addf %283, %288 : vector<2x16x16xf32>
    %c0_189 = arith.constant 0 : index
    %c3_190 = arith.constant 3 : index
    %c5_191 = arith.constant 5 : index
    %290 = vector.load %arg5[%c0_189, %c3_190, %c5_191] : memref<2x22x22xf32, #tpu.memory_space<vmem>>, vector<2x16x16xf32>
    %291 = vector.broadcast %285 : f32 to vector<2x16x16xf32>
    %292 = arith.mulf %290, %291 : vector<2x16x16xf32>
    %293 = arith.addf %289, %292 : vector<2x16x16xf32>
    %c27 = arith.constant 27 : index
    %294 = memref.load %arg1[%c27] : memref<99xf32, #tpu.memory_space<smem>>
    %c76 = arith.constant 76 : index
    %295 = memref.load %arg1[%c76] : memref<99xf32, #tpu.memory_space<smem>>
    %c0_192 = arith.constant 0 : index
    %c3_193 = arith.constant 3 : index
    %c6_194 = arith.constant 6 : index
    %296 = vector.load %arg4[%c0_192, %c3_193, %c6_194] : memref<2x22x22xf32, #tpu.memory_space<vmem>>, vector<2x16x16xf32>
    %297 = vector.broadcast %294 : f32 to vector<2x16x16xf32>
    %298 = arith.mulf %296, %297 : vector<2x16x16xf32>
    %299 = arith.addf %293, %298 : vector<2x16x16xf32>
    %c0_195 = arith.constant 0 : index
    %c3_196 = arith.constant 3 : index
    %c6_197 = arith.constant 6 : index
    %300 = vector.load %arg5[%c0_195, %c3_196, %c6_197] : memref<2x22x22xf32, #tpu.memory_space<vmem>>, vector<2x16x16xf32>
    %301 = vector.broadcast %295 : f32 to vector<2x16x16xf32>
    %302 = arith.mulf %300, %301 : vector<2x16x16xf32>
    %303 = arith.addf %299, %302 : vector<2x16x16xf32>
    %c28 = arith.constant 28 : index
    %304 = memref.load %arg1[%c28] : memref<99xf32, #tpu.memory_space<smem>>
    %c77 = arith.constant 77 : index
    %305 = memref.load %arg1[%c77] : memref<99xf32, #tpu.memory_space<smem>>
    %c0_198 = arith.constant 0 : index
    %c4_199 = arith.constant 4 : index
    %c0_200 = arith.constant 0 : index
    %306 = vector.load %arg4[%c0_198, %c4_199, %c0_200] : memref<2x22x22xf32, #tpu.memory_space<vmem>>, vector<2x16x16xf32>
    %307 = vector.broadcast %304 : f32 to vector<2x16x16xf32>
    %308 = arith.mulf %306, %307 : vector<2x16x16xf32>
    %309 = arith.addf %303, %308 : vector<2x16x16xf32>
    %c0_201 = arith.constant 0 : index
    %c4_202 = arith.constant 4 : index
    %c0_203 = arith.constant 0 : index
    %310 = vector.load %arg5[%c0_201, %c4_202, %c0_203] : memref<2x22x22xf32, #tpu.memory_space<vmem>>, vector<2x16x16xf32>
    %311 = vector.broadcast %305 : f32 to vector<2x16x16xf32>
    %312 = arith.mulf %310, %311 : vector<2x16x16xf32>
    %313 = arith.addf %309, %312 : vector<2x16x16xf32>
    %c29 = arith.constant 29 : index
    %314 = memref.load %arg1[%c29] : memref<99xf32, #tpu.memory_space<smem>>
    %c78 = arith.constant 78 : index
    %315 = memref.load %arg1[%c78] : memref<99xf32, #tpu.memory_space<smem>>
    %c0_204 = arith.constant 0 : index
    %c4_205 = arith.constant 4 : index
    %c1_206 = arith.constant 1 : index
    %316 = vector.load %arg4[%c0_204, %c4_205, %c1_206] : memref<2x22x22xf32, #tpu.memory_space<vmem>>, vector<2x16x16xf32>
    %317 = vector.broadcast %314 : f32 to vector<2x16x16xf32>
    %318 = arith.mulf %316, %317 : vector<2x16x16xf32>
    %319 = arith.addf %313, %318 : vector<2x16x16xf32>
    %c0_207 = arith.constant 0 : index
    %c4_208 = arith.constant 4 : index
    %c1_209 = arith.constant 1 : index
    %320 = vector.load %arg5[%c0_207, %c4_208, %c1_209] : memref<2x22x22xf32, #tpu.memory_space<vmem>>, vector<2x16x16xf32>
    %321 = vector.broadcast %315 : f32 to vector<2x16x16xf32>
    %322 = arith.mulf %320, %321 : vector<2x16x16xf32>
    %323 = arith.addf %319, %322 : vector<2x16x16xf32>
    %c30 = arith.constant 30 : index
    %324 = memref.load %arg1[%c30] : memref<99xf32, #tpu.memory_space<smem>>
    %c79 = arith.constant 79 : index
    %325 = memref.load %arg1[%c79] : memref<99xf32, #tpu.memory_space<smem>>
    %c0_210 = arith.constant 0 : index
    %c4_211 = arith.constant 4 : index
    %c2_212 = arith.constant 2 : index
    %326 = vector.load %arg4[%c0_210, %c4_211, %c2_212] : memref<2x22x22xf32, #tpu.memory_space<vmem>>, vector<2x16x16xf32>
    %327 = vector.broadcast %324 : f32 to vector<2x16x16xf32>
    %328 = arith.mulf %326, %327 : vector<2x16x16xf32>
    %329 = arith.addf %323, %328 : vector<2x16x16xf32>
    %c0_213 = arith.constant 0 : index
    %c4_214 = arith.constant 4 : index
    %c2_215 = arith.constant 2 : index
    %330 = vector.load %arg5[%c0_213, %c4_214, %c2_215] : memref<2x22x22xf32, #tpu.memory_space<vmem>>, vector<2x16x16xf32>
    %331 = vector.broadcast %325 : f32 to vector<2x16x16xf32>
    %332 = arith.mulf %330, %331 : vector<2x16x16xf32>
    %333 = arith.addf %329, %332 : vector<2x16x16xf32>
    %c31 = arith.constant 31 : index
    %334 = memref.load %arg1[%c31] : memref<99xf32, #tpu.memory_space<smem>>
    %c80 = arith.constant 80 : index
    %335 = memref.load %arg1[%c80] : memref<99xf32, #tpu.memory_space<smem>>
    %c0_216 = arith.constant 0 : index
    %c4_217 = arith.constant 4 : index
    %c3_218 = arith.constant 3 : index
    %336 = vector.load %arg4[%c0_216, %c4_217, %c3_218] : memref<2x22x22xf32, #tpu.memory_space<vmem>>, vector<2x16x16xf32>
    %337 = vector.broadcast %334 : f32 to vector<2x16x16xf32>
    %338 = arith.mulf %336, %337 : vector<2x16x16xf32>
    %339 = arith.addf %333, %338 : vector<2x16x16xf32>
    %c0_219 = arith.constant 0 : index
    %c4_220 = arith.constant 4 : index
    %c3_221 = arith.constant 3 : index
    %340 = vector.load %arg5[%c0_219, %c4_220, %c3_221] : memref<2x22x22xf32, #tpu.memory_space<vmem>>, vector<2x16x16xf32>
    %341 = vector.broadcast %335 : f32 to vector<2x16x16xf32>
    %342 = arith.mulf %340, %341 : vector<2x16x16xf32>
    %343 = arith.addf %339, %342 : vector<2x16x16xf32>
    %c32 = arith.constant 32 : index
    %344 = memref.load %arg1[%c32] : memref<99xf32, #tpu.memory_space<smem>>
    %c81 = arith.constant 81 : index
    %345 = memref.load %arg1[%c81] : memref<99xf32, #tpu.memory_space<smem>>
    %c0_222 = arith.constant 0 : index
    %c4_223 = arith.constant 4 : index
    %c4_224 = arith.constant 4 : index
    %346 = vector.load %arg4[%c0_222, %c4_223, %c4_224] : memref<2x22x22xf32, #tpu.memory_space<vmem>>, vector<2x16x16xf32>
    %347 = vector.broadcast %344 : f32 to vector<2x16x16xf32>
    %348 = arith.mulf %346, %347 : vector<2x16x16xf32>
    %349 = arith.addf %343, %348 : vector<2x16x16xf32>
    %c0_225 = arith.constant 0 : index
    %c4_226 = arith.constant 4 : index
    %c4_227 = arith.constant 4 : index
    %350 = vector.load %arg5[%c0_225, %c4_226, %c4_227] : memref<2x22x22xf32, #tpu.memory_space<vmem>>, vector<2x16x16xf32>
    %351 = vector.broadcast %345 : f32 to vector<2x16x16xf32>
    %352 = arith.mulf %350, %351 : vector<2x16x16xf32>
    %353 = arith.addf %349, %352 : vector<2x16x16xf32>
    %c33 = arith.constant 33 : index
    %354 = memref.load %arg1[%c33] : memref<99xf32, #tpu.memory_space<smem>>
    %c82 = arith.constant 82 : index
    %355 = memref.load %arg1[%c82] : memref<99xf32, #tpu.memory_space<smem>>
    %c0_228 = arith.constant 0 : index
    %c4_229 = arith.constant 4 : index
    %c5_230 = arith.constant 5 : index
    %356 = vector.load %arg4[%c0_228, %c4_229, %c5_230] : memref<2x22x22xf32, #tpu.memory_space<vmem>>, vector<2x16x16xf32>
    %357 = vector.broadcast %354 : f32 to vector<2x16x16xf32>
    %358 = arith.mulf %356, %357 : vector<2x16x16xf32>
    %359 = arith.addf %353, %358 : vector<2x16x16xf32>
    %c0_231 = arith.constant 0 : index
    %c4_232 = arith.constant 4 : index
    %c5_233 = arith.constant 5 : index
    %360 = vector.load %arg5[%c0_231, %c4_232, %c5_233] : memref<2x22x22xf32, #tpu.memory_space<vmem>>, vector<2x16x16xf32>
    %361 = vector.broadcast %355 : f32 to vector<2x16x16xf32>
    %362 = arith.mulf %360, %361 : vector<2x16x16xf32>
    %363 = arith.addf %359, %362 : vector<2x16x16xf32>
    %c34 = arith.constant 34 : index
    %364 = memref.load %arg1[%c34] : memref<99xf32, #tpu.memory_space<smem>>
    %c83 = arith.constant 83 : index
    %365 = memref.load %arg1[%c83] : memref<99xf32, #tpu.memory_space<smem>>
    %c0_234 = arith.constant 0 : index
    %c4_235 = arith.constant 4 : index
    %c6_236 = arith.constant 6 : index
    %366 = vector.load %arg4[%c0_234, %c4_235, %c6_236] : memref<2x22x22xf32, #tpu.memory_space<vmem>>, vector<2x16x16xf32>
    %367 = vector.broadcast %364 : f32 to vector<2x16x16xf32>
    %368 = arith.mulf %366, %367 : vector<2x16x16xf32>
    %369 = arith.addf %363, %368 : vector<2x16x16xf32>
    %c0_237 = arith.constant 0 : index
    %c4_238 = arith.constant 4 : index
    %c6_239 = arith.constant 6 : index
    %370 = vector.load %arg5[%c0_237, %c4_238, %c6_239] : memref<2x22x22xf32, #tpu.memory_space<vmem>>, vector<2x16x16xf32>
    %371 = vector.broadcast %365 : f32 to vector<2x16x16xf32>
    %372 = arith.mulf %370, %371 : vector<2x16x16xf32>
    %373 = arith.addf %369, %372 : vector<2x16x16xf32>
    %c35 = arith.constant 35 : index
    %374 = memref.load %arg1[%c35] : memref<99xf32, #tpu.memory_space<smem>>
    %c84 = arith.constant 84 : index
    %375 = memref.load %arg1[%c84] : memref<99xf32, #tpu.memory_space<smem>>
    %c0_240 = arith.constant 0 : index
    %c5_241 = arith.constant 5 : index
    %c0_242 = arith.constant 0 : index
    %376 = vector.load %arg4[%c0_240, %c5_241, %c0_242] : memref<2x22x22xf32, #tpu.memory_space<vmem>>, vector<2x16x16xf32>
    %377 = vector.broadcast %374 : f32 to vector<2x16x16xf32>
    %378 = arith.mulf %376, %377 : vector<2x16x16xf32>
    %379 = arith.addf %373, %378 : vector<2x16x16xf32>
    %c0_243 = arith.constant 0 : index
    %c5_244 = arith.constant 5 : index
    %c0_245 = arith.constant 0 : index
    %380 = vector.load %arg5[%c0_243, %c5_244, %c0_245] : memref<2x22x22xf32, #tpu.memory_space<vmem>>, vector<2x16x16xf32>
    %381 = vector.broadcast %375 : f32 to vector<2x16x16xf32>
    %382 = arith.mulf %380, %381 : vector<2x16x16xf32>
    %383 = arith.addf %379, %382 : vector<2x16x16xf32>
    %c36 = arith.constant 36 : index
    %384 = memref.load %arg1[%c36] : memref<99xf32, #tpu.memory_space<smem>>
    %c85 = arith.constant 85 : index
    %385 = memref.load %arg1[%c85] : memref<99xf32, #tpu.memory_space<smem>>
    %c0_246 = arith.constant 0 : index
    %c5_247 = arith.constant 5 : index
    %c1_248 = arith.constant 1 : index
    %386 = vector.load %arg4[%c0_246, %c5_247, %c1_248] : memref<2x22x22xf32, #tpu.memory_space<vmem>>, vector<2x16x16xf32>
    %387 = vector.broadcast %384 : f32 to vector<2x16x16xf32>
    %388 = arith.mulf %386, %387 : vector<2x16x16xf32>
    %389 = arith.addf %383, %388 : vector<2x16x16xf32>
    %c0_249 = arith.constant 0 : index
    %c5_250 = arith.constant 5 : index
    %c1_251 = arith.constant 1 : index
    %390 = vector.load %arg5[%c0_249, %c5_250, %c1_251] : memref<2x22x22xf32, #tpu.memory_space<vmem>>, vector<2x16x16xf32>
    %391 = vector.broadcast %385 : f32 to vector<2x16x16xf32>
    %392 = arith.mulf %390, %391 : vector<2x16x16xf32>
    %393 = arith.addf %389, %392 : vector<2x16x16xf32>
    %c37 = arith.constant 37 : index
    %394 = memref.load %arg1[%c37] : memref<99xf32, #tpu.memory_space<smem>>
    %c86 = arith.constant 86 : index
    %395 = memref.load %arg1[%c86] : memref<99xf32, #tpu.memory_space<smem>>
    %c0_252 = arith.constant 0 : index
    %c5_253 = arith.constant 5 : index
    %c2_254 = arith.constant 2 : index
    %396 = vector.load %arg4[%c0_252, %c5_253, %c2_254] : memref<2x22x22xf32, #tpu.memory_space<vmem>>, vector<2x16x16xf32>
    %397 = vector.broadcast %394 : f32 to vector<2x16x16xf32>
    %398 = arith.mulf %396, %397 : vector<2x16x16xf32>
    %399 = arith.addf %393, %398 : vector<2x16x16xf32>
    %c0_255 = arith.constant 0 : index
    %c5_256 = arith.constant 5 : index
    %c2_257 = arith.constant 2 : index
    %400 = vector.load %arg5[%c0_255, %c5_256, %c2_257] : memref<2x22x22xf32, #tpu.memory_space<vmem>>, vector<2x16x16xf32>
    %401 = vector.broadcast %395 : f32 to vector<2x16x16xf32>
    %402 = arith.mulf %400, %401 : vector<2x16x16xf32>
    %403 = arith.addf %399, %402 : vector<2x16x16xf32>
    %c38 = arith.constant 38 : index
    %404 = memref.load %arg1[%c38] : memref<99xf32, #tpu.memory_space<smem>>
    %c87 = arith.constant 87 : index
    %405 = memref.load %arg1[%c87] : memref<99xf32, #tpu.memory_space<smem>>
    %c0_258 = arith.constant 0 : index
    %c5_259 = arith.constant 5 : index
    %c3_260 = arith.constant 3 : index
    %406 = vector.load %arg4[%c0_258, %c5_259, %c3_260] : memref<2x22x22xf32, #tpu.memory_space<vmem>>, vector<2x16x16xf32>
    %407 = vector.broadcast %404 : f32 to vector<2x16x16xf32>
    %408 = arith.mulf %406, %407 : vector<2x16x16xf32>
    %409 = arith.addf %403, %408 : vector<2x16x16xf32>
    %c0_261 = arith.constant 0 : index
    %c5_262 = arith.constant 5 : index
    %c3_263 = arith.constant 3 : index
    %410 = vector.load %arg5[%c0_261, %c5_262, %c3_263] : memref<2x22x22xf32, #tpu.memory_space<vmem>>, vector<2x16x16xf32>
    %411 = vector.broadcast %405 : f32 to vector<2x16x16xf32>
    %412 = arith.mulf %410, %411 : vector<2x16x16xf32>
    %413 = arith.addf %409, %412 : vector<2x16x16xf32>
    %c39 = arith.constant 39 : index
    %414 = memref.load %arg1[%c39] : memref<99xf32, #tpu.memory_space<smem>>
    %c88 = arith.constant 88 : index
    %415 = memref.load %arg1[%c88] : memref<99xf32, #tpu.memory_space<smem>>
    %c0_264 = arith.constant 0 : index
    %c5_265 = arith.constant 5 : index
    %c4_266 = arith.constant 4 : index
    %416 = vector.load %arg4[%c0_264, %c5_265, %c4_266] : memref<2x22x22xf32, #tpu.memory_space<vmem>>, vector<2x16x16xf32>
    %417 = vector.broadcast %414 : f32 to vector<2x16x16xf32>
    %418 = arith.mulf %416, %417 : vector<2x16x16xf32>
    %419 = arith.addf %413, %418 : vector<2x16x16xf32>
    %c0_267 = arith.constant 0 : index
    %c5_268 = arith.constant 5 : index
    %c4_269 = arith.constant 4 : index
    %420 = vector.load %arg5[%c0_267, %c5_268, %c4_269] : memref<2x22x22xf32, #tpu.memory_space<vmem>>, vector<2x16x16xf32>
    %421 = vector.broadcast %415 : f32 to vector<2x16x16xf32>
    %422 = arith.mulf %420, %421 : vector<2x16x16xf32>
    %423 = arith.addf %419, %422 : vector<2x16x16xf32>
    %c40 = arith.constant 40 : index
    %424 = memref.load %arg1[%c40] : memref<99xf32, #tpu.memory_space<smem>>
    %c89 = arith.constant 89 : index
    %425 = memref.load %arg1[%c89] : memref<99xf32, #tpu.memory_space<smem>>
    %c0_270 = arith.constant 0 : index
    %c5_271 = arith.constant 5 : index
    %c5_272 = arith.constant 5 : index
    %426 = vector.load %arg4[%c0_270, %c5_271, %c5_272] : memref<2x22x22xf32, #tpu.memory_space<vmem>>, vector<2x16x16xf32>
    %427 = vector.broadcast %424 : f32 to vector<2x16x16xf32>
    %428 = arith.mulf %426, %427 : vector<2x16x16xf32>
    %429 = arith.addf %423, %428 : vector<2x16x16xf32>
    %c0_273 = arith.constant 0 : index
    %c5_274 = arith.constant 5 : index
    %c5_275 = arith.constant 5 : index
    %430 = vector.load %arg5[%c0_273, %c5_274, %c5_275] : memref<2x22x22xf32, #tpu.memory_space<vmem>>, vector<2x16x16xf32>
    %431 = vector.broadcast %425 : f32 to vector<2x16x16xf32>
    %432 = arith.mulf %430, %431 : vector<2x16x16xf32>
    %433 = arith.addf %429, %432 : vector<2x16x16xf32>
    %c41 = arith.constant 41 : index
    %434 = memref.load %arg1[%c41] : memref<99xf32, #tpu.memory_space<smem>>
    %c90 = arith.constant 90 : index
    %435 = memref.load %arg1[%c90] : memref<99xf32, #tpu.memory_space<smem>>
    %c0_276 = arith.constant 0 : index
    %c5_277 = arith.constant 5 : index
    %c6_278 = arith.constant 6 : index
    %436 = vector.load %arg4[%c0_276, %c5_277, %c6_278] : memref<2x22x22xf32, #tpu.memory_space<vmem>>, vector<2x16x16xf32>
    %437 = vector.broadcast %434 : f32 to vector<2x16x16xf32>
    %438 = arith.mulf %436, %437 : vector<2x16x16xf32>
    %439 = arith.addf %433, %438 : vector<2x16x16xf32>
    %c0_279 = arith.constant 0 : index
    %c5_280 = arith.constant 5 : index
    %c6_281 = arith.constant 6 : index
    %440 = vector.load %arg5[%c0_279, %c5_280, %c6_281] : memref<2x22x22xf32, #tpu.memory_space<vmem>>, vector<2x16x16xf32>
    %441 = vector.broadcast %435 : f32 to vector<2x16x16xf32>
    %442 = arith.mulf %440, %441 : vector<2x16x16xf32>
    %443 = arith.addf %439, %442 : vector<2x16x16xf32>
    %c42 = arith.constant 42 : index
    %444 = memref.load %arg1[%c42] : memref<99xf32, #tpu.memory_space<smem>>
    %c91 = arith.constant 91 : index
    %445 = memref.load %arg1[%c91] : memref<99xf32, #tpu.memory_space<smem>>
    %c0_282 = arith.constant 0 : index
    %c6_283 = arith.constant 6 : index
    %c0_284 = arith.constant 0 : index
    %446 = vector.load %arg4[%c0_282, %c6_283, %c0_284] : memref<2x22x22xf32, #tpu.memory_space<vmem>>, vector<2x16x16xf32>
    %447 = vector.broadcast %444 : f32 to vector<2x16x16xf32>
    %448 = arith.mulf %446, %447 : vector<2x16x16xf32>
    %449 = arith.addf %443, %448 : vector<2x16x16xf32>
    %c0_285 = arith.constant 0 : index
    %c6_286 = arith.constant 6 : index
    %c0_287 = arith.constant 0 : index
    %450 = vector.load %arg5[%c0_285, %c6_286, %c0_287] : memref<2x22x22xf32, #tpu.memory_space<vmem>>, vector<2x16x16xf32>
    %451 = vector.broadcast %445 : f32 to vector<2x16x16xf32>
    %452 = arith.mulf %450, %451 : vector<2x16x16xf32>
    %453 = arith.addf %449, %452 : vector<2x16x16xf32>
    %c43 = arith.constant 43 : index
    %454 = memref.load %arg1[%c43] : memref<99xf32, #tpu.memory_space<smem>>
    %c92 = arith.constant 92 : index
    %455 = memref.load %arg1[%c92] : memref<99xf32, #tpu.memory_space<smem>>
    %c0_288 = arith.constant 0 : index
    %c6_289 = arith.constant 6 : index
    %c1_290 = arith.constant 1 : index
    %456 = vector.load %arg4[%c0_288, %c6_289, %c1_290] : memref<2x22x22xf32, #tpu.memory_space<vmem>>, vector<2x16x16xf32>
    %457 = vector.broadcast %454 : f32 to vector<2x16x16xf32>
    %458 = arith.mulf %456, %457 : vector<2x16x16xf32>
    %459 = arith.addf %453, %458 : vector<2x16x16xf32>
    %c0_291 = arith.constant 0 : index
    %c6_292 = arith.constant 6 : index
    %c1_293 = arith.constant 1 : index
    %460 = vector.load %arg5[%c0_291, %c6_292, %c1_293] : memref<2x22x22xf32, #tpu.memory_space<vmem>>, vector<2x16x16xf32>
    %461 = vector.broadcast %455 : f32 to vector<2x16x16xf32>
    %462 = arith.mulf %460, %461 : vector<2x16x16xf32>
    %463 = arith.addf %459, %462 : vector<2x16x16xf32>
    %c44 = arith.constant 44 : index
    %464 = memref.load %arg1[%c44] : memref<99xf32, #tpu.memory_space<smem>>
    %c93 = arith.constant 93 : index
    %465 = memref.load %arg1[%c93] : memref<99xf32, #tpu.memory_space<smem>>
    %c0_294 = arith.constant 0 : index
    %c6_295 = arith.constant 6 : index
    %c2_296 = arith.constant 2 : index
    %466 = vector.load %arg4[%c0_294, %c6_295, %c2_296] : memref<2x22x22xf32, #tpu.memory_space<vmem>>, vector<2x16x16xf32>
    %467 = vector.broadcast %464 : f32 to vector<2x16x16xf32>
    %468 = arith.mulf %466, %467 : vector<2x16x16xf32>
    %469 = arith.addf %463, %468 : vector<2x16x16xf32>
    %c0_297 = arith.constant 0 : index
    %c6_298 = arith.constant 6 : index
    %c2_299 = arith.constant 2 : index
    %470 = vector.load %arg5[%c0_297, %c6_298, %c2_299] : memref<2x22x22xf32, #tpu.memory_space<vmem>>, vector<2x16x16xf32>
    %471 = vector.broadcast %465 : f32 to vector<2x16x16xf32>
    %472 = arith.mulf %470, %471 : vector<2x16x16xf32>
    %473 = arith.addf %469, %472 : vector<2x16x16xf32>
    %c45 = arith.constant 45 : index
    %474 = memref.load %arg1[%c45] : memref<99xf32, #tpu.memory_space<smem>>
    %c94 = arith.constant 94 : index
    %475 = memref.load %arg1[%c94] : memref<99xf32, #tpu.memory_space<smem>>
    %c0_300 = arith.constant 0 : index
    %c6_301 = arith.constant 6 : index
    %c3_302 = arith.constant 3 : index
    %476 = vector.load %arg4[%c0_300, %c6_301, %c3_302] : memref<2x22x22xf32, #tpu.memory_space<vmem>>, vector<2x16x16xf32>
    %477 = vector.broadcast %474 : f32 to vector<2x16x16xf32>
    %478 = arith.mulf %476, %477 : vector<2x16x16xf32>
    %479 = arith.addf %473, %478 : vector<2x16x16xf32>
    %c0_303 = arith.constant 0 : index
    %c6_304 = arith.constant 6 : index
    %c3_305 = arith.constant 3 : index
    %480 = vector.load %arg5[%c0_303, %c6_304, %c3_305] : memref<2x22x22xf32, #tpu.memory_space<vmem>>, vector<2x16x16xf32>
    %481 = vector.broadcast %475 : f32 to vector<2x16x16xf32>
    %482 = arith.mulf %480, %481 : vector<2x16x16xf32>
    %483 = arith.addf %479, %482 : vector<2x16x16xf32>
    %c46 = arith.constant 46 : index
    %484 = memref.load %arg1[%c46] : memref<99xf32, #tpu.memory_space<smem>>
    %c95 = arith.constant 95 : index
    %485 = memref.load %arg1[%c95] : memref<99xf32, #tpu.memory_space<smem>>
    %c0_306 = arith.constant 0 : index
    %c6_307 = arith.constant 6 : index
    %c4_308 = arith.constant 4 : index
    %486 = vector.load %arg4[%c0_306, %c6_307, %c4_308] : memref<2x22x22xf32, #tpu.memory_space<vmem>>, vector<2x16x16xf32>
    %487 = vector.broadcast %484 : f32 to vector<2x16x16xf32>
    %488 = arith.mulf %486, %487 : vector<2x16x16xf32>
    %489 = arith.addf %483, %488 : vector<2x16x16xf32>
    %c0_309 = arith.constant 0 : index
    %c6_310 = arith.constant 6 : index
    %c4_311 = arith.constant 4 : index
    %490 = vector.load %arg5[%c0_309, %c6_310, %c4_311] : memref<2x22x22xf32, #tpu.memory_space<vmem>>, vector<2x16x16xf32>
    %491 = vector.broadcast %485 : f32 to vector<2x16x16xf32>
    %492 = arith.mulf %490, %491 : vector<2x16x16xf32>
    %493 = arith.addf %489, %492 : vector<2x16x16xf32>
    %c47 = arith.constant 47 : index
    %494 = memref.load %arg1[%c47] : memref<99xf32, #tpu.memory_space<smem>>
    %c96 = arith.constant 96 : index
    %495 = memref.load %arg1[%c96] : memref<99xf32, #tpu.memory_space<smem>>
    %c0_312 = arith.constant 0 : index
    %c6_313 = arith.constant 6 : index
    %c5_314 = arith.constant 5 : index
    %496 = vector.load %arg4[%c0_312, %c6_313, %c5_314] : memref<2x22x22xf32, #tpu.memory_space<vmem>>, vector<2x16x16xf32>
    %497 = vector.broadcast %494 : f32 to vector<2x16x16xf32>
    %498 = arith.mulf %496, %497 : vector<2x16x16xf32>
    %499 = arith.addf %493, %498 : vector<2x16x16xf32>
    %c0_315 = arith.constant 0 : index
    %c6_316 = arith.constant 6 : index
    %c5_317 = arith.constant 5 : index
    %500 = vector.load %arg5[%c0_315, %c6_316, %c5_317] : memref<2x22x22xf32, #tpu.memory_space<vmem>>, vector<2x16x16xf32>
    %501 = vector.broadcast %495 : f32 to vector<2x16x16xf32>
    %502 = arith.mulf %500, %501 : vector<2x16x16xf32>
    %503 = arith.addf %499, %502 : vector<2x16x16xf32>
    %c48 = arith.constant 48 : index
    %504 = memref.load %arg1[%c48] : memref<99xf32, #tpu.memory_space<smem>>
    %c97 = arith.constant 97 : index
    %505 = memref.load %arg1[%c97] : memref<99xf32, #tpu.memory_space<smem>>
    %c0_318 = arith.constant 0 : index
    %c6_319 = arith.constant 6 : index
    %c6_320 = arith.constant 6 : index
    %506 = vector.load %arg4[%c0_318, %c6_319, %c6_320] : memref<2x22x22xf32, #tpu.memory_space<vmem>>, vector<2x16x16xf32>
    %507 = vector.broadcast %504 : f32 to vector<2x16x16xf32>
    %508 = arith.mulf %506, %507 : vector<2x16x16xf32>
    %509 = arith.addf %503, %508 : vector<2x16x16xf32>
    %c0_321 = arith.constant 0 : index
    %c6_322 = arith.constant 6 : index
    %c6_323 = arith.constant 6 : index
    %510 = vector.load %arg5[%c0_321, %c6_322, %c6_323] : memref<2x22x22xf32, #tpu.memory_space<vmem>>, vector<2x16x16xf32>
    %511 = vector.broadcast %505 : f32 to vector<2x16x16xf32>
    %512 = arith.mulf %510, %511 : vector<2x16x16xf32>
    %513 = arith.addf %509, %512 : vector<2x16x16xf32>
    %c0_324 = arith.constant 0 : index
    %c0_325 = arith.constant 0 : index
    %c0_326 = arith.constant 0 : index
    %514 = vector.load %arg3[%c0_324, %c0_325, %c0_326] : memref<2x16x16xf32, #tpu.memory_space<vmem>>, vector<2x16x16xf32>
    tpu.vector_store %arg3[%c0_324, %c0_325, %c0_326], %513 {strides = array<i32>} : memref<2x16x16xf32, #tpu.memory_space<vmem>>, vector<2x16x16xf32>,
    return
  }
  func.func @transform_0(%arg0: i32) -> i32 {
    %c0_i32 = arith.constant 0 : i32
    %c0_i32_0 = arith.constant 0 : i32
    return %c0_i32 : i32
  }
  func.func @transform_1(%arg0: i32) -> (i32, i32, i32, i32) {
    %c0_i32 = arith.constant 0 : i32
    %c0_i32_0 = arith.constant 0 : i32
    %c0_i32_1 = arith.constant 0 : i32
    %c0_i32_2 = arith.constant 0 : i32
    return %arg0, %c0_i32, %c0_i32_0, %c0_i32_1 : i32, i32, i32, i32
  }
  func.func @transform_2(%arg0: i32) -> (i32, i32, i32) {
    %c0_i32 = arith.constant 0 : i32
    %c0_i32_0 = arith.constant 0 : i32
    %c0_i32_1 = arith.constant 0 : i32
    return %arg0, %c0_i32, %c0_i32_0 : i32, i32, i32
  }
}

</mosaic_0001>

<bundles_post_ra>
// kernel: spatial_gate.3
= control target key start
LH: loop header
LB: loop body
LE: loop exit
PB: predicated region body
PF: predicated region fallthrough
CT: control target
= control target key end

     0   :  { %8 = vsyncpa [#allocation4], 0  ;;  %s306_s0 = inlined_call_operand.vmem [shape: f32[3], index: 0, kind: input, shape index: {}]   ;;  %s307_s1 = inlined_call_operand.vmem [shape: f32[2,4,16,16], index: 1, kind: input, shape index: {}]   ;;  %s308_s2 = inlined_call_operand.vmem [shape: f32[2,16,16], index: 2, kind: input, shape index: {}]   ;;  %s309_s3 = inlined_call_operand.hbm [shape: f32[2,4,16,16], index: 3, kind: output, shape index: {}]  }
   0x1   :  { %9 = vsyncpa [#allocation3], 0  ;;  %s16_s14 = sshll.u32 %s306_s0, 4  ;;  %s17_s14 = int_to_ptr.vmem [resolvable:$true] %s16_s14 }
   0x2   :  { %s164_s15 = scalar_lea.vmem %s17_s14, 16  ;;  %p169_p1 = scmp.lt.s32.totalorder %s17_s14, %s17_s14 }
   0x3   :  { %p165_p0 = scmp.ne.s32.totalorder %s17_s14, %s164_s15  ;;  %p170_p2 = scmp.lt.s32.totalorder %s164_s15, %s164_s15 }
   0x5   :  { %p171_p3 = por %p170_p2, %p169_p1 }
   0x7   :  { %p172_p4 = pnand %p171_p3, %p165_p0 }
   0x9   :  { %175 = shalt.err (!%p172_p4)
}
   0xa   :  { %s200_s16 = smov [#allocation2]  }
   0xb   :  { %19 = dma.vmem_to_smem %s17_s14, 16, %s200_s16, [#allocation4]  }
   0xc   :  { %196 = dma.done.wait [#allocation4], 16  }
   0xd   :  { %197 = vsyncadd [#allocation4], 4294967280 }
   0xe   :  { %27 = sfence }
   0xf   :  { %s28_s17 = sld [smem:[#allocation2]]  ;;  %v31_v0 = vld [vmem:[%s308_s2] sm:$0xff]  ;;  %v32_v1 = vld [vmem:[%s308_s2 + $0x8] sm:$0xff]  ;;  %v33_v2 = vld [vmem:[%s308_s2 + $0x10] sm:$0xff]  ;;  %vm74_vm0 = vcmask 130048  }
  0x10   :  { %s138_s18 = sld [smem:[#allocation2 + $0x1]]  ;;  %v34_v3 = vld [vmem:[%s308_s2 + $0x18] sm:$0xff]  ;;  %v66_v27 = vld [vmem:[%s307_s1] sm:$0xff]  ;;  %v67_v28 = vld [vmem:[%s307_s1 + $0x8] sm:$0xff] }
  0x11   :  { %s139_s2 = sld [smem:[#allocation2 + $0x2]]  ;;  %v68_v30 = vld [vmem:[%s307_s1 + $0x40] sm:$0xff]  ;;  %v140_v31 = vld [vmem:[%s307_s1 + $0x10] sm:$0xff]  ;;  %v69_v35 = vld [vmem:[%s307_s1 + $0x48] sm:$0xff] }
  0x12   :  { %v144_v32 = vld [vmem:[%s307_s1 + $0x20] sm:$0xff]  ;;  %v141_v36 = vld [vmem:[%s307_s1 + $0x18] sm:$0xff]  ;;  %v145_v37 = vld [vmem:[%s307_s1 + $0x28] sm:$0xff] }
  0x13   :  { %v142_v40 = vld [vmem:[%s307_s1 + $0x50] sm:$0xff]  ;;  %v146_v41 = vld [vmem:[%s307_s1 + $0x60] sm:$0xff]  ;;  %v143_v47 = vld [vmem:[%s307_s1 + $0x58] sm:$0xff] }
  0x14   :  { %v148_v42 = vld [vmem:[%s307_s1 + $0x30] sm:$0xff]  ;;  %v147_v49 = vld [vmem:[%s307_s1 + $0x68] sm:$0xff]  ;;  %v149_v50 = vld [vmem:[%s307_s1 + $0x38] sm:$0xff] }
  0x15   :  { %v35_v4 = vstv %s28_s17  ;;  %v150_v55 = vld [vmem:[%s307_s1 + $0x70] sm:$0xff]  ;;  %v151_v56 = vld [vmem:[%s307_s1 + $0x78] sm:$0xff] }
  0x16   :  { %v36_v5 = vsub.f32 %v31_v0, %v35_v4  ;;  %v37_v6 = vsub.f32 %v32_v1, %v35_v4  ;;  %v38_v7 = vsub.f32 %v33_v2, %v35_v4  ;;  %v39_v8 = vsub.f32 %v34_v3, %v35_v4 }
  0x17   :  { %v48_v12 = vstv %s138_s18  ;;  %v61_v26 = vstv %s139_s2  ;;  %s201_s2 = smov [#allocation5]  }
  0x18   :  { %v40_v9 = vmul.f32 %v36_v5, %v36_v5  ;;  %v41_v10 = vmul.f32 %v37_v6, %v37_v6  ;;  %v42_v11 = vmul.f32 %v38_v7, %v38_v7  ;;  %v43_v13 = vmul.f32 %v39_v8, %v39_v8  ;;  %s126_s26 = sshll.u32 %s201_s2, 4  ;;  %s127_s26 = int_to_ptr.vmem [resolvable:$true] %s126_s26 }
  0x19   :  { %s176_s1 = scalar_lea.vmem %s127_s26, 2048  ;;  %p181_p6 = scmp.lt.s32.totalorder %s127_s26, %s127_s26 }
  0x1a   :  { %v44_v14 = vsub.f32 0.0, %v40_v9  ;;  %v45_v15 = vsub.f32 0.0, %v41_v10  ;;  %v46_v16 = vsub.f32 0.0, %v42_v11  ;;  %v47_v17 = vsub.f32 0.0, %v43_v13  ;;  %p177_p5 = scmp.ne.s32.totalorder %s127_s26, %s176_s1  ;;  %p182_p7 = scmp.lt.s32.totalorder %s176_s1, %s176_s1 }
  0x1c   :  { %v49_v18 = vmul.f32 %v48_v12, %v44_v14  ;;  %v50_v19 = vmul.f32 %v48_v12, %v45_v15  ;;  %v51_v20 = vmul.f32 %v48_v12, %v46_v16  ;;  %v52_v21 = vmul.f32 %v48_v12, %v47_v17  ;;  %p183_p8 = por %p182_p7, %p181_p6 }
  0x1e   :  { %v53_v22 = vmul.f32 1.442695, %v49_v18  ;;  %v55_v23 = vmul.f32 1.442695, %v50_v19  ;;  %v57_v24 = vmul.f32 1.442695, %v51_v20  ;;  %p184_p9 = pnand %p183_p8, %p177_p5 }
  0x1f   :  { %v59_v25 = vmul.f32 1.442695, %v52_v21 }
  0x20   :  { %156 = vpow2.f32 %v53_v22 }
  0x21   :  { %158 = vpow2.f32 %v55_v23 }
  0x22   :  { %160 = vpow2.f32 %v57_v24 }
  0x23   :  { %162 = vpow2.f32 %v59_v25 }
  0x2d   :  { %v157_v29 = vpop.eup %156 }
  0x2e   :  { %v159_v33 = vpop.eup %158  ;;  %v62_v34 = vmul.f32 %v157_v29, %v61_v26 }
  0x2f   :  { %v161_v38 = vpop.eup %160  ;;  %v63_v39 = vmul.f32 %v159_v33, %v61_v26 }
  0x30   :  { %v163_v43 = vpop.eup %162  ;;  %v70_v44 = vmul.f32 %v66_v27, %v62_v34  ;;  %v64_v45 = vmul.f32 %v161_v38, %v61_v26  ;;  %v84_v46 = vmul.f32 %v140_v31, %v62_v34  ;;  %v98_v48 = vmul.f32 %v144_v32, %v62_v34 }
  0x31   :  { %v71_v51 = vmul.f32 %v67_v28, %v63_v39  ;;  %v65_v52 = vmul.f32 %v163_v43, %v61_v26  ;;  %v85_v53 = vmul.f32 %v141_v36, %v63_v39  ;;  %v99_v54 = vmul.f32 %v145_v37, %v63_v39 }
  0x32   :  { %75 = vst.msk [vmem:[#allocation5] sm:$0xff] %vm74_vm0, %v70_v44  ;;  %v72_v57 = vmul.f32 %v68_v30, %v64_v45  ;;  %89 = vst.msk [vmem:[#allocation5 + $0x10] sm:$0xff] %vm74_vm0, %v84_v46  ;;  %v86_v58 = vmul.f32 %v142_v40, %v64_v45  ;;  %v100_v59 = vmul.f32 %v146_v41, %v64_v45 }
  0x33   :  { %103 = vst.msk [vmem:[#allocation5 + $0x20] sm:$0xff] %vm74_vm0, %v98_v48  ;;  %v112_v60 = vmul.f32 %v148_v42, %v62_v34  ;;  %76 = vst.msk [vmem:[#allocation5 + $0x8] sm:$0xff] %vm74_vm0, %v71_v51  ;;  %v73_v61 = vmul.f32 %v69_v35, %v65_v52  ;;  %v87_v62 = vmul.f32 %v143_v47, %v65_v52 }
  0x34   :  { %90 = vst.msk [vmem:[#allocation5 + $0x18] sm:$0xff] %vm74_vm0, %v85_v53  ;;  %104 = vst.msk [vmem:[#allocation5 + $0x28] sm:$0xff] %vm74_vm0, %v99_v54  ;;  %v101_v63 = vmul.f32 %v147_v49, %v65_v52  ;;  %v113_v0 = vmul.f32 %v149_v50, %v63_v39  ;;  %v114_v1 = vmul.f32 %v150_v55, %v64_v45 }
  0x35   :  { %77 = vst.msk [vmem:[#allocation5 + $0x40] sm:$0xff] %vm74_vm0, %v72_v57  ;;  %91 = vst.msk [vmem:[#allocation5 + $0x50] sm:$0xff] %vm74_vm0, %v86_v58  ;;  %v115_v2 = vmul.f32 %v151_v56, %v65_v52 }
  0x36   :  { %105 = vst.msk [vmem:[#allocation5 + $0x60] sm:$0xff] %vm74_vm0, %v100_v59  ;;  %117 = vst.msk [vmem:[#allocation5 + $0x30] sm:$0xff] %vm74_vm0, %v112_v60 }
  0x37   :  { %78 = vst.msk [vmem:[#allocation5 + $0x48] sm:$0xff] %vm74_vm0, %v73_v61  ;;  %92 = vst.msk [vmem:[#allocation5 + $0x58] sm:$0xff] %vm74_vm0, %v87_v62 }
  0x38   :  { %106 = vst.msk [vmem:[#allocation5 + $0x68] sm:$0xff] %vm74_vm0, %v101_v63  ;;  %118 = vst.msk [vmem:[#allocation5 + $0x38] sm:$0xff] %vm74_vm0, %v113_v0 }
  0x39   :  { %119 = vst.msk [vmem:[#allocation5 + $0x70] sm:$0xff] %vm74_vm0, %v114_v1  ;;  %120 = vst.msk [vmem:[#allocation5 + $0x78] sm:$0xff] %vm74_vm0, %v115_v2 }
  0x3a   :  { %187 = shalt.err (!%p184_p9)
}
  0x3b   :  { %s202_s4 = smov 128   ;;  %s203_s5 = smov 8  }
  0x3c   :  { %132 = dma.vmem_to_hbm [thread:$0]  %s127_s26, 2048, %s309_s3, [#allocation3], %s202_s4, %s202_s4, %s203_s5  }
  0x3d   :  { %198 = dma.done.wait [#allocation3], 2048  }
  0x3e   :  { %199 = vsyncadd [#allocation3], 4294965248 }
  0x3f   :  { %136 = vsyncpa [#allocation3], 1 }
  0x40   :  { %137 = vsyncpa [#allocation4], 1 }

// kernel: spatial_gate.2
= control target key start
LH: loop header
LB: loop body
LE: loop exit
PB: predicated region body
PF: predicated region fallthrough
CT: control target
= control target key end

     0   :  { %7 = vsyncpa [#allocation6], 0  ;;  %s4203_s0 = inlined_call_operand.vmem [shape: f32[99], index: 0, kind: input, shape index: {}]   ;;  %s4204_s1 = inlined_call_operand.hbm [shape: f32[2,4,16,16], index: 1, kind: input, shape index: {}]   ;;  %s4205_s2 = inlined_call_operand.vmem [shape: f32[2,16,16], index: 2, kind: output, shape index: {}]  }
   0x1   :  { %s15_s11 = sshll.u32 %s4203_s0, 4  ;;  %s16_s11 = int_to_ptr.vmem [resolvable:$true] %s15_s11 }
   0x2   :  { %8 = vsyncpa [#allocation5], 0  ;;  %s2643_s12 = scalar_lea.vmem %s16_s11, 16  ;;  %p2648_p1 = scmp.lt.s32.totalorder %s16_s11, %s16_s11 }
   0x3   :  { %p2644_p0 = scmp.ne.s32.totalorder %s16_s11, %s2643_s12  ;;  %p2649_p2 = scmp.lt.s32.totalorder %s2643_s12, %s2643_s12 }
   0x5   :  { %p2650_p3 = por %p2649_p2, %p2648_p1 }
   0x7   :  { %p2651_p4 = pnand %p2650_p3, %p2644_p0 }
   0x9   :  { %2654 = shalt.err (!%p2651_p4)
}
   0xa   :  { %s2679_s13 = smov [#allocation4]   ;;  %s2680_s14 = smov [#allocation7]  }
   0xb   :  { %18 = dma.vmem_to_smem %s16_s11, 16, %s2679_s13, [#allocation6]  }
   0xc   :  { %s24_s15 = sshll.u32 %s2680_s14, 4  ;;  %s25_s15 = int_to_ptr.vmem [resolvable:$true] %s24_s15 }
   0xd   :  { %s2663_s16 = scalar_lea.vmem %s25_s15, 2048  ;;  %p2668_p6 = scmp.lt.s32.totalorder %s25_s15, %s25_s15 }
   0xe   :  { %p2664_p5 = scmp.ne.s32.totalorder %s25_s15, %s2663_s16  ;;  %p2669_p7 = scmp.lt.s32.totalorder %s2663_s16, %s2663_s16 }
  0x10   :  { %p2670_p8 = por %p2669_p7, %p2668_p6 }
  0x12   :  { %p2671_p9 = pnand %p2670_p8, %p2664_p5 }
  0x14   :  { %2674 = shalt.err (!%p2671_p9)
}
  0x15   :  { %s2681_s0 = smov 128   ;;  %s2682_s17 = smov 8  }
  0x16   :  { %30 = dma.hbm_to_vmem [thread:$0]  %s4204_s1, 2048, %s25_s15, [#allocation5], %s2681_s0, %s2681_s0, %s2682_s17  }
  0x17   :  { %2675 = dma.done.wait [#allocation6], 16  }
  0x18   :  { %2676 = vsyncadd [#allocation6], 4294967280 }
  0x19   :  { %2677 = dma.done.wait [#allocation5], 2048  }
  0x1a   :  { %2678 = vsyncadd [#allocation5], 4294965248 }
  0x1b   :  { %37 = sfence }
  0x1c   :  { %v40_v0 = vld [vmem:[#allocation7 + $0x40] sm:$0xff]  ;;  %v45_v1 = vld [vmem:[#allocation7 + $0x50] sm:$0xff]  ;;  %vm85_vm0 = vcmask 179200   ;;  %v2683_v6 = vmov 0.0   ;;  %v41_v11 = vld [vmem:[#allocation7 + $0x48] sm:$0xff]  ;;  %vm88_vm1 = vcmask 177152  }
  0x1d   :  { %v58_v2 = vld [vmem:[#allocation7 + $0x60] sm:$0xff]  ;;  %v49_v3 = vmax.f32 %v40_v0, %v45_v1  ;;  %v43_v5 = vld [vmem:[#allocation7 + $0x10] sm:$0xff]  ;;  %90 = vst.msk [vmem:[#allocation2 + $0x18] sm:$0xff] %vm85_vm0, %v2683_v6  ;;  %91 = vst.msk [vmem:[#allocation2 + $0x20] sm:$0xff] %vm85_vm0, %v2683_v6  ;;  %v53_v12 = vadd.f32 %v45_v1, %v40_v0  ;;  %s2684_s1 = smov 3   ;;  %vm115_vm2 = vcmask 154648  }
  0x1e   :  { %v38_v4 = vld [vmem:[#allocation7] sm:$0xff]  ;;  %86 = vst.msk [vmem:[#allocation2] sm:$0xff] %vm85_vm0, %v2683_v6  ;;  %87 = vst.msk [vmem:[#allocation2 + $0x8] sm:$0xff] %vm85_vm0, %v2683_v6  ;;  %v71_v7 = vld [vmem:[#allocation7 + $0x70] sm:$0xff]  ;;  %s2535_s20 = sld [smem:[#allocation4 + $0x1]]  ;;  %s2685_s25 = smov 127  }
  0x1f   :  { %93 = vst.msk [vmem:[#allocation3] sm:$0xff] %vm85_vm0, %v2683_v6  ;;  %94 = vst.msk [vmem:[#allocation3 + $0x8] sm:$0xff] %vm85_vm0, %v2683_v6  ;;  %v47_v8 = vmax.f32 %v38_v4, %v43_v5  ;;  %v51_v9 = vadd.f32 %v43_v5, %v38_v4  ;;  %v56_v10 = vld [vmem:[#allocation7 + $0x20] sm:$0xff]  ;;  %v62_v13 = vmax.f32 %v49_v3, %v58_v2  ;;  %v69_v14 = vld [vmem:[#allocation7 + $0x30] sm:$0xff]  ;;  %s142_s21 = sld [smem:[#allocation4]]  ;;  %s2686_s27 = smov 126  }
  0x20   :  { %96 = vst.msk [vmem:[#allocation3 + $0x18] sm:$0xff] %vm85_vm0, %v2683_v6  ;;  %97 = vst.msk [vmem:[#allocation3 + $0x20] sm:$0xff] %vm85_vm0, %v2683_v6  ;;  %v46_v15 = vld [vmem:[#allocation7 + $0x58] sm:$0xff]  ;;  %v59_v16 = vld [vmem:[#allocation7 + $0x68] sm:$0xff]  ;;  %v66_v34 = vadd.f32 %v58_v2, %v53_v12  ;;  %s2533_s22 = sld [smem:[#allocation4 + $0x62]]  ;;  %s2687_s29 = smov 125  }
  0x21   :  { %92 = vst.msk [vmem:[#allocation2 + $0x28] sm:$0x3f] %vm88_vm1, %v2683_v6  ;;  %89 = vst.msk [vmem:[#allocation2 + $0x10] sm:$0x3f] %vm88_vm1, %v2683_v6  ;;  %v60_v17 = vmax.f32 %v47_v8, %v56_v10  ;;  %v64_v18 = vadd.f32 %v56_v10, %v51_v9  ;;  %v50_v19 = vmax.f32 %v41_v11, %v46_v15  ;;  %v39_v20 = vld [vmem:[#allocation7 + $0x8] sm:$0xff]  ;;  %v44_v21 = vld [vmem:[#allocation7 + $0x18] sm:$0xff] }
  0x22   :  { %95 = vst.msk [vmem:[#allocation3 + $0x10] sm:$0x3f] %vm88_vm1, %v2683_v6  ;;  %98 = vst.msk [vmem:[#allocation3 + $0x28] sm:$0x3f] %vm88_vm1, %v2683_v6  ;;  %v57_v22 = vld [vmem:[#allocation7 + $0x28] sm:$0xff]  ;;  %v54_v23 = vadd.f32 %v46_v15, %v41_v11  ;;  %v75_v24 = vmax.f32 %v62_v13, %v71_v7  ;;  %v72_v25 = vld [vmem:[#allocation7 + $0x78] sm:$0xff]  ;;  %v48_v26 = vmax.f32 %v39_v20, %v44_v21 }
  0x23   :  { %v52_v27 = vadd.f32 %v44_v21, %v39_v20  ;;  %v73_v28 = vmax.f32 %v60_v17, %v69_v14  ;;  %v63_v29 = vmax.f32 %v50_v19, %v59_v16  ;;  %v70_v30 = vld [vmem:[#allocation7 + $0x38] sm:$0xff]  ;;  %v77_v35 = vadd.f32 %v69_v14, %v64_v18  ;;  %s2537_s23 = sld [smem:[#allocation4 + $0x2]]  ;;  %s2688_s3 = smov 124  }
  0x24   :  { %107 = vrot.lane.b32.xlu1 %v75_v24, %s2684_s1  ;;  %v61_v31 = vmax.f32 %v48_v26, %v57_v22  ;;  %v67_v33 = vadd.f32 %v59_v16, %v54_v23  ;;  %v79_v41 = vadd.f32 %v71_v7, %v66_v34  ;;  %s2534_s24 = sld [smem:[#allocation4 + $0x31]]  ;;  %v172_v49 = vstv %s2535_s20  ;;  %s2689_s5 = smov 123  }
  0x25   :  { %v65_v32 = vadd.f32 %v57_v22, %v52_v27  ;;  %103 = vrot.lane.b32.xlu0 %v73_v28, %s2684_s1  ;;  %v76_v36 = vmax.f32 %v63_v29, %v72_v25  ;;  %v81_v42 = vmul.f32 0.25, %v77_v35  ;;  %v148_v54 = vstv %s142_s21  ;;  %s2539_s26 = sld [smem:[#allocation4 + $0x3]]  ;;  %s2690_s7 = smov 122  }
  0x26   :  { %v74_v37 = vmax.f32 %v61_v31, %v70_v30  ;;  %v80_v40 = vadd.f32 %v72_v25, %v67_v33  ;;  %v83_v44 = vmul.f32 0.25, %v79_v41  ;;  %v141_v61 = vstv %s2533_s22  ;;  %s2541_s28 = sld [smem:[#allocation4 + $0x4]] }
  0x27   :  { %v78_v38 = vadd.f32 %v70_v30, %v65_v32  ;;  %s2543_s30 = sld [smem:[#allocation4 + $0x5]]  ;;  %vm2522_vm3 = vcmask 130048  }
  0x28   :  { %109 = vrot.lane.b32.xlu1 %v76_v36, %s2684_s1  ;;  %v84_v43 = vmul.f32 0.25, %v80_v40  ;;  %s2545_s4 = sld [smem:[#allocation4 + $0x6]] }
  0x29   :  { %v82_v39 = vmul.f32 0.25, %v78_v38  ;;  %105 = vrot.lane.b32.xlu0 %v74_v37, %s2684_s1  ;;  %v224_v1 = vstv %s2537_s23  ;;  %s2549_s6 = sld [smem:[#allocation4 + $0x8]] }
  0x2a   :  { %v161_v2 = vstv %s2534_s24  ;;  %s2551_s8 = sld [smem:[#allocation4 + $0x9]] }
  0x2b   :  { %v276_v23 = vstv %s2539_s26  ;;  %s2536_s9 = sld [smem:[#allocation4 + $0x32]] }
  0x2c   :  { %126 = vrot.lane.b32.xlu1 %v82_v39, %s2684_s1  ;;  %v328_v30 = vstv %s2541_s28  ;;  %s2538_s10 = sld [smem:[#allocation4 + $0x33]] }
  0x2d   :  { %124 = vrot.lane.b32.xlu0 %v81_v42, %s2684_s1  ;;  %v380_v35 = vstv %s2543_s30  ;;  %s2540_s11 = sld [smem:[#allocation4 + $0x34]] }
  0x2e   :  { %v432_v40 = vstv %s2545_s4  ;;  %s2542_s12 = sld [smem:[#allocation4 + $0x35]] }
  0x2f   :  { %s2544_s13 = sld [smem:[#allocation4 + $0x36]] }
  0x30   :  { %130 = vrot.lane.b32.xlu1 %v84_v43, %s2684_s1  ;;  %s2546_s14 = sld [smem:[#allocation4 + $0x37]] }
  0x31   :  { %128 = vrot.lane.b32.xlu0 %v83_v44, %s2684_s1  ;;  %s2550_s15 = sld [smem:[#allocation4 + $0x39]] }
  0x32   :  { %s2552_s16 = sld [smem:[#allocation4 + $0x3a]] }
  0x33   :  { %s2553_s0 = sld [smem:[#allocation4 + $0xa]] }
  0x34   :  { %s2554_s17 = sld [smem:[#allocation4 + $0x3b]] }
  0x35   :  { %s2555_s18 = sld [smem:[#allocation4 + $0xb]] }
  0x36   :  { %s2556_s19 = sld [smem:[#allocation4 + $0x3c]] }
  0x37   :  { %s2557_s1 = sld [smem:[#allocation4 + $0xc]] }
  0x38   :  { %s2558_s20 = sld [smem:[#allocation4 + $0x3d]] }
  0x39   :  { %s2559_s21 = sld [smem:[#allocation4 + $0xd]] }
  0x3a   :  { %s2560_s22 = sld [smem:[#allocation4 + $0x3e]] }
  0x3b   :  { %s2563_s23 = sld [smem:[#allocation4 + $0xf]] }
  0x3c   :  { %s2564_s24 = sld [smem:[#allocation4 + $0x40]] }
  0x3d   :  { %s2565_s26 = sld [smem:[#allocation4 + $0x10]] }
  0x3e   :  { %s2566_s28 = sld [smem:[#allocation4 + $0x41]] }
  0x3f   :  { %s2547_s30 = sld [smem:[#allocation4 + $0x7]] }
  0x40   :  { %s2548_s4 = sld [smem:[#allocation4 + $0x38]] }
  0x96   :  { %v108_v45 = vpop.permute.xlu1 %107 }
  0x97   :  { %118 = vst.msk [vmem:[#allocation2 + $0x1b] sm:$0xff] %vm115_vm2, %v108_v45  ;;  %v104_v46 = vpop.permute.xlu0 %103 }
  0x98   :  { %116 = vst.msk [vmem:[#allocation2 + $0x3] sm:$0xff] %vm115_vm2, %v104_v46  ;;  %v512_v46 = vstv %s2549_s6  ;;  %s2567_s6 = sld [smem:[#allocation4 + $0x11]] }
  0x9a   :  { %v110_v47 = vpop.permute.xlu1 %109 }
  0x9b   :  { %119 = vst.msk [vmem:[#allocation2 + $0x23] sm:$0xff] %vm115_vm2, %v110_v47  ;;  %v106_v48 = vpop.permute.xlu0 %105 }
  0x9c   :  { %117 = vst.msk [vmem:[#allocation2 + $0xb] sm:$0xff] %vm115_vm2, %v106_v48 }
  0x9e   :  { %v127_v50 = vpop.permute.xlu1 %126  ;;  %v2716_v51 = vld [vmem:[#allocation2 + $0x18] sm:$0xff] }
  0x9f   :  { %v2718_v52 = vld [vmem:[#allocation2] sm:$0xff]  ;;  %137 = vst.msk [vmem:[#allocation3 + $0xb] sm:$0xff] %vm115_vm2, %v127_v50  ;;  %v125_v53 = vpop.permute.xlu0 %124  ;;  %v175_v57 = vmul.f32 %v172_v49, %v2716_v51  ;;  %v151_v3 = vmul.f32 %v148_v54, %v2716_v51  ;;  %v227_v18 = vmul.f32 %v224_v1, %v2716_v51  ;;  %v279_v28 = vmul.f32 %v276_v23, %v2716_v51 }
  0xa0   :  { %136 = vst.msk [vmem:[#allocation3 + $0x3] sm:$0xff] %vm115_vm2, %v125_v53  ;;  %v173_v55 = vmul.f32 %v172_v49, %v2718_v52  ;;  %v149_v58 = vmul.f32 %v148_v54, %v2718_v52  ;;  %v225_v8 = vmul.f32 %v224_v1, %v2718_v52  ;;  %v277_v26 = vmul.f32 %v276_v23, %v2718_v52  ;;  %v2796_v45 = vld [vmem:[#allocation2 + $0x1] sm:$0xff] }
  0xa1   :  { %v155_v15 = vadd.f32 %v151_v3, %v141_v61  ;;  %v329_v31 = vmul.f32 %v328_v30, %v2718_v52  ;;  %v331_v33 = vmul.f32 %v328_v30, %v2716_v51  ;;  %v381_v36 = vmul.f32 %v380_v35, %v2718_v52 }
  0xa2   :  { %181 = vrot.lane.b32.xlu0 %v173_v55, %s2685_s25  ;;  %v131_v56 = vpop.permute.xlu1 %130  ;;  %v2729_v62 = vld [vmem:[#allocation2 + $0x20] sm:$0xff]  ;;  %v153_v4 = vadd.f32 %v149_v58, %v141_v61  ;;  %v383_v38 = vmul.f32 %v380_v35, %v2716_v51  ;;  %v433_v41 = vmul.f32 %v432_v40, %v2718_v52  ;;  %v435_v43 = vmul.f32 %v432_v40, %v2716_v51 }
  0xa3   :  { %v2726_v59 = vld [vmem:[#allocation2 + $0x8] sm:$0xff]  ;;  %139 = vst.msk [vmem:[#allocation3 + $0x23] sm:$0xff] %vm115_vm2, %v131_v56  ;;  %v129_v60 = vpop.permute.xlu0 %128  ;;  %v152_v5 = vmul.f32 %v148_v54, %v2729_v62  ;;  %v176_v12 = vmul.f32 %v172_v49, %v2729_v62  ;;  %v228_v27 = vmul.f32 %v224_v1, %v2729_v62  ;;  %v280_v32 = vmul.f32 %v276_v23, %v2729_v62 }
  0xa4   :  { %v150_v63 = vmul.f32 %v148_v54, %v2726_v59  ;;  %138 = vst.msk [vmem:[#allocation3 + $0x1b] sm:$0xff] %vm115_vm2, %v129_v60  ;;  %v174_v0 = vmul.f32 %v172_v49, %v2726_v59  ;;  %v226_v22 = vmul.f32 %v224_v1, %v2726_v59  ;;  %v278_v29 = vmul.f32 %v276_v23, %v2726_v59  ;;  %v2802_v49 = vld [vmem:[#allocation2 + $0x19] sm:$0xff]  ;;  %v2804_v50 = vld [vmem:[#allocation2 + $0x9] sm:$0xff]  ;;  %v2810_v53 = vld [vmem:[#allocation2 + $0x21] sm:$0xff] }
  0xa5   :  { %v156_v19 = vadd.f32 %v152_v5, %v141_v61  ;;  %v330_v34 = vmul.f32 %v328_v30, %v2726_v59  ;;  %v332_v37 = vmul.f32 %v328_v30, %v2729_v62  ;;  %v382_v39 = vmul.f32 %v380_v35, %v2726_v59 }
  0xa6   :  { %185 = vrot.lane.b32.xlu0 %v175_v57, %s2685_s25  ;;  %183 = vrot.lane.b32.xlu1 %v174_v0, %s2685_s25  ;;  %v154_v9 = vadd.f32 %v150_v63, %v141_v61  ;;  %v384_v42 = vmul.f32 %v380_v35, %v2729_v62  ;;  %v434_v44 = vmul.f32 %v432_v40, %v2726_v59  ;;  %v564_v54 = vstv %s2551_s8  ;;  %s3092_s8 = sld [smem:[#allocation4 + $0x42]] }
  0xa7   :  { %v2738_v6 = vld [vmem:[#allocation3] sm:$0xff]  ;;  %v2740_v7 = vld [vmem:[#allocation3 + $0x8] sm:$0xff]  ;;  %v513_v47 = vmul.f32 %v512_v46, %v2796_v45  ;;  %v436_v48 = vmul.f32 %v432_v40, %v2729_v62  ;;  %v515_v51 = vmul.f32 %v512_v46, %v2802_v49  ;;  %v514_v52 = vmul.f32 %v512_v46, %v2804_v50 }
  0xa8   :  { %v162_v10 = vmul.f32 %v161_v2, %v2738_v6  ;;  %v163_v11 = vmul.f32 %v161_v2, %v2740_v7  ;;  %v565_v55 = vmul.f32 %v564_v54, %v2796_v45  ;;  %v516_v56 = vmul.f32 %v512_v46, %v2810_v53 }
  0xa9   :  { %v197_v57 = vstv %s2536_s9  ;;  %v567_v58 = vmul.f32 %v564_v54, %v2802_v49  ;;  %v566_v59 = vmul.f32 %v564_v54, %v2804_v50  ;;  %v568_v61 = vmul.f32 %v564_v54, %v2810_v53  ;;  %s2569_s9 = sld [smem:[#allocation4 + $0x12]] }
  0xaa   :  { %v2746_v13 = vadd.f32 %v162_v10, %v153_v4  ;;  %v2748_v14 = vadd.f32 %v163_v11, %v154_v9  ;;  %233 = vrot.lane.b32.xlu0 %v225_v8, %s2686_s27  ;;  %187 = vrot.lane.b32.xlu1 %v176_v12, %s2685_s25  ;;  %v198_v60 = vmul.f32 %v197_v57, %v2738_v6  ;;  %v249_v0 = vstv %s2538_s10  ;;  %s2570_s10 = sld [smem:[#allocation4 + $0x43]] }
  0xab   :  { %v2752_v16 = vld [vmem:[#allocation3 + $0x18] sm:$0xff]  ;;  %v2754_v17 = vld [vmem:[#allocation3 + $0x20] sm:$0xff]  ;;  %v199_v62 = vmul.f32 %v197_v57, %v2740_v7  ;;  %v251_v3 = vmul.f32 %v249_v0, %v2740_v7  ;;  %v301_v5 = vstv %s2540_s11  ;;  %v353_v12 = vstv %s2542_s12  ;;  %s2571_s11 = sld [smem:[#allocation4 + $0x13]] }
  0xac   :  { %v164_v20 = vmul.f32 %v161_v2, %v2752_v16  ;;  %v165_v21 = vmul.f32 %v161_v2, %v2754_v17  ;;  %v200_v63 = vmul.f32 %v197_v57, %v2752_v16  ;;  %v201_v1 = vmul.f32 %v197_v57, %v2754_v17  ;;  %s2572_s12 = sld [smem:[#allocation4 + $0x44]] }
  0xad   :  { %v250_v2 = vmul.f32 %v249_v0, %v2738_v6  ;;  %v252_v4 = vmul.f32 %v249_v0, %v2752_v16  ;;  %v253_v8 = vmul.f32 %v249_v0, %v2754_v17  ;;  %v302_v9 = vmul.f32 %v301_v5, %v2738_v6 }
  0xae   :  { %v2760_v24 = vadd.f32 %v164_v20, %v155_v15  ;;  %v2762_v25 = vadd.f32 %v165_v21, %v156_v19  ;;  %237 = vrot.lane.b32.xlu0 %v227_v18, %s2686_s27  ;;  %235 = vrot.lane.b32.xlu1 %v226_v22, %s2686_s27  ;;  %v303_v10 = vmul.f32 %v301_v5, %v2740_v7  ;;  %v405_v21 = vstv %s2544_s13  ;;  %s2573_s13 = sld [smem:[#allocation4 + $0x14]] }
  0xaf   :  { %v304_v11 = vmul.f32 %v301_v5, %v2752_v16  ;;  %v305_v15 = vmul.f32 %v301_v5, %v2754_v17  ;;  %v354_v18 = vmul.f32 %v353_v12, %v2738_v6  ;;  %v355_v19 = vmul.f32 %v353_v12, %v2740_v7 }
  0xb0   :  { %v356_v20 = vmul.f32 %v353_v12, %v2752_v16  ;;  %v357_v22 = vmul.f32 %v353_v12, %v2754_v17  ;;  %v406_v23 = vmul.f32 %v405_v21, %v2738_v6  ;;  %v589_v40 = vstv %s2552_s16  ;;  %s3247_s16 = sld [smem:[#allocation4 + $0x47]] }
  0xb2   :  { %285 = vrot.lane.b32.xlu0 %v277_v26, %s2687_s29  ;;  %239 = vrot.lane.b32.xlu1 %v228_v27, %s2686_s27  ;;  %v407_v26 = vmul.f32 %v405_v21, %v2740_v7  ;;  %v408_v27 = vmul.f32 %v405_v21, %v2752_v16 }
  0xb6   :  { %289 = vrot.lane.b32.xlu0 %v279_v28, %s2687_s29  ;;  %287 = vrot.lane.b32.xlu1 %v278_v29, %s2687_s29  ;;  %v457_v28 = vstv %s2546_s14  ;;  %v409_v29 = vmul.f32 %v405_v21, %v2754_v17  ;;  %v693_v21 = vstv %s2556_s19  ;;  %s2574_s14 = sld [smem:[#allocation4 + $0x45]] }
  0xb7   :  { %v458_v30 = vmul.f32 %v457_v28, %v2738_v6  ;;  %v461_v35 = vmul.f32 %v457_v28, %v2754_v17  ;;  %s3316_s19 = sld [smem:[#allocation4 + $0x48]] }
  0xba   :  { %337 = vrot.lane.b32.xlu0 %v329_v31, %s2688_s3  ;;  %291 = vrot.lane.b32.xlu1 %v280_v32, %s2687_s29  ;;  %v459_v31 = vmul.f32 %v457_v28, %v2740_v7  ;;  %v460_v32 = vmul.f32 %v457_v28, %v2752_v16 }
  0xbe   :  { %341 = vrot.lane.b32.xlu0 %v331_v33, %s2688_s3  ;;  %339 = vrot.lane.b32.xlu1 %v330_v34, %s2688_s3  ;;  %v2868_v33 = vld [vmem:[#allocation3 + $0x1] sm:$0xff]  ;;  %v537_v34 = vstv %s2550_s15  ;;  %s2577_s15 = sld [smem:[#allocation4 + $0x16]] }
  0xbf   :  { %v538_v6 = vmul.f32 %v537_v34, %v2868_v33 }
  0xc2   :  { %389 = vrot.lane.b32.xlu0 %v381_v36, %s2689_s5  ;;  %343 = vrot.lane.b32.xlu1 %v332_v37, %s2688_s3  ;;  %v2874_v36 = vld [vmem:[#allocation3 + $0x9] sm:$0xff]  ;;  %v2876_v37 = vld [vmem:[#allocation3 + $0x19] sm:$0xff] }
  0xc3   :  { %v539_v16 = vmul.f32 %v537_v34, %v2874_v36 }
  0xc6   :  { %393 = vrot.lane.b32.xlu0 %v383_v38, %s2689_s5  ;;  %391 = vrot.lane.b32.xlu1 %v382_v39, %s2689_s5  ;;  %v540_v38 = vmul.f32 %v537_v34, %v2876_v37  ;;  %v2884_v39 = vld [vmem:[#allocation3 + $0x21] sm:$0xff] }
  0xca   :  { %441 = vrot.lane.b32.xlu0 %v433_v41, %s2690_s7  ;;  %395 = vrot.lane.b32.xlu1 %v384_v42, %s2689_s5  ;;  %v541_v42 = vmul.f32 %v537_v34, %v2884_v39 }
  0xce   :  { %445 = vrot.lane.b32.xlu0 %v435_v43, %s2690_s7  ;;  %443 = vrot.lane.b32.xlu1 %v434_v44, %s2690_s7  ;;  %v590_v43 = vmul.f32 %v589_v40, %v2868_v33 }
  0xd2   :  { %521 = vrot.lane.b32.xlu0 %v513_v47, %s2685_s25  ;;  %447 = vrot.lane.b32.xlu1 %v436_v48, %s2690_s7  ;;  %v591_v47 = vmul.f32 %v589_v40, %v2874_v36  ;;  %v592_v48 = vmul.f32 %v589_v40, %v2876_v37 }
  0xd6   :  { %525 = vrot.lane.b32.xlu0 %v515_v51, %s2685_s25  ;;  %523 = vrot.lane.b32.xlu1 %v514_v52, %s2685_s25  ;;  %v616_v51 = vstv %s2553_s0  ;;  %s3258_s0 = sld [smem:[#allocation4 + $0xe]] }
  0xd7   :  { %v620_v0 = vmul.f32 %v616_v51, %v2810_v53 }
  0xda   :  { %573 = vrot.lane.b32.xlu0 %v565_v55, %s2686_s27  ;;  %527 = vrot.lane.b32.xlu1 %v516_v56, %s2685_s25  ;;  %v593_v55 = vmul.f32 %v589_v40, %v2884_v39  ;;  %v617_v56 = vmul.f32 %v616_v51, %v2796_v45 }
  0xde   :  { %577 = vrot.lane.b32.xlu0 %v567_v58, %s2686_s27  ;;  %575 = vrot.lane.b32.xlu1 %v566_v59, %s2686_s27  ;;  %v618_v59 = vmul.f32 %v616_v51, %v2804_v50 }
  0xe2   :  { %579 = vrot.lane.b32.xlu1 %v568_v61, %s2686_s27  ;;  %206 = vrot.lane.b32.xlu0 %v198_v60, %s2685_s25  ;;  %v619_v60 = vmul.f32 %v616_v51, %v2802_v49  ;;  %v641_v61 = vstv %s2554_s17  ;;  %s3269_s17 = sld [smem:[#allocation4 + $0x3f]] }
  0xe3   :  { %v644_v5 = vmul.f32 %v641_v61, %v2876_v37 }
  0xe6   :  { %208 = vrot.lane.b32.xlu1 %v199_v62, %s2685_s25  ;;  %210 = vrot.lane.b32.xlu0 %v200_v63, %s2685_s25 }
  0xea   :  { %212 = vrot.lane.b32.xlu1 %v201_v1, %s2685_s25  ;;  %258 = vrot.lane.b32.xlu0 %v250_v2, %s2686_s27  ;;  %v642_v1 = vmul.f32 %v641_v61, %v2868_v33 }
  0xee   :  { %260 = vrot.lane.b32.xlu1 %v251_v3, %s2686_s27  ;;  %262 = vrot.lane.b32.xlu0 %v252_v4, %s2686_s27  ;;  %v643_v4 = vmul.f32 %v641_v61, %v2874_v36 }
  0xf2   :  { %264 = vrot.lane.b32.xlu1 %v253_v8, %s2686_s27  ;;  %310 = vrot.lane.b32.xlu0 %v302_v9, %s2687_s29  ;;  %v668_v8 = vstv %s2555_s18  ;;  %s3280_s18 = sld [smem:[#allocation4 + $0x17]] }
  0xf3   :  { %v669_v12 = vmul.f32 %v668_v8, %v2796_v45 }
  0xf6   :  { %312 = vrot.lane.b32.xlu1 %v303_v10, %s2687_s29  ;;  %314 = vrot.lane.b32.xlu0 %v304_v11, %s2687_s29  ;;  %v645_v11 = vmul.f32 %v641_v61, %v2884_v39 }
  0xfa   :  { %316 = vrot.lane.b32.xlu1 %v305_v15, %s2687_s29  ;;  %362 = vrot.lane.b32.xlu0 %v354_v18, %s2688_s3 }
  0xfe   :  { %364 = vrot.lane.b32.xlu1 %v355_v19, %s2688_s3  ;;  %366 = vrot.lane.b32.xlu0 %v356_v20, %s2688_s3  ;;  %v670_v19 = vmul.f32 %v668_v8, %v2804_v50  ;;  %v671_v20 = vmul.f32 %v668_v8, %v2802_v49 }
 0x102   :  { %368 = vrot.lane.b32.xlu1 %v357_v22, %s2688_s3  ;;  %414 = vrot.lane.b32.xlu0 %v406_v23, %s2689_s5 }
 0x106   :  { %416 = vrot.lane.b32.xlu1 %v407_v26, %s2689_s5  ;;  %418 = vrot.lane.b32.xlu0 %v408_v27, %s2689_s5  ;;  %v672_v26 = vmul.f32 %v668_v8, %v2810_v53  ;;  %v694_v27 = vmul.f32 %v693_v21, %v2868_v33 }
 0x10a   :  { %420 = vrot.lane.b32.xlu1 %v409_v29, %s2689_s5  ;;  %466 = vrot.lane.b32.xlu0 %v458_v30, %s2690_s7  ;;  %v695_v30 = vmul.f32 %v693_v21, %v2874_v36 }
 0x10e   :  { %468 = vrot.lane.b32.xlu1 %v459_v31, %s2690_s7  ;;  %470 = vrot.lane.b32.xlu0 %v460_v32, %s2690_s7  ;;  %v696_v31 = vmul.f32 %v693_v21, %v2876_v37  ;;  %v720_v32 = vstv %s2557_s1  ;;  %s2581_s1 = sld [smem:[#allocation4 + $0x18]] }
 0x112   :  { %472 = vrot.lane.b32.xlu1 %v461_v35, %s2690_s7  ;;  %546 = vrot.lane.b32.xlu0 %v538_v6, %s2685_s25  ;;  %v697_v6 = vmul.f32 %v693_v21, %v2884_v39 }
 0x114   :  { %v2880_v7 = vpop.permute.xlu0 %181 }
 0x116   :  { %548 = vrot.lane.b32.xlu1 %v539_v16, %s2685_s25  ;;  %550 = vrot.lane.b32.xlu0 %v540_v38, %s2685_s25  ;;  %v721_v16 = vmul.f32 %v720_v32, %v2796_v45 }
 0x118   :  { %v2888_v17 = vpop.permute.xlu1 %183  ;;  %v2890_v41 = vpop.permute.xlu0 %185 }
 0x11a   :  { %552 = vrot.lane.b32.xlu1 %v541_v42, %s2685_s25  ;;  %598 = vrot.lane.b32.xlu0 %v590_v43, %s2686_s27  ;;  %v722_v42 = vmul.f32 %v720_v32, %v2804_v50  ;;  %v723_v43 = vmul.f32 %v720_v32, %v2802_v49 }
 0x11c   :  { %v2896_v44 = vpop.permute.xlu1 %187  ;;  %v2898_v46 = vpop.permute.xlu0 %233 }
 0x11e   :  { %600 = vrot.lane.b32.xlu1 %v591_v47, %s2686_s27  ;;  %602 = vrot.lane.b32.xlu0 %v592_v48, %s2686_s27  ;;  %v745_v47 = vstv %s2558_s20  ;;  %s2582_s20 = sld [smem:[#allocation4 + $0x49]] }
 0x11f   :  { %v747_v61 = vmul.f32 %v745_v47, %v2874_v36  ;;  %v749_v8 = vmul.f32 %v745_v47, %v2884_v39 }
 0x120   :  { %v2904_v52 = vpop.permute.xlu1 %235  ;;  %v2906_v54 = vpop.permute.xlu0 %237 }
 0x122   :  { %604 = vrot.lane.b32.xlu1 %v593_v55, %s2686_s27  ;;  %625 = vrot.lane.b32.xlu0 %v617_v56, %s2687_s29  ;;  %v724_v55 = vmul.f32 %v720_v32, %v2810_v53  ;;  %v746_v56 = vmul.f32 %v745_v47, %v2868_v33 }
 0x124   :  { %v2912_v57 = vpop.permute.xlu1 %239  ;;  %v2914_v58 = vpop.permute.xlu0 %285 }
 0x126   :  { %627 = vrot.lane.b32.xlu1 %v618_v59, %s2687_s29  ;;  %629 = vrot.lane.b32.xlu0 %v619_v60, %s2687_s29 }
 0x128   :  { %v2920_v62 = vpop.permute.xlu1 %287  ;;  %v2922_v63 = vpop.permute.xlu0 %289 }
 0x12a   :  { %631 = vrot.lane.b32.xlu1 %v620_v0, %s2687_s29  ;;  %650 = vrot.lane.b32.xlu0 %v642_v1, %s2687_s29  ;;  %v748_v0 = vmul.f32 %v745_v47, %v2876_v37  ;;  %v772_v1 = vstv %s2559_s21  ;;  %v3020_v47 = vld [vmem:[#allocation2 + $0x2] sm:$0xff]  ;;  %s2583_s21 = sld [smem:[#allocation4 + $0x19]] }
 0x12b   :  { %v775_v21 = vmul.f32 %v772_v1, %v2802_v49 }
 0x12c   :  { %v2928_v2 = vpop.permute.xlu1 %291  ;;  %v2930_v3 = vpop.permute.xlu0 %337 }
 0x12e   :  { %652 = vrot.lane.b32.xlu1 %v643_v4, %s2687_s29  ;;  %654 = vrot.lane.b32.xlu0 %v644_v5, %s2687_s29 }
 0x130   :  { %v2936_v9 = vpop.permute.xlu1 %339  ;;  %v2938_v10 = vpop.permute.xlu0 %341 }
 0x132   :  { %656 = vrot.lane.b32.xlu1 %v645_v11, %s2687_s29  ;;  %677 = vrot.lane.b32.xlu0 %v669_v12, %s2688_s3  ;;  %v773_v11 = vmul.f32 %v772_v1, %v2796_v45 }
 0x134   :  { %v2944_v15 = vpop.permute.xlu1 %343  ;;  %v2946_v18 = vpop.permute.xlu0 %389 }
 0x136   :  { %679 = vrot.lane.b32.xlu1 %v670_v19, %s2688_s3  ;;  %681 = vrot.lane.b32.xlu0 %v671_v20, %s2688_s3  ;;  %v774_v20 = vmul.f32 %v772_v1, %v2804_v50 }
 0x138   :  { %v2952_v22 = vpop.permute.xlu1 %391  ;;  %v2954_v23 = vpop.permute.xlu0 %393 }
 0x13a   :  { %683 = vrot.lane.b32.xlu1 %v672_v26, %s2688_s3  ;;  %702 = vrot.lane.b32.xlu0 %v694_v27, %s2688_s3  ;;  %v797_v26 = vstv %s2560_s22  ;;  %s2584_s22 = sld [smem:[#allocation4 + $0x4a]] }
 0x13b   :  { %v798_v32 = vmul.f32 %v797_v26, %v2868_v33 }
 0x13c   :  { %v2960_v28 = vpop.permute.xlu1 %395  ;;  %v2962_v29 = vpop.permute.xlu0 %441 }
 0x13e   :  { %704 = vrot.lane.b32.xlu1 %v695_v30, %s2688_s3  ;;  %706 = vrot.lane.b32.xlu0 %v696_v31, %s2688_s3  ;;  %v776_v31 = vmul.f32 %v772_v1, %v2810_v53 }
 0x140   :  { %v2968_v34 = vpop.permute.xlu1 %443  ;;  %v2970_v35 = vpop.permute.xlu0 %445 }
 0x142   :  { %708 = vrot.lane.b32.xlu1 %v697_v6, %s2688_s3  ;;  %729 = vrot.lane.b32.xlu0 %v721_v16, %s2689_s5 }
 0x144   :  { %v2976_v38 = vpop.permute.xlu1 %447  ;;  %v2978_v40 = vpop.permute.xlu0 %521 }
 0x146   :  { %731 = vrot.lane.b32.xlu1 %v722_v42, %s2689_s5  ;;  %733 = vrot.lane.b32.xlu0 %v723_v43, %s2689_s5  ;;  %v799_v42 = vmul.f32 %v797_v26, %v2874_v36  ;;  %v800_v43 = vmul.f32 %v797_v26, %v2876_v37 }
 0x148   :  { %v2984_v48 = vpop.permute.xlu1 %523  ;;  %v2986_v51 = vpop.permute.xlu0 %525 }
 0x14a   :  { %735 = vrot.lane.b32.xlu1 %v724_v55, %s2689_s5  ;;  %754 = vrot.lane.b32.xlu0 %v746_v56, %s2689_s5  ;;  %v193_v55 = vadd.f32 %v2880_v7, %v2746_v13  ;;  %v852_v56 = vstv %s2563_s23  ;;  %v194_v13 = vadd.f32 %v2888_v17, %v2748_v14  ;;  %v195_v7 = vadd.f32 %v2890_v41, %v2760_v24  ;;  %v3043_v14 = vld [vmem:[#allocation3 + $0x2] sm:$0xff]  ;;  %s2585_s23 = sld [smem:[#allocation4 + $0x1a]] }
 0x14b   :  { %v196_v24 = vadd.f32 %v2896_v44, %v2762_v25  ;;  %v877_v41 = vstv %s2564_s24  ;;  %v3055_v25 = vld [vmem:[#allocation3 + $0x1a] sm:$0xff]  ;;  %s2586_s24 = sld [smem:[#allocation4 + $0x4b]] }
 0x14c   :  { %v2992_v59 = vpop.permute.xlu1 %527  ;;  %v2994_v60 = vpop.permute.xlu0 %573 }
 0x14e   :  { %756 = vrot.lane.b32.xlu1 %v747_v61, %s2689_s5  ;;  %758 = vrot.lane.b32.xlu0 %v748_v0, %s2689_s5 }
 0x150   :  { %v3000_v4 = vpop.permute.xlu1 %575  ;;  %v3002_v5 = vpop.permute.xlu0 %577 }
 0x152   :  { %760 = vrot.lane.b32.xlu1 %v749_v8, %s2689_s5  ;;  %781 = vrot.lane.b32.xlu0 %v773_v11, %s2690_s7  ;;  %v801_v8 = vmul.f32 %v797_v26, %v2884_v39  ;;  %v853_v11 = vmul.f32 %v852_v56, %v3020_v47 }
 0x154   :  { %v3008_v12 = vpop.permute.xlu1 %579  ;;  %v207_v19 = vpop.permute.xlu0 %206 }
 0x155   :  { %4206 = vst [vmem:[#allocation10_spill] sm:$0xff] %v3008_v12  ;;  %v218_v61 = vadd.f32 %v207_v19, %v193_v55  ;;  %v3041_v12 = vld [vmem:[#allocation2 + $0x22] sm:$0xff] }
 0x156   :  { %783 = vrot.lane.b32.xlu1 %v774_v20, %s2690_s7  ;;  %785 = vrot.lane.b32.xlu0 %v775_v21, %s2690_s7  ;;  %v3028_v20 = vld [vmem:[#allocation2 + $0x1a] sm:$0xff]  ;;  %v3030_v21 = vld [vmem:[#allocation2 + $0xa] sm:$0xff] }
 0x157   :  { %v245_v19 = vadd.f32 %v2898_v46, %v218_v61  ;;  %v855_v55 = vmul.f32 %v852_v56, %v3028_v20 }
 0x158   :  { %v209_v27 = vpop.permute.xlu1 %208  ;;  %v211_v30 = vpop.permute.xlu0 %210 }
 0x159   :  { %v220_v26 = vadd.f32 %v211_v30, %v195_v7  ;;  %v3053_v7 = vld [vmem:[#allocation3 + $0xa] sm:$0xff] }
 0x15a   :  { %787 = vrot.lane.b32.xlu1 %v776_v31, %s2690_s7  ;;  %806 = vrot.lane.b32.xlu0 %v798_v32, %s2690_s7  ;;  %v219_v31 = vadd.f32 %v209_v27, %v194_v13  ;;  %v878_v13 = vmul.f32 %v877_v41, %v3043_v14 }
 0x15b   :  { %v247_v27 = vadd.f32 %v2906_v54, %v220_v26  ;;  %v880_v26 = vmul.f32 %v877_v41, %v3055_v25 }
 0x15c   :  { %v213_v6 = vpop.permute.xlu1 %212  ;;  %v259_v16 = vpop.permute.xlu0 %258  ;;  %v246_v46 = vadd.f32 %v2904_v52, %v219_v31 }
 0x15d   :  { %v270_v17 = vadd.f32 %v259_v16, %v245_v19  ;;  %v221_v30 = vadd.f32 %v213_v6, %v196_v24 }
 0x15e   :  { %808 = vrot.lane.b32.xlu1 %v799_v42, %s2690_s7  ;;  %810 = vrot.lane.b32.xlu0 %v800_v43, %s2690_s7  ;;  %v854_v43 = vmul.f32 %v852_v56, %v3030_v21 }
 0x15f   :  { %v297_v44 = vadd.f32 %v2914_v58, %v270_v17  ;;  %v248_v52 = vadd.f32 %v2912_v57, %v221_v30 }
 0x160   :  { %v261_v0 = vpop.permute.xlu1 %260  ;;  %v263_v1 = vpop.permute.xlu0 %262 }
 0x161   :  { %v271_v16 = vadd.f32 %v261_v0, %v246_v46  ;;  %v272_v19 = vadd.f32 %v263_v1, %v247_v27  ;;  %v904_v1 = vstv %s2565_s26  ;;  %s2587_s26 = sld [smem:[#allocation4 + $0x1b]] }
 0x162   :  { %812 = vrot.lane.b32.xlu1 %v801_v8, %s2690_s7  ;;  %861 = vrot.lane.b32.xlu0 %v853_v11, %s2685_s25  ;;  %v856_v11 = vmul.f32 %v852_v56, %v3041_v12  ;;  %v879_v56 = vmul.f32 %v877_v41, %v3053_v7  ;;  %v905_v30 = vmul.f32 %v904_v1, %v3020_v47 }
 0x163   :  { %v299_v58 = vadd.f32 %v2922_v63, %v272_v19  ;;  %v929_v19 = vstv %s2566_s28  ;;  %s2588_s28 = sld [smem:[#allocation4 + $0x4c]] }
 0x164   :  { %v265_v32 = vpop.permute.xlu1 %264  ;;  %v311_v42 = vpop.permute.xlu0 %310 }
 0x165   :  { %v322_v54 = vadd.f32 %v311_v42, %v297_v44  ;;  %v273_v0 = vadd.f32 %v265_v32, %v248_v52 }
 0x166   :  { %863 = vrot.lane.b32.xlu1 %v854_v43, %s2685_s25  ;;  %865 = vrot.lane.b32.xlu0 %v855_v55, %s2685_s25  ;;  %v3063_v43 = vld [vmem:[#allocation3 + $0x22] sm:$0xff]  ;;  %v298_v55 = vadd.f32 %v2920_v62, %v271_v16 }
 0x167   :  { %v349_v57 = vadd.f32 %v2930_v3, %v322_v54  ;;  %v881_v27 = vmul.f32 %v877_v41, %v3063_v43  ;;  %v300_v62 = vadd.f32 %v2928_v2, %v273_v0  ;;  %v906_v41 = vmul.f32 %v904_v1, %v3030_v21 }
 0x168   :  { %v313_v61 = vpop.permute.xlu1 %312  ;;  %v315_v8 = vpop.permute.xlu0 %314 }
 0x169   :  { %v323_v42 = vadd.f32 %v313_v61, %v298_v55  ;;  %v324_v24 = vadd.f32 %v315_v8, %v299_v58  ;;  %v488_v55 = vstv %s2547_s30  ;;  %v501_v58 = vstv %s2548_s4  ;;  %s2591_s30 = sld [smem:[#allocation4 + $0x1d]] }
 0x16a   :  { %867 = vrot.lane.b32.xlu1 %v856_v11, %s2685_s25  ;;  %886 = vrot.lane.b32.xlu0 %v878_v13, %s2685_s25  ;;  %v907_v13 = vmul.f32 %v904_v1, %v3028_v20  ;;  %s3498_s4 = sld [smem:[#allocation4 + $0x4e]] }
 0x16b   :  { %v350_v32 = vadd.f32 %v2936_v9, %v323_v42  ;;  %v351_v3 = vadd.f32 %v2938_v10, %v324_v24 }
 0x16c   :  { %v317_v6 = vpop.permute.xlu1 %316  ;;  %v363_v31 = vpop.permute.xlu0 %362 }
 0x16d   :  { %v374_v63 = vadd.f32 %v363_v31, %v349_v57  ;;  %v325_v61 = vadd.f32 %v317_v6, %v300_v62  ;;  %v908_v6 = vmul.f32 %v904_v1, %v3041_v12  ;;  %v930_v31 = vmul.f32 %v929_v19, %v3043_v14 }
 0x16e   :  { %888 = vrot.lane.b32.xlu1 %v879_v56, %s2685_s25  ;;  %890 = vrot.lane.b32.xlu0 %v880_v26, %s2685_s25  ;;  %v931_v1 = vmul.f32 %v929_v19, %v3053_v7 }
 0x16f   :  { %v401_v2 = vadd.f32 %v2946_v18, %v374_v63  ;;  %v352_v9 = vadd.f32 %v2944_v15, %v325_v61 }
 0x170   :  { %v365_v17 = vpop.permute.xlu1 %364  ;;  %v367_v46 = vpop.permute.xlu0 %366 }
 0x171   :  { %v375_v44 = vadd.f32 %v365_v17, %v350_v32  ;;  %v376_v16 = vadd.f32 %v367_v46, %v351_v3  ;;  %v932_v17 = vmul.f32 %v929_v19, %v3055_v25  ;;  %v491_v3 = vmul.f32 %v488_v55, %v2802_v49 }
 0x172   :  { %892 = vrot.lane.b32.xlu1 %v881_v27, %s2685_s25  ;;  %913 = vrot.lane.b32.xlu0 %v905_v30, %s2686_s27  ;;  %v956_v27 = vstv %s2567_s6  ;;  %v502_v30 = vmul.f32 %v501_v58, %v2868_v33  ;;  %v490_v33 = vmul.f32 %v488_v55, %v2804_v50  ;;  %v504_v49 = vmul.f32 %v501_v58, %v2876_v37  ;;  %s3514_s6 = sld [smem:[#allocation4 + $0x15]] }
 0x173   :  { %v402_v56 = vadd.f32 %v2952_v22, %v375_v44  ;;  %v403_v18 = vadd.f32 %v2954_v23, %v376_v16  ;;  %v489_v22 = vmul.f32 %v488_v55, %v2796_v45  ;;  %v958_v50 = vmul.f32 %v956_v27, %v3030_v21 }
 0x174   :  { %v369_v8 = vpop.permute.xlu1 %368  ;;  %v415_v11 = vpop.permute.xlu0 %414  ;;  %v505_v37 = vmul.f32 %v501_v58, %v2884_v39 }
 0x175   :  { %v426_v10 = vadd.f32 %v415_v11, %v401_v2  ;;  %v377_v26 = vadd.f32 %v369_v8, %v352_v9  ;;  %v957_v8 = vmul.f32 %v956_v27, %v3020_v47  ;;  %v959_v9 = vmul.f32 %v956_v27, %v3028_v20 }
 0x176   :  { %915 = vrot.lane.b32.xlu1 %v906_v41, %s2686_s27  ;;  %917 = vrot.lane.b32.xlu0 %v907_v13, %s2686_s27 }
 0x177   :  { %v453_v15 = vadd.f32 %v2962_v29, %v426_v10  ;;  %v404_v23 = vadd.f32 %v2960_v28, %v377_v26  ;;  %v933_v28 = vmul.f32 %v929_v19, %v3063_v43  ;;  %v981_v10 = vstv %s3092_s8  ;;  %s3526_s8 = sld [smem:[#allocation4 + $0x46]] }
 0x178   :  { %v417_v52 = vpop.permute.xlu1 %416  ;;  %v419_v54 = vpop.permute.xlu0 %418  ;;  %v983_v39 = vmul.f32 %v981_v10, %v3053_v7 }
 0x179   :  { %v427_v0 = vadd.f32 %v417_v52, %v402_v56  ;;  %v428_v57 = vadd.f32 %v419_v54, %v403_v18  ;;  %v960_v18 = vmul.f32 %v956_v27, %v3041_v12  ;;  %v1033_v27 = vstv %s2570_s10  ;;  %s3571_s10 = sld [smem:[#allocation4 + $0x4f]] }
 0x17a   :  { %919 = vrot.lane.b32.xlu1 %v908_v6, %s2686_s27  ;;  %938 = vrot.lane.b32.xlu0 %v930_v31, %s2686_s27 }
 0x17b   :  { %v454_v29 = vadd.f32 %v2968_v34, %v427_v0  ;;  %v455_v62 = vadd.f32 %v2970_v35, %v428_v57  ;;  %v503_v34 = vmul.f32 %v501_v58, %v2874_v36  ;;  %v492_v36 = vmul.f32 %v488_v55, %v2810_v53 }
 0x17c   :  { %v421_v42 = vpop.permute.xlu1 %420  ;;  %v467_v24 = vpop.permute.xlu0 %466  ;;  %v982_v53 = vmul.f32 %v981_v10, %v3043_v14  ;;  %v984_v58 = vmul.f32 %v981_v10, %v3055_v25  ;;  %v1008_v0 = vstv %s2569_s9  ;;  %s3535_s9 = sld [smem:[#allocation4 + $0x1e]] }
 0x17d   :  { %v478_v46 = vadd.f32 %v467_v24, %v453_v15  ;;  %v429_v63 = vadd.f32 %v421_v42, %v404_v23  ;;  %v985_v24 = vmul.f32 %v981_v10, %v3063_v43  ;;  %v1010_v23 = vmul.f32 %v1008_v0, %v3030_v21 }
 0x17e   :  { %940 = vrot.lane.b32.xlu1 %v931_v1, %s2686_s27  ;;  %942 = vrot.lane.b32.xlu0 %v932_v17, %s2686_s27  ;;  %v1009_v1 = vmul.f32 %v1008_v0, %v3020_v47 }
 0x17f   :  { %v493_v32 = vadd.f32 %v489_v22, %v478_v46  ;;  %v456_v35 = vadd.f32 %v2976_v38, %v429_v63  ;;  %v1011_v46 = vmul.f32 %v1008_v0, %v3028_v20  ;;  %v1034_v63 = vmul.f32 %v1033_v27, %v3043_v14 }
 0x180   :  { %v469_v61 = vpop.permute.xlu1 %468  ;;  %v471_v45 = vpop.permute.xlu0 %470 }
 0x181   :  { %v3105_v11 = vadd.f32 %v502_v30, %v493_v32  ;;  %v479_v41 = vadd.f32 %v469_v61, %v454_v29  ;;  %v480_v13 = vadd.f32 %v471_v45, %v455_v62  ;;  %v1012_v62 = vmul.f32 %v1008_v0, %v3041_v12 }
 0x182   :  { %944 = vrot.lane.b32.xlu1 %v933_v28, %s2686_s27  ;;  %965 = vrot.lane.b32.xlu0 %v957_v8, %s2687_s29  ;;  %v1035_v61 = vmul.f32 %v1033_v27, %v3053_v7  ;;  %v1036_v45 = vmul.f32 %v1033_v27, %v3055_v25  ;;  %v1060_v28 = vstv %s2571_s11  ;;  %s2595_s11 = sld [smem:[#allocation4 + $0x1f]] }
 0x183   :  { %v494_v2 = vadd.f32 %v490_v33, %v479_v41  ;;  %v495_v44 = vadd.f32 %v491_v3, %v480_v13  ;;  %v1037_v41 = vmul.f32 %v1033_v27, %v3063_v43  ;;  %v1061_v13 = vmul.f32 %v1060_v28, %v3020_v47 }
 0x184   :  { %v473_v16 = vpop.permute.xlu1 %472  ;;  %v3112_v19 = vpop.permute.xlu0 %546 }
 0x185   :  { %v3118_v52 = vadd.f32 %v503_v34, %v494_v2  ;;  %v3120_v54 = vadd.f32 %v504_v49, %v495_v44  ;;  %v481_v6 = vadd.f32 %v473_v16, %v456_v35  ;;  %v1062_v35 = vmul.f32 %v1060_v28, %v3030_v21 }
 0x186   :  { %967 = vrot.lane.b32.xlu1 %v958_v50, %s2687_s29  ;;  %969 = vrot.lane.b32.xlu0 %v959_v9, %s2687_s29  ;;  %v1063_v2 = vmul.f32 %v1060_v28, %v3028_v20  ;;  %v1085_v44 = vstv %s2572_s12  ;;  %v1064_v9 = vmul.f32 %v1060_v28, %v3041_v12  ;;  %s2596_s12 = sld [smem:[#allocation4 + $0x50]] }
 0x187   :  { %v496_v38 = vadd.f32 %v492_v36, %v481_v6  ;;  %v1086_v10 = vmul.f32 %v1085_v44, %v3043_v14 }
 0x188   :  { %v3125_v31 = vpop.permute.xlu1 %548  ;;  %v3127_v56 = vpop.permute.xlu0 %550 }
 0x189   :  { %v3131_v26 = vadd.f32 %v505_v37, %v496_v38  ;;  %v1087_v37 = vmul.f32 %v1085_v44, %v3053_v7  ;;  %v1088_v38 = vmul.f32 %v1085_v44, %v3055_v25 }
 0x18a   :  { %971 = vrot.lane.b32.xlu1 %v960_v18, %s2687_s29  ;;  %990 = vrot.lane.b32.xlu0 %v982_v53, %s2687_s29  ;;  %v1112_v18 = vstv %s2573_s13  ;;  %s2597_s13 = sld [smem:[#allocation4 + $0x20]] }
 0x18b   :  { %v1113_v0 = vmul.f32 %v1112_v18, %v3020_v47  ;;  %v1115_v27 = vmul.f32 %v1112_v18, %v3028_v20  ;;  %v1116_v28 = vmul.f32 %v1112_v18, %v3041_v12 }
 0x18c   :  { %v3135_v55 = vpop.permute.xlu1 %552  ;;  %v3137_v15 = vpop.permute.xlu0 %598 }
 0x18e   :  { %992 = vrot.lane.b32.xlu1 %v983_v39, %s2687_s29  ;;  %994 = vrot.lane.b32.xlu0 %v984_v58, %s2687_s29  ;;  %v1089_v58 = vmul.f32 %v1085_v44, %v3063_v43 }
 0x190   :  { %v3143_v57 = vpop.permute.xlu1 %600  ;;  %v3145_v42 = vpop.permute.xlu0 %602 }
 0x192   :  { %996 = vrot.lane.b32.xlu1 %v985_v24, %s2687_s29  ;;  %1017 = vrot.lane.b32.xlu0 %v1009_v1, %s2688_s3  ;;  %v533_v24 = vadd.f32 %v2978_v40, %v3105_v11  ;;  %v535_v40 = vadd.f32 %v2986_v51, %v3120_v54 }
 0x194   :  { %v3151_v17 = vpop.permute.xlu1 %604  ;;  %v3153_v22 = vpop.permute.xlu0 %625  ;;  %v558_v11 = vadd.f32 %v3112_v19, %v533_v24  ;;  %v560_v19 = vadd.f32 %v3127_v56, %v535_v40 }
 0x196   :  { %1019 = vrot.lane.b32.xlu1 %v1010_v23, %s2688_s3  ;;  %1021 = vrot.lane.b32.xlu0 %v1011_v46, %s2688_s3  ;;  %v1114_v46 = vmul.f32 %v1112_v18, %v3030_v21 }
 0x198   :  { %v3159_v30 = vpop.permute.xlu1 %627  ;;  %v3161_v29 = vpop.permute.xlu0 %629 }
 0x19a   :  { %1023 = vrot.lane.b32.xlu1 %v1012_v62, %s2688_s3  ;;  %1042 = vrot.lane.b32.xlu0 %v1034_v63, %s2688_s3  ;;  %v1137_v62 = vstv %s2574_s14  ;;  %v534_v63 = vadd.f32 %v2984_v48, %v3118_v52  ;;  %v536_v48 = vadd.f32 %v2992_v59, %v3131_v26  ;;  %v585_v52 = vadd.f32 %v2994_v60, %v558_v11  ;;  %s2598_s14 = sld [smem:[#allocation4 + $0x51]] }
 0x19b   :  { %v1192_v59 = vstv %s2577_s15  ;;  %s2599_s15 = sld [smem:[#allocation4 + $0x21]] }
 0x19c   :  { %v3167_v32 = vpop.permute.xlu1 %631  ;;  %v3169_v3 = vpop.permute.xlu0 %650  ;;  %v559_v51 = vadd.f32 %v3125_v31, %v534_v63  ;;  %v610_v44 = vadd.f32 %v3137_v15, %v585_v52  ;;  %v587_v31 = vadd.f32 %v3002_v5, %v560_v19  ;;  %v561_v56 = vadd.f32 %v3135_v55, %v536_v48  ;;  %v3265_v5 = vld [vmem:[#allocation2 + $0xb] sm:$0xff]  ;;  %v3267_v55 = vld [vmem:[#allocation2 + $0x1b] sm:$0xff] }
 0x19d   :  { %v1141_v15 = vmul.f32 %v1137_v62, %v3063_v43  ;;  %v1217_v63 = vstv %s3247_s16  ;;  %s2600_s16 = sld [smem:[#allocation4 + $0x52]] }
 0x19e   :  { %1044 = vrot.lane.b32.xlu1 %v1035_v61, %s2688_s3  ;;  %1046 = vrot.lane.b32.xlu0 %v1036_v45, %s2688_s3  ;;  %v586_v60 = vadd.f32 %v3000_v4, %v559_v51  ;;  %v637_v26 = vadd.f32 %v3153_v22, %v610_v44  ;;  %v4207_v22 = vld [vmem:[#allocation10_spill] sm:$0xff] }
 0x1a0   :  { %v3175_v8 = vpop.permute.xlu1 %652  ;;  %v3177_v33 = vpop.permute.xlu0 %654  ;;  %v611_v18 = vadd.f32 %v3143_v57, %v586_v60  ;;  %v662_v4 = vadd.f32 %v3169_v3, %v637_v26 }
 0x1a2   :  { %1048 = vrot.lane.b32.xlu1 %v1037_v41, %s2688_s3  ;;  %1069 = vrot.lane.b32.xlu0 %v1061_v13, %s2689_s5  ;;  %v1138_v41 = vmul.f32 %v1137_v62, %v3043_v14  ;;  %v638_v24 = vadd.f32 %v3159_v30, %v611_v18 }
 0x1a4   :  { %v3183_v34 = vpop.permute.xlu1 %656  ;;  %v3185_v49 = vpop.permute.xlu0 %677  ;;  %v663_v11 = vadd.f32 %v3175_v8, %v638_v24 }
 0x1a6   :  { %1071 = vrot.lane.b32.xlu1 %v1062_v35, %s2689_s5  ;;  %1073 = vrot.lane.b32.xlu0 %v1063_v2, %s2689_s5  ;;  %v1139_v35 = vmul.f32 %v1137_v62, %v3053_v7  ;;  %v1140_v2 = vmul.f32 %v1137_v62, %v3055_v25  ;;  %v1195_v62 = vmul.f32 %v1192_v59, %v3267_v55 }
 0x1a8   :  { %v3191_v16 = vpop.permute.xlu1 %679  ;;  %v3193_v50 = vpop.permute.xlu0 %681 }
 0x1a9   :  { %v690_v48 = vadd.f32 %v3191_v16, %v663_v11  ;;  %v3302_v16 = vld [vmem:[#allocation3 + $0xb] sm:$0xff] }
 0x1aa   :  { %1075 = vrot.lane.b32.xlu1 %v1064_v9, %s2689_s5  ;;  %1094 = vrot.lane.b32.xlu0 %v1086_v10, %s2689_s5  ;;  %v3250_v9 = vld [vmem:[#allocation2 + $0x3] sm:$0xff] }
 0x1ac   :  { %v3199_v36 = vpop.permute.xlu1 %683  ;;  %v3201_v6 = vpop.permute.xlu0 %702 }
 0x1ae   :  { %1096 = vrot.lane.b32.xlu1 %v1087_v37, %s2689_s5  ;;  %1098 = vrot.lane.b32.xlu0 %v1088_v38, %s2689_s5  ;;  %v1193_v38 = vmul.f32 %v1192_v59, %v3250_v9 }
 0x1b0   :  { %v3207_v53 = vpop.permute.xlu1 %704  ;;  %v3209_v39 = vpop.permute.xlu0 %706 }
 0x1b2   :  { %1100 = vrot.lane.b32.xlu1 %v1089_v58, %s2689_s5  ;;  %1121 = vrot.lane.b32.xlu0 %v1113_v0, %s2690_s7  ;;  %v612_v58 = vadd.f32 %v3145_v42, %v587_v31  ;;  %v588_v0 = vadd.f32 %v4207_v22, %v561_v56  ;;  %v689_v42 = vadd.f32 %v3185_v49, %v662_v4  ;;  %v3288_v49 = vld [vmem:[#allocation3 + $0x3] sm:$0xff] }
 0x1b3   :  { %v1218_v19 = vmul.f32 %v1217_v63, %v3288_v49  ;;  %v1219_v56 = vmul.f32 %v1217_v63, %v3302_v16 }
 0x1b4   :  { %v3217_v1 = vpop.permute.xlu1 %708  ;;  %v3219_v23 = vpop.permute.xlu0 %729  ;;  %v639_v57 = vadd.f32 %v3161_v29, %v612_v58  ;;  %v613_v40 = vadd.f32 %v3151_v17, %v588_v0  ;;  %v714_v29 = vadd.f32 %v3201_v6, %v689_v42 }
 0x1b6   :  { %1123 = vrot.lane.b32.xlu1 %v1114_v46, %s2690_s7  ;;  %1125 = vrot.lane.b32.xlu0 %v1115_v27, %s2690_s7  ;;  %v1194_v27 = vmul.f32 %v1192_v59, %v3265_v5  ;;  %v664_v30 = vadd.f32 %v3177_v33, %v639_v57  ;;  %v741_v8 = vadd.f32 %v3219_v23, %v714_v29  ;;  %v828_v33 = vstv %s3258_s0  ;;  %s2601_s0 = sld [smem:[#allocation4 + $0x22]] }
 0x1b7   :  { %v841_v23 = vstv %s3269_s17  ;;  %v831_v24 = vmul.f32 %v828_v33, %v3028_v20  ;;  %s2602_s17 = sld [smem:[#allocation4 + $0x53]] }
 0x1b8   :  { %v3230_v61 = vpop.permute.xlu1 %731  ;;  %v3232_v45 = vpop.permute.xlu0 %733  ;;  %v691_v17 = vadd.f32 %v3193_v50, %v664_v30  ;;  %v3304_v50 = vld [vmem:[#allocation3 + $0x1b] sm:$0xff]  ;;  %v844_v20 = vmul.f32 %v841_v23, %v3055_v25  ;;  %v845_v25 = vmul.f32 %v841_v23, %v3063_v43 }
 0x1b9   :  { %v1220_v26 = vmul.f32 %v1217_v63, %v3304_v50 }
 0x1ba   :  { %1127 = vrot.lane.b32.xlu1 %v1116_v28, %s2690_s7  ;;  %1146 = vrot.lane.b32.xlu0 %v1138_v41, %s2690_s7  ;;  %v3286_v28 = vld [vmem:[#allocation2 + $0x23] sm:$0xff]  ;;  %v640_v41 = vadd.f32 %v3167_v32, %v613_v40  ;;  %v716_v44 = vadd.f32 %v3209_v39, %v691_v17  ;;  %v829_v39 = vmul.f32 %v828_v33, %v3020_v47 }
 0x1bb   :  { %v1196_v51 = vmul.f32 %v1192_v59, %v3286_v28 }
 0x1bc   :  { %v3243_v54 = vpop.permute.xlu1 %735  ;;  %v755_v13 = vpop.permute.xlu0 %754 }
 0x1bd   :  { %v766_v32 = vadd.f32 %v755_v13, %v741_v8 }
 0x1be   :  { %1148 = vrot.lane.b32.xlu1 %v1139_v35, %s2690_s7  ;;  %1150 = vrot.lane.b32.xlu0 %v1140_v2, %s2690_s7  ;;  %v665_v35 = vadd.f32 %v3183_v34, %v640_v41  ;;  %v715_v2 = vadd.f32 %v3207_v53, %v690_v48  ;;  %v743_v34 = vadd.f32 %v3232_v45, %v716_v44  ;;  %v1269_v41 = vstv %s3316_s19  ;;  %s3753_s19 = sld [smem:[#allocation4 + $0x55]] }
 0x1bf   :  { %v842_v45 = vmul.f32 %v841_v23, %v3043_v14  ;;  %v832_v48 = vmul.f32 %v828_v33, %v3041_v12  ;;  %v1270_v12 = vmul.f32 %v1269_v41, %v3288_v49  ;;  %v1271_v43 = vmul.f32 %v1269_v41, %v3302_v16 }
 0x1c0   :  { %v757_v10 = vpop.permute.xlu1 %756  ;;  %v759_v37 = vpop.permute.xlu0 %758  ;;  %v692_v59 = vadd.f32 %v3199_v36, %v665_v35  ;;  %v742_v60 = vadd.f32 %v3230_v61, %v715_v2  ;;  %v3319_v61 = vld [vmem:[#allocation3 + $0x23] sm:$0xff]  ;;  %v1272_v44 = vmul.f32 %v1269_v41, %v3304_v50 }
 0x1c1   :  { %v768_v36 = vadd.f32 %v759_v37, %v743_v34  ;;  %v1221_v57 = vmul.f32 %v1217_v63, %v3319_v61 }
 0x1c2   :  { %1152 = vrot.lane.b32.xlu1 %v1141_v15, %s2690_s7  ;;  %1201 = vrot.lane.b32.xlu0 %v1193_v38, %s2685_s25  ;;  %v1244_v15 = vstv %s3280_s18  ;;  %v717_v38 = vadd.f32 %v3217_v1, %v692_v59  ;;  %v767_v18 = vadd.f32 %v757_v10, %v742_v60  ;;  %v830_v1 = vmul.f32 %v828_v33, %v3030_v21  ;;  %s2605_s18 = sld [smem:[#allocation4 + $0x24]] }
 0x1c3   :  { %v1245_v42 = vmul.f32 %v1244_v15, %v3250_v9  ;;  %v1247_v29 = vmul.f32 %v1244_v15, %v3267_v55  ;;  %v1273_v60 = vmul.f32 %v1269_v41, %v3319_v61 }
 0x1c4   :  { %v761_v46 = vpop.permute.xlu1 %760  ;;  %v782_v3 = vpop.permute.xlu0 %781  ;;  %v744_v47 = vadd.f32 %v3243_v54, %v717_v38  ;;  %v843_v54 = vmul.f32 %v841_v23, %v3053_v7 }
 0x1c5   :  { %v793_v53 = vadd.f32 %v782_v3, %v766_v32  ;;  %v1296_v32 = vstv %s2581_s1  ;;  %s3769_s1 = sld [smem:[#allocation4 + $0x1c]] }
 0x1c6   :  { %1203 = vrot.lane.b32.xlu1 %v1194_v27, %s2685_s25  ;;  %1205 = vrot.lane.b32.xlu0 %v1195_v62, %s2685_s25  ;;  %v769_v14 = vadd.f32 %v761_v46, %v744_v47  ;;  %v1246_v46 = vmul.f32 %v1244_v15, %v3265_v5  ;;  %v1297_v34 = vmul.f32 %v1296_v32, %v3250_v9 }
 0x1c7   :  { %v1300_v38 = vmul.f32 %v1296_v32, %v3286_v28 }
 0x1c8   :  { %v784_v52 = vpop.permute.xlu1 %783  ;;  %v786_v6 = vpop.permute.xlu0 %785 }
 0x1c9   :  { %v794_v4 = vadd.f32 %v784_v52, %v767_v18  ;;  %v795_v22 = vadd.f32 %v786_v6, %v768_v36 }
 0x1ca   :  { %1207 = vrot.lane.b32.xlu1 %v1196_v51, %s2685_s25  ;;  %1226 = vrot.lane.b32.xlu0 %v1218_v19, %s2685_s25  ;;  %v1248_v19 = vmul.f32 %v1244_v15, %v3286_v28 }
 0x1cc   :  { %v788_v31 = vpop.permute.xlu1 %787  ;;  %v807_v13 = vpop.permute.xlu0 %806 }
 0x1cd   :  { %v818_v58 = vadd.f32 %v807_v13, %v793_v53  ;;  %v796_v21 = vadd.f32 %v788_v31, %v769_v14  ;;  %v1298_v31 = vmul.f32 %v1296_v32, %v3265_v5  ;;  %v1299_v13 = vmul.f32 %v1296_v32, %v3267_v55 }
 0x1ce   :  { %1228 = vrot.lane.b32.xlu1 %v1219_v56, %s2685_s25  ;;  %1230 = vrot.lane.b32.xlu0 %v1220_v26, %s2685_s25  ;;  %v1321_v56 = vstv %s2582_s20  ;;  %v1373_v14 = vstv %s2584_s22  ;;  %s3781_s20 = sld [smem:[#allocation4 + $0x4d]] }
 0x1cf   :  { %v833_v0 = vadd.f32 %v829_v39, %v818_v58  ;;  %v1322_v18 = vmul.f32 %v1321_v56, %v3288_v49  ;;  %v1324_v47 = vmul.f32 %v1321_v56, %v3304_v50  ;;  %s3826_s22 = sld [smem:[#allocation4 + $0x56]] }
 0x1d0   :  { %v809_v10 = vpop.permute.xlu1 %808  ;;  %v811_v37 = vpop.permute.xlu0 %810 }
 0x1d1   :  { %v3329_v3 = vadd.f32 %v842_v45, %v833_v0  ;;  %v819_v27 = vadd.f32 %v809_v10, %v794_v4  ;;  %v820_v62 = vadd.f32 %v811_v37, %v795_v22  ;;  %v1323_v45 = vmul.f32 %v1321_v56, %v3302_v16 }
 0x1d2   :  { %1232 = vrot.lane.b32.xlu1 %v1221_v57, %s2685_s25  ;;  %1253 = vrot.lane.b32.xlu0 %v1245_v42, %s2686_s27  ;;  %v1348_v4 = vstv %s2583_s21  ;;  %s3790_s21 = sld [smem:[#allocation4 + $0x25]] }
 0x1d3   :  { %v834_v40 = vadd.f32 %v830_v1, %v819_v27  ;;  %v835_v11 = vadd.f32 %v831_v24, %v820_v62  ;;  %v1325_v24 = vmul.f32 %v1321_v56, %v3319_v61  ;;  %v1349_v1 = vmul.f32 %v1348_v4, %v3250_v9 }
 0x1d4   :  { %v813_v63 = vpop.permute.xlu1 %812  ;;  %v3335_v30 = vpop.permute.xlu0 %861  ;;  %v1350_v57 = vmul.f32 %v1348_v4, %v3265_v5  ;;  %v1351_v42 = vmul.f32 %v1348_v4, %v3267_v55 }
 0x1d5   :  { %v3341_v7 = vadd.f32 %v843_v54, %v834_v40  ;;  %v3343_v17 = vadd.f32 %v844_v20, %v835_v11  ;;  %v821_v8 = vadd.f32 %v813_v63, %v796_v21  ;;  %v1352_v54 = vmul.f32 %v1348_v4, %v3286_v28 }
 0x1d6   :  { %1255 = vrot.lane.b32.xlu1 %v1246_v46, %s2686_s27  ;;  %1257 = vrot.lane.b32.xlu0 %v1247_v29, %s2686_s27  ;;  %v1374_v20 = vmul.f32 %v1373_v14, %v3288_v49  ;;  %v1375_v11 = vmul.f32 %v1373_v14, %v3302_v16  ;;  %v1376_v63 = vmul.f32 %v1373_v14, %v3304_v50  ;;  %v1400_v46 = vstv %s2585_s23  ;;  %s2609_s23 = sld [smem:[#allocation4 + $0x26]] }
 0x1d7   :  { %v836_v52 = vadd.f32 %v832_v48, %v821_v8  ;;  %v1377_v48 = vmul.f32 %v1373_v14, %v3319_v61  ;;  %v1401_v8 = vmul.f32 %v1400_v46, %v3250_v9 }
 0x1d8   :  { %v3348_v6 = vpop.permute.xlu1 %863  ;;  %v3350_v51 = vpop.permute.xlu0 %865 }
 0x1d9   :  { %v3354_v33 = vadd.f32 %v845_v25, %v836_v52 }
 0x1da   :  { %1259 = vrot.lane.b32.xlu1 %v1248_v19, %s2686_s27  ;;  %1278 = vrot.lane.b32.xlu0 %v1270_v12, %s2686_s27  ;;  %v1402_v19 = vmul.f32 %v1400_v46, %v3265_v5  ;;  %v1403_v12 = vmul.f32 %v1400_v46, %v3267_v55 }
 0x1dc   :  { %v3358_v35 = vpop.permute.xlu1 %867  ;;  %v3360_v2 = vpop.permute.xlu0 %886 }
 0x1de   :  { %1280 = vrot.lane.b32.xlu1 %v1271_v43, %s2686_s27  ;;  %1282 = vrot.lane.b32.xlu0 %v1272_v44, %s2686_s27  ;;  %v1425_v43 = vstv %s2586_s24  ;;  %s2610_s24 = sld [smem:[#allocation4 + $0x57]] }
 0x1df   :  { %v1427_v56 = vmul.f32 %v1425_v43, %v3302_v16  ;;  %v1429_v4 = vmul.f32 %v1425_v43, %v3319_v61 }
 0x1e0   :  { %v3366_v23 = vpop.permute.xlu1 %888  ;;  %v3368_v59 = vpop.permute.xlu0 %890 }
 0x1e2   :  { %1284 = vrot.lane.b32.xlu1 %v1273_v60, %s2686_s27  ;;  %1305 = vrot.lane.b32.xlu0 %v1297_v34, %s2687_s29  ;;  %v1404_v60 = vmul.f32 %v1400_v46, %v3286_v28  ;;  %v1426_v34 = vmul.f32 %v1425_v43, %v3288_v49 }
 0x1e4   :  { %v3374_v53 = vpop.permute.xlu1 %892  ;;  %v3376_v39 = vpop.permute.xlu0 %913 }
 0x1e6   :  { %1307 = vrot.lane.b32.xlu1 %v1298_v31, %s2687_s29  ;;  %1309 = vrot.lane.b32.xlu0 %v1299_v13, %s2687_s29 }
 0x1e8   :  { %v3382_v26 = vpop.permute.xlu1 %915  ;;  %v3384_v15 = vpop.permute.xlu0 %917 }
 0x1ea   :  { %1311 = vrot.lane.b32.xlu1 %v1300_v38, %s2687_s29  ;;  %1330 = vrot.lane.b32.xlu0 %v1322_v18, %s2687_s29  ;;  %v1428_v38 = vmul.f32 %v1425_v43, %v3304_v50  ;;  %v1452_v18 = vstv %s2587_s26  ;;  %s2611_s26 = sld [smem:[#allocation4 + $0x27]] }
 0x1eb   :  { %v1455_v14 = vmul.f32 %v1452_v18, %v3267_v55  ;;  %v1456_v46 = vmul.f32 %v1452_v18, %v3286_v28 }
 0x1ec   :  { %v3390_v36 = vpop.permute.xlu1 %919  ;;  %v3392_v58 = vpop.permute.xlu0 %938 }
 0x1ee   :  { %1332 = vrot.lane.b32.xlu1 %v1323_v45, %s2687_s29  ;;  %1334 = vrot.lane.b32.xlu0 %v1324_v47, %s2687_s29 }
 0x1f0   :  { %v3398_v22 = vpop.permute.xlu1 %940  ;;  %v3400_v0 = vpop.permute.xlu0 %942 }
 0x1f2   :  { %1336 = vrot.lane.b32.xlu1 %v1325_v24, %s2687_s29  ;;  %1357 = vrot.lane.b32.xlu0 %v1349_v1, %s2688_s3  ;;  %v1453_v24 = vmul.f32 %v1452_v18, %v3250_v9 }
 0x1f4   :  { %v3406_v10 = vpop.permute.xlu1 %944  ;;  %v3408_v37 = vpop.permute.xlu0 %965 }
 0x1f6   :  { %1359 = vrot.lane.b32.xlu1 %v1350_v57, %s2688_s3  ;;  %1361 = vrot.lane.b32.xlu0 %v1351_v42, %s2688_s3  ;;  %v1454_v42 = vmul.f32 %v1452_v18, %v3265_v5 }
 0x1f8   :  { %v3414_v27 = vpop.permute.xlu1 %967  ;;  %v3416_v62 = vpop.permute.xlu0 %969 }
 0x1fa   :  { %1363 = vrot.lane.b32.xlu1 %v1352_v54, %s2688_s3  ;;  %1382 = vrot.lane.b32.xlu0 %v1374_v20, %s2688_s3  ;;  %v1477_v54 = vstv %s2588_s28  ;;  %v873_v20 = vadd.f32 %v3335_v30, %v3329_v3  ;;  %v875_v3 = vadd.f32 %v3350_v51, %v3343_v17  ;;  %v1532_v17 = vstv %s2591_s30  ;;  %s2612_s28 = sld [smem:[#allocation4 + $0x58]] }
 0x1fb   :  { %v876_v51 = vadd.f32 %v3358_v35, %v3354_v33  ;;  %s2613_s30 = sld [smem:[#allocation4 + $0x28]] }
 0x1fc   :  { %v3422_v21 = vpop.permute.xlu1 %971  ;;  %v3424_v40 = vpop.permute.xlu0 %990 }
 0x1fe   :  { %1384 = vrot.lane.b32.xlu1 %v1375_v11, %s2688_s3  ;;  %1386 = vrot.lane.b32.xlu0 %v1376_v63, %s2688_s3 }
 0x200   :  { %v3430_v29 = vpop.permute.xlu1 %992  ;;  %v3432_v41 = vpop.permute.xlu0 %994 }
 0x202   :  { %1388 = vrot.lane.b32.xlu1 %v1377_v48, %s2688_s3  ;;  %1409 = vrot.lane.b32.xlu0 %v1401_v8, %s2689_s5  ;;  %v1478_v48 = vmul.f32 %v1477_v54, %v3288_v49  ;;  %v898_v8 = vadd.f32 %v3360_v2, %v873_v20 }
 0x204   :  { %v3438_v25 = vpop.permute.xlu1 %996  ;;  %v3440_v52 = vpop.permute.xlu0 %1017  ;;  %v925_v30 = vadd.f32 %v3376_v39, %v898_v8  ;;  %v3541_v8 = vld [vmem:[#allocation2 + $0x24] sm:$0xff] }
 0x206   :  { %1411 = vrot.lane.b32.xlu1 %v1402_v19, %s2689_s5  ;;  %1413 = vrot.lane.b32.xlu0 %v1403_v12, %s2689_s5  ;;  %v874_v19 = vadd.f32 %v3348_v6, %v3341_v7  ;;  %v950_v7 = vadd.f32 %v3392_v58, %v925_v30  ;;  %v3503_v6 = vld [vmem:[#allocation2 + $0x4] sm:$0xff]  ;;  %v1481_v58 = vmul.f32 %v1477_v54, %v3319_v61 }
 0x208   :  { %v3446_v44 = vpop.permute.xlu1 %1019  ;;  %v3448_v32 = vpop.permute.xlu0 %1021  ;;  %v899_v2 = vadd.f32 %v3366_v23, %v874_v19  ;;  %v977_v23 = vadd.f32 %v3408_v37, %v950_v7  ;;  %v3557_v7 = vld [vmem:[#allocation3 + $0xc] sm:$0xff] }
 0x20a   :  { %1415 = vrot.lane.b32.xlu1 %v1404_v60, %s2689_s5  ;;  %1434 = vrot.lane.b32.xlu0 %v1426_v34, %s2689_s5  ;;  %v1479_v60 = vmul.f32 %v1477_v54, %v3302_v16  ;;  %v1480_v34 = vmul.f32 %v1477_v54, %v3304_v50  ;;  %v926_v39 = vadd.f32 %v3382_v26, %v899_v2  ;;  %v3520_v26 = vld [vmem:[#allocation2 + $0xc] sm:$0xff] }
 0x20b   :  { %v1002_v35 = vadd.f32 %v3424_v40, %v977_v23  ;;  %v1534_v54 = vmul.f32 %v1532_v17, %v3520_v26 }
 0x20c   :  { %v3454_v31 = vpop.permute.xlu1 %1023  ;;  %v3456_v13 = vpop.permute.xlu0 %1042 }
 0x20e   :  { %1436 = vrot.lane.b32.xlu1 %v1427_v56, %s2689_s5  ;;  %1438 = vrot.lane.b32.xlu0 %v1428_v38, %s2689_s5  ;;  %v900_v56 = vadd.f32 %v3368_v59, %v875_v3 }
 0x210   :  { %v3462_v45 = vpop.permute.xlu1 %1044  ;;  %v3464_v47 = vpop.permute.xlu0 %1046  ;;  %v927_v38 = vadd.f32 %v3384_v15, %v900_v56  ;;  %v3522_v15 = vld [vmem:[#allocation2 + $0x1c] sm:$0xff] }
 0x211   :  { %v1535_v20 = vmul.f32 %v1532_v17, %v3522_v15 }
 0x212   :  { %1440 = vrot.lane.b32.xlu1 %v1429_v4, %s2689_s5  ;;  %1461 = vrot.lane.b32.xlu0 %v1453_v24, %s2690_s7  ;;  %v1533_v4 = vmul.f32 %v1532_v17, %v3503_v6  ;;  %v901_v24 = vadd.f32 %v3374_v53, %v876_v51  ;;  %v952_v33 = vadd.f32 %v3400_v0, %v927_v38 }
 0x213   :  { %v1029_v0 = vadd.f32 %v3440_v52, %v1002_v35  ;;  %v3543_v52 = vld [vmem:[#allocation3 + $0x4] sm:$0xff] }
 0x214   :  { %v3470_v1 = vpop.permute.xlu1 %1048  ;;  %v3472_v57 = vpop.permute.xlu0 %1069  ;;  %v928_v37 = vadd.f32 %v3390_v36, %v901_v24 }
 0x216   :  { %1463 = vrot.lane.b32.xlu1 %v1454_v42, %s2690_s7  ;;  %1465 = vrot.lane.b32.xlu0 %v1455_v14, %s2690_s7  ;;  %v951_v42 = vadd.f32 %v3398_v22, %v926_v39  ;;  %v979_v22 = vadd.f32 %v3416_v62, %v952_v33  ;;  %v1054_v62 = vadd.f32 %v3456_v13, %v1029_v0 }
 0x217   :  { %v1536_v13 = vmul.f32 %v1532_v17, %v3541_v8 }
 0x218   :  { %v3480_v11 = vpop.permute.xlu1 %1071  ;;  %v3482_v63 = vpop.permute.xlu0 %1073  ;;  %v978_v53 = vadd.f32 %v3414_v27, %v951_v42  ;;  %v1004_v27 = vadd.f32 %v3432_v41, %v979_v22 }
 0x21a   :  { %1467 = vrot.lane.b32.xlu1 %v1456_v46, %s2690_s7  ;;  %1486 = vrot.lane.b32.xlu0 %v1478_v48, %s2690_s7  ;;  %v1557_v46 = vstv %s3498_s4  ;;  %v953_v48 = vadd.f32 %v3406_v10, %v928_v37  ;;  %v1003_v36 = vadd.f32 %v3430_v29, %v978_v53  ;;  %v1031_v10 = vadd.f32 %v3448_v32, %v1004_v27  ;;  %v3559_v32 = vld [vmem:[#allocation3 + $0x1c] sm:$0xff]  ;;  %s2614_s4 = sld [smem:[#allocation4 + $0x59]] }
 0x21b   :  { %v1081_v29 = vadd.f32 %v3472_v57, %v1054_v62  ;;  %v1181_v57 = vstv %s3526_s8  ;;  %v1559_v38 = vmul.f32 %v1557_v46, %v3557_v7  ;;  %v1560_v23 = vmul.f32 %v1557_v46, %v3559_v32  ;;  %s2616_s8 = sld [smem:[#allocation4 + $0x5a]] }
 0x21c   :  { %v3494_v12 = vpop.permute.xlu1 %1075  ;;  %v1095_v43 = vpop.permute.xlu0 %1094  ;;  %v980_v19 = vadd.f32 %v3422_v21, %v953_v48  ;;  %v1030_v3 = vadd.f32 %v3446_v44, %v1003_v36  ;;  %v1056_v21 = vadd.f32 %v3464_v47, %v1031_v10 }
 0x21d   :  { %v1106_v44 = vadd.f32 %v1095_v43, %v1081_v29 }
 0x21e   :  { %1488 = vrot.lane.b32.xlu1 %v1479_v60, %s2690_s7  ;;  %1490 = vrot.lane.b32.xlu0 %v1480_v34, %s2690_s7  ;;  %v1558_v60 = vmul.f32 %v1557_v46, %v3543_v52  ;;  %v1168_v34 = vstv %s3514_s6  ;;  %v1005_v2 = vadd.f32 %v3438_v25, %v980_v19  ;;  %v1055_v56 = vadd.f32 %v3462_v45, %v1030_v3  ;;  %s2615_s6 = sld [smem:[#allocation4 + $0x29]] }
 0x21f   :  { %v1083_v25 = vadd.f32 %v3482_v63, %v1056_v21  ;;  %v1169_v47 = vmul.f32 %v1168_v34, %v3250_v9  ;;  %v1182_v63 = vmul.f32 %v1181_v57, %v3288_v49  ;;  %v1170_v53 = vmul.f32 %v1168_v34, %v3265_v5 }
 0x220   :  { %v1097_v18 = vpop.permute.xlu1 %1096  ;;  %v1099_v59 = vpop.permute.xlu0 %1098  ;;  %v1032_v17 = vadd.f32 %v3454_v31, %v1005_v2  ;;  %v1082_v51 = vadd.f32 %v3480_v11, %v1055_v56  ;;  %v3574_v11 = vld [vmem:[#allocation3 + $0x24] sm:$0xff]  ;;  %v1609_v19 = vstv %s3571_s10  ;;  %v1172_v10 = vmul.f32 %v1168_v34, %v3286_v28  ;;  %s4008_s10 = sld [smem:[#allocation4 + $0x5c]] }
 0x221   :  { %v1108_v31 = vadd.f32 %v1099_v59, %v1083_v25  ;;  %v1561_v59 = vmul.f32 %v1557_v46, %v3574_v11  ;;  %v1610_v2 = vmul.f32 %v1609_v19, %v3543_v52  ;;  %v1612_v21 = vmul.f32 %v1609_v19, %v3559_v32 }
 0x222   :  { %1492 = vrot.lane.b32.xlu1 %v1481_v58, %s2690_s7  ;;  %1541 = vrot.lane.b32.xlu0 %v1533_v4, %s2685_s25  ;;  %v1584_v58 = vstv %s3535_s9  ;;  %v1057_v4 = vadd.f32 %v3470_v1, %v1032_v17  ;;  %v1107_v24 = vadd.f32 %v1097_v18, %v1082_v51  ;;  %v1171_v1 = vmul.f32 %v1168_v34, %v3267_v55  ;;  %s2619_s9 = sld [smem:[#allocation4 + $0x2b]] }
 0x223   :  { %v1585_v0 = vmul.f32 %v1584_v58, %v3503_v6  ;;  %v1184_v55 = vmul.f32 %v1181_v57, %v3304_v50  ;;  %v1587_v62 = vmul.f32 %v1584_v58, %v3522_v15  ;;  %v1185_v50 = vmul.f32 %v1181_v57, %v3319_v61 }
 0x224   :  { %v1101_v14 = vpop.permute.xlu1 %1100  ;;  %v1122_v40 = vpop.permute.xlu0 %1121  ;;  %v1084_v9 = vadd.f32 %v3494_v12, %v1057_v4  ;;  %v1183_v12 = vmul.f32 %v1181_v57, %v3302_v16  ;;  %v1611_v61 = vmul.f32 %v1609_v19, %v3557_v7  ;;  %v1613_v51 = vmul.f32 %v1609_v19, %v3574_v11 }
 0x225   :  { %v1133_v45 = vadd.f32 %v1122_v40, %v1106_v44  ;;  %v1636_v44 = vstv %s2595_s11  ;;  %s4024_s11 = sld [smem:[#allocation4 + $0x23]] }
 0x226   :  { %1543 = vrot.lane.b32.xlu1 %v1534_v54, %s2685_s25  ;;  %1545 = vrot.lane.b32.xlu0 %v1535_v20, %s2685_s25  ;;  %v1109_v49 = vadd.f32 %v1101_v14, %v1084_v9  ;;  %v1586_v14 = vmul.f32 %v1584_v58, %v3520_v26  ;;  %v1637_v25 = vmul.f32 %v1636_v44, %v3503_v6 }
 0x227   :  { %v1640_v4 = vmul.f32 %v1636_v44, %v3541_v8 }
 0x228   :  { %v1124_v41 = vpop.permute.xlu1 %1123  ;;  %v1126_v30 = vpop.permute.xlu0 %1125 }
 0x229   :  { %v1134_v33 = vadd.f32 %v1124_v41, %v1107_v24  ;;  %v1135_v35 = vadd.f32 %v1126_v30, %v1108_v31 }
 0x22a   :  { %1547 = vrot.lane.b32.xlu1 %v1536_v13, %s2685_s25  ;;  %1566 = vrot.lane.b32.xlu0 %v1558_v60, %s2685_s25  ;;  %v1588_v60 = vmul.f32 %v1584_v58, %v3541_v8 }
 0x22c   :  { %v1128_v39 = vpop.permute.xlu1 %1127  ;;  %v1147_v43 = vpop.permute.xlu0 %1146 }
 0x22d   :  { %v1158_v42 = vadd.f32 %v1147_v43, %v1133_v45  ;;  %v1136_v5 = vadd.f32 %v1128_v39, %v1109_v49  ;;  %v1639_v43 = vmul.f32 %v1636_v44, %v3522_v15  ;;  %v1713_v49 = vstv %s2598_s14  ;;  %s4081_s14 = sld [smem:[#allocation4 + $0x5d]] }
 0x22e   :  { %1568 = vrot.lane.b32.xlu1 %v1559_v38, %s2685_s25  ;;  %1570 = vrot.lane.b32.xlu0 %v1560_v23, %s2685_s25  ;;  %v1661_v38 = vstv %s2596_s12  ;;  %s4036_s12 = sld [smem:[#allocation4 + $0x54]] }
 0x22f   :  { %v1173_v37 = vadd.f32 %v1169_v47, %v1158_v42  ;;  %v1638_v47 = vmul.f32 %v1636_v44, %v3520_v26  ;;  %v1662_v24 = vmul.f32 %v1661_v38, %v3543_v52  ;;  %v1664_v9 = vmul.f32 %v1661_v38, %v3559_v32 }
 0x230   :  { %v1149_v22 = vpop.permute.xlu1 %1148  ;;  %v1151_v18 = vpop.permute.xlu0 %1150 }
 0x231   :  { %v3584_v40 = vadd.f32 %v1182_v63, %v1173_v37  ;;  %v1159_v54 = vadd.f32 %v1149_v22, %v1134_v33  ;;  %v1160_v20 = vadd.f32 %v1151_v18, %v1135_v35  ;;  %v1663_v63 = vmul.f32 %v1661_v38, %v3557_v7 }
 0x232   :  { %1572 = vrot.lane.b32.xlu1 %v1561_v59, %s2685_s25  ;;  %1593 = vrot.lane.b32.xlu0 %v1585_v0, %s2686_s27  ;;  %v1688_v33 = vstv %s2597_s13  ;;  %s4045_s13 = sld [smem:[#allocation4 + $0x2c]] }
 0x233   :  { %v1174_v48 = vadd.f32 %v1170_v53, %v1159_v54  ;;  %v1175_v36 = vadd.f32 %v1171_v1, %v1160_v20  ;;  %v1665_v53 = vmul.f32 %v1661_v38, %v3574_v11  ;;  %v1689_v22 = vmul.f32 %v1688_v33, %v3503_v6 }
 0x234   :  { %v1153_v46 = vpop.permute.xlu1 %1152  ;;  %v3590_v27 = vpop.permute.xlu0 %1201  ;;  %v1690_v59 = vmul.f32 %v1688_v33, %v3520_v26  ;;  %v1691_v0 = vmul.f32 %v1688_v33, %v3522_v15 }
 0x235   :  { %v3595_v3 = vadd.f32 %v1183_v12, %v1174_v48  ;;  %v3597_v16 = vadd.f32 %v1184_v55, %v1175_v36  ;;  %v1161_v29 = vadd.f32 %v1153_v46, %v1136_v5  ;;  %v1692_v12 = vmul.f32 %v1688_v33, %v3541_v8 }
 0x236   :  { %1595 = vrot.lane.b32.xlu1 %v1586_v14, %s2686_s27  ;;  %1597 = vrot.lane.b32.xlu0 %v1587_v62, %s2686_s27  ;;  %v1714_v5 = vmul.f32 %v1713_v49, %v3543_v52  ;;  %v1715_v36 = vmul.f32 %v1713_v49, %v3557_v7  ;;  %v1716_v46 = vmul.f32 %v1713_v49, %v3559_v32  ;;  %v1740_v14 = vstv %s2599_s15  ;;  %s2624_s15 = sld [smem:[#allocation4 + $0x5e]] }
 0x237   :  { %v1176_v41 = vadd.f32 %v1172_v10, %v1161_v29  ;;  %v1717_v10 = vmul.f32 %v1713_v49, %v3574_v11  ;;  %v1741_v29 = vmul.f32 %v1740_v14, %v3503_v6 }
 0x238   :  { %v3603_v30 = vpop.permute.xlu1 %1203  ;;  %v3605_v13 = vpop.permute.xlu0 %1205 }
 0x239   :  { %v3609_v56 = vadd.f32 %v1185_v50, %v1176_v41 }
 0x23a   :  { %1599 = vrot.lane.b32.xlu1 %v1588_v60, %s2686_s27  ;;  %1618 = vrot.lane.b32.xlu0 %v1610_v2, %s2686_s27  ;;  %v1742_v60 = vmul.f32 %v1740_v14, %v3520_v26  ;;  %v1743_v2 = vmul.f32 %v1740_v14, %v3522_v15 }
 0x23c   :  { %v3613_v28 = vpop.permute.xlu1 %1207  ;;  %v3615_v34 = vpop.permute.xlu0 %1226 }
 0x23e   :  { %1620 = vrot.lane.b32.xlu1 %v1611_v61, %s2686_s27  ;;  %1622 = vrot.lane.b32.xlu0 %v1612_v21, %s2686_s27  ;;  %v1765_v61 = vstv %s2600_s16  ;;  %s2625_s16 = sld [smem:[#allocation4 + $0x2e]] }
 0x23f   :  { %v1767_v38 = vmul.f32 %v1765_v61, %v3557_v7  ;;  %v1769_v33 = vmul.f32 %v1765_v61, %v3574_v11 }
 0x240   :  { %v3621_v57 = vpop.permute.xlu1 %1228  ;;  %v3623_v17 = vpop.permute.xlu0 %1230 }
 0x242   :  { %1624 = vrot.lane.b32.xlu1 %v1613_v51, %s2686_s27  ;;  %1645 = vrot.lane.b32.xlu0 %v1637_v25, %s2687_s29  ;;  %v1744_v51 = vmul.f32 %v1740_v14, %v3541_v8  ;;  %v1766_v25 = vmul.f32 %v1765_v61, %v3543_v52 }
 0x244   :  { %v3629_v45 = vpop.permute.xlu1 %1232  ;;  %v3631_v39 = vpop.permute.xlu0 %1253 }
 0x246   :  { %1647 = vrot.lane.b32.xlu1 %v1638_v47, %s2687_s29  ;;  %1649 = vrot.lane.b32.xlu0 %v1639_v43, %s2687_s29 }
 0x248   :  { %v3637_v23 = vpop.permute.xlu1 %1255  ;;  %v3639_v58 = vpop.permute.xlu0 %1257 }
 0x24a   :  { %1651 = vrot.lane.b32.xlu1 %v1640_v4, %s2687_s29  ;;  %1670 = vrot.lane.b32.xlu0 %v1662_v24, %s2687_s29  ;;  %v1768_v4 = vmul.f32 %v1765_v61, %v3559_v32  ;;  %v1792_v24 = vstv %s2601_s0  ;;  %s2627_s0 = sld [smem:[#allocation4 + $0x2f]] }
 0x24b   :  { %v1795_v49 = vmul.f32 %v1792_v24, %v3522_v15  ;;  %v1796_v14 = vmul.f32 %v1792_v24, %v3541_v8 }
 0x24c   :  { %v3645_v31 = vpop.permute.xlu1 %1259  ;;  %v3647_v42 = vpop.permute.xlu0 %1278 }
 0x24e   :  { %1672 = vrot.lane.b32.xlu1 %v1663_v63, %s2687_s29  ;;  %1674 = vrot.lane.b32.xlu0 %v1664_v9, %s2687_s29 }
 0x250   :  { %v3653_v35 = vpop.permute.xlu1 %1280  ;;  %v3655_v37 = vpop.permute.xlu0 %1282 }
 0x252   :  { %1676 = vrot.lane.b32.xlu1 %v1665_v53, %s2687_s29  ;;  %1697 = vrot.lane.b32.xlu0 %v1689_v22, %s2688_s3  ;;  %v1793_v53 = vmul.f32 %v1792_v24, %v3503_v6 }
 0x254   :  { %v3661_v1 = vpop.permute.xlu1 %1284  ;;  %v3663_v18 = vpop.permute.xlu0 %1305 }
 0x256   :  { %1699 = vrot.lane.b32.xlu1 %v1690_v59, %s2688_s3  ;;  %1701 = vrot.lane.b32.xlu0 %v1691_v0, %s2688_s3  ;;  %v1794_v0 = vmul.f32 %v1792_v24, %v3520_v26 }
 0x258   :  { %v3669_v54 = vpop.permute.xlu1 %1307  ;;  %v3671_v20 = vpop.permute.xlu0 %1309 }
 0x25a   :  { %1703 = vrot.lane.b32.xlu1 %v1692_v12, %s2688_s3  ;;  %1722 = vrot.lane.b32.xlu0 %v1714_v5, %s2688_s3  ;;  %v1817_v12 = vstv %s2602_s17  ;;  %v1213_v5 = vadd.f32 %v3590_v27, %v3584_v40  ;;  %v1215_v40 = vadd.f32 %v3605_v13, %v3597_v16  ;;  %v1872_v16 = vstv %s2605_s18  ;;  %s2629_s17 = sld [smem:[#allocation4 + $0x30]] }
 0x25b   :  { %v1216_v13 = vadd.f32 %v3613_v28, %v3609_v56  ;;  %s2618_s18 = sld [smem:[#allocation4 + $0x5b]] }
 0x25c   :  { %v3677_v48 = vpop.permute.xlu1 %1311  ;;  %v3679_v55 = vpop.permute.xlu0 %1330 }
 0x25e   :  { %1724 = vrot.lane.b32.xlu1 %v1715_v36, %s2688_s3  ;;  %1726 = vrot.lane.b32.xlu0 %v1716_v46, %s2688_s3 }
 0x260   :  { %v3685_v62 = vpop.permute.xlu1 %1332  ;;  %v3687_v19 = vpop.permute.xlu0 %1334 }
 0x262   :  { %1728 = vrot.lane.b32.xlu1 %v1717_v10, %s2688_s3  ;;  %1749 = vrot.lane.b32.xlu0 %v1741_v29, %s2689_s5  ;;  %v1818_v10 = vmul.f32 %v1817_v12, %v3543_v52  ;;  %v1238_v29 = vadd.f32 %v3615_v34, %v1213_v5 }
 0x264   :  { %v3693_v50 = vpop.permute.xlu1 %1336  ;;  %v3695_v41 = vpop.permute.xlu0 %1357  ;;  %v1265_v27 = vadd.f32 %v3631_v39, %v1238_v29  ;;  %v3796_v29 = vld [vmem:[#allocation2 + $0x25] sm:$0xff] }
 0x266   :  { %1751 = vrot.lane.b32.xlu1 %v1742_v60, %s2689_s5  ;;  %1753 = vrot.lane.b32.xlu0 %v1743_v2, %s2689_s5  ;;  %v1214_v60 = vadd.f32 %v3603_v30, %v3595_v3  ;;  %v1290_v3 = vadd.f32 %v3647_v42, %v1265_v27  ;;  %v3758_v30 = vld [vmem:[#allocation2 + $0x5] sm:$0xff]  ;;  %v1821_v42 = vmul.f32 %v1817_v12, %v3574_v11 }
 0x268   :  { %v3701_v21 = vpop.permute.xlu1 %1359  ;;  %v3703_v44 = vpop.permute.xlu0 %1361  ;;  %v1239_v34 = vadd.f32 %v3621_v57, %v1214_v60  ;;  %v1317_v57 = vadd.f32 %v3663_v18, %v1290_v3  ;;  %v3812_v3 = vld [vmem:[#allocation3 + $0xd] sm:$0xff] }
 0x26a   :  { %1755 = vrot.lane.b32.xlu1 %v1744_v51, %s2689_s5  ;;  %1774 = vrot.lane.b32.xlu0 %v1766_v25, %s2689_s5  ;;  %v1819_v51 = vmul.f32 %v1817_v12, %v3557_v7  ;;  %v1820_v25 = vmul.f32 %v1817_v12, %v3559_v32  ;;  %v1266_v39 = vadd.f32 %v3637_v23, %v1239_v34  ;;  %v3775_v23 = vld [vmem:[#allocation2 + $0xd] sm:$0xff] }
 0x26b   :  { %v1342_v28 = vadd.f32 %v3679_v55, %v1317_v57  ;;  %v1874_v12 = vmul.f32 %v1872_v16, %v3775_v23 }
 0x26c   :  { %v3709_v47 = vpop.permute.xlu1 %1363  ;;  %v3711_v43 = vpop.permute.xlu0 %1382 }
 0x26e   :  { %1776 = vrot.lane.b32.xlu1 %v1767_v38, %s2689_s5  ;;  %1778 = vrot.lane.b32.xlu0 %v1768_v4, %s2689_s5  ;;  %v1240_v38 = vadd.f32 %v3623_v17, %v1215_v40 }
 0x270   :  { %v3717_v63 = vpop.permute.xlu1 %1384  ;;  %v3719_v9 = vpop.permute.xlu0 %1386  ;;  %v1267_v4 = vadd.f32 %v3639_v58, %v1240_v38  ;;  %v3777_v58 = vld [vmem:[#allocation2 + $0x1d] sm:$0xff] }
 0x271   :  { %v1875_v5 = vmul.f32 %v1872_v16, %v3777_v58 }
 0x272   :  { %1780 = vrot.lane.b32.xlu1 %v1769_v33, %s2689_s5  ;;  %1801 = vrot.lane.b32.xlu0 %v1793_v53, %s2690_s7  ;;  %v1873_v33 = vmul.f32 %v1872_v16, %v3758_v30  ;;  %v1241_v53 = vadd.f32 %v3629_v45, %v1216_v13  ;;  %v1292_v56 = vadd.f32 %v3655_v37, %v1267_v4 }
 0x273   :  { %v1369_v37 = vadd.f32 %v3695_v41, %v1342_v28  ;;  %v3798_v41 = vld [vmem:[#allocation3 + $0x5] sm:$0xff] }
 0x274   :  { %v3725_v22 = vpop.permute.xlu1 %1388  ;;  %v3727_v59 = vpop.permute.xlu0 %1409  ;;  %v1268_v18 = vadd.f32 %v3645_v31, %v1241_v53 }
 0x276   :  { %1803 = vrot.lane.b32.xlu1 %v1794_v0, %s2690_s7  ;;  %1805 = vrot.lane.b32.xlu0 %v1795_v49, %s2690_s7  ;;  %v1291_v0 = vadd.f32 %v3653_v35, %v1266_v39  ;;  %v1319_v35 = vadd.f32 %v3671_v20, %v1292_v56  ;;  %v1394_v20 = vadd.f32 %v3711_v43, %v1369_v37 }
 0x277   :  { %v1876_v43 = vmul.f32 %v1872_v16, %v3796_v29 }
 0x278   :  { %v3735_v36 = vpop.permute.xlu1 %1411  ;;  %v3737_v46 = vpop.permute.xlu0 %1413  ;;  %v1318_v45 = vadd.f32 %v3669_v54, %v1291_v0  ;;  %v1344_v54 = vadd.f32 %v3687_v19, %v1319_v35 }
 0x27a   :  { %1807 = vrot.lane.b32.xlu1 %v1796_v14, %s2690_s7  ;;  %1826 = vrot.lane.b32.xlu0 %v1818_v10, %s2690_s7  ;;  %v1897_v14 = vstv %s3753_s19  ;;  %v1293_v10 = vadd.f32 %v3661_v1, %v1268_v18  ;;  %v1343_v31 = vadd.f32 %v3685_v62, %v1318_v45  ;;  %v1371_v1 = vadd.f32 %v3703_v44, %v1344_v54  ;;  %v3814_v44 = vld [vmem:[#allocation3 + $0x1d] sm:$0xff] }
 0x27b   :  { %v1421_v62 = vadd.f32 %v3727_v59, %v1394_v20  ;;  %v1521_v59 = vstv %s3781_s20  ;;  %v1899_v4 = vmul.f32 %v1897_v14, %v3812_v3  ;;  %v1900_v57 = vmul.f32 %v1897_v14, %v3814_v44 }
 0x27c   :  { %v3749_v2 = vpop.permute.xlu1 %1415  ;;  %v1435_v61 = vpop.permute.xlu0 %1434  ;;  %v1320_v60 = vadd.f32 %v3677_v48, %v1293_v10  ;;  %v1370_v40 = vadd.f32 %v3701_v21, %v1343_v31  ;;  %v1396_v48 = vadd.f32 %v3719_v9, %v1371_v1 }
 0x27d   :  { %v1446_v21 = vadd.f32 %v1435_v61, %v1421_v62 }
 0x27e   :  { %1828 = vrot.lane.b32.xlu1 %v1819_v51, %s2690_s7  ;;  %1830 = vrot.lane.b32.xlu0 %v1820_v25, %s2690_s7  ;;  %v1898_v51 = vmul.f32 %v1897_v14, %v3798_v41  ;;  %v1508_v25 = vstv %s3769_s1  ;;  %v1345_v34 = vadd.f32 %v3693_v50, %v1320_v60  ;;  %v1395_v38 = vadd.f32 %v3717_v63, %v1370_v40 }
 0x27f   :  { %v1423_v50 = vadd.f32 %v3737_v46, %v1396_v48  ;;  %v1509_v9 = vmul.f32 %v1508_v25, %v3503_v6  ;;  %v1522_v46 = vmul.f32 %v1521_v59, %v3543_v52  ;;  %v1510_v45 = vmul.f32 %v1508_v25, %v3520_v26 }
 0x280   :  { %v1437_v24 = vpop.permute.xlu1 %1436  ;;  %v1439_v17 = vpop.permute.xlu0 %1438  ;;  %v1372_v16 = vadd.f32 %v3709_v47, %v1345_v34  ;;  %v1422_v13 = vadd.f32 %v3735_v36, %v1395_v38  ;;  %v3829_v36 = vld [vmem:[#allocation3 + $0x25] sm:$0xff]  ;;  %v1949_v60 = vstv %s3826_s22  ;;  %v1512_v1 = vmul.f32 %v1508_v25, %v3541_v8 }
 0x281   :  { %v1448_v47 = vadd.f32 %v1439_v17, %v1423_v50  ;;  %v1901_v17 = vmul.f32 %v1897_v14, %v3829_v36  ;;  %v1950_v34 = vmul.f32 %v1949_v60, %v3798_v41  ;;  %v1952_v48 = vmul.f32 %v1949_v60, %v3814_v44 }
 0x282   :  { %1832 = vrot.lane.b32.xlu1 %v1821_v42, %s2690_s7  ;;  %1881 = vrot.lane.b32.xlu0 %v1873_v33, %s2685_s25  ;;  %v1924_v42 = vstv %s3790_s21  ;;  %v1397_v33 = vadd.f32 %v3725_v22, %v1372_v16  ;;  %v1447_v53 = vadd.f32 %v1437_v24, %v1422_v13  ;;  %v1511_v22 = vmul.f32 %v1508_v25, %v3522_v15 }
 0x283   :  { %v1925_v37 = vmul.f32 %v1924_v42, %v3758_v30  ;;  %v1524_v15 = vmul.f32 %v1521_v59, %v3559_v32  ;;  %v1927_v20 = vmul.f32 %v1924_v42, %v3777_v58  ;;  %v1525_v32 = vmul.f32 %v1521_v59, %v3574_v11 }
 0x284   :  { %v1441_v49 = vpop.permute.xlu1 %1440  ;;  %v1462_v55 = vpop.permute.xlu0 %1461  ;;  %v1424_v6 = vadd.f32 %v3749_v2, %v1397_v33  ;;  %v1523_v2 = vmul.f32 %v1521_v59, %v3557_v7  ;;  %v1951_v11 = vmul.f32 %v1949_v60, %v3812_v3  ;;  %v1953_v13 = vmul.f32 %v1949_v60, %v3829_v36 }
 0x285   :  { %v1473_v63 = vadd.f32 %v1462_v55, %v1446_v21  ;;  %v1976_v21 = vstv %s2609_s23 }
 0x286   :  { %1883 = vrot.lane.b32.xlu1 %v1874_v12, %s2685_s25  ;;  %1885 = vrot.lane.b32.xlu0 %v1875_v5, %s2685_s25  ;;  %v1449_v52 = vadd.f32 %v1441_v49, %v1424_v6  ;;  %v1926_v49 = vmul.f32 %v1924_v42, %v3775_v23  ;;  %v1977_v50 = vmul.f32 %v1976_v21, %v3758_v30 }
 0x287   :  { %v1980_v33 = vmul.f32 %v1976_v21, %v3796_v29 }
 0x288   :  { %v1464_v19 = vpop.permute.xlu1 %1463  ;;  %v1466_v27 = vpop.permute.xlu0 %1465 }
 0x289   :  { %v1474_v56 = vadd.f32 %v1464_v19, %v1447_v53  ;;  %v1475_v28 = vadd.f32 %v1466_v27, %v1448_v47 }
 0x28a   :  { %1887 = vrot.lane.b32.xlu1 %v1876_v43, %s2685_s25  ;;  %1906 = vrot.lane.b32.xlu0 %v1898_v51, %s2685_s25  ;;  %v1928_v51 = vmul.f32 %v1924_v42, %v3796_v29 }
 0x28c   :  { %v1468_v39 = vpop.permute.xlu1 %1467  ;;  %v1487_v61 = vpop.permute.xlu0 %1486 }
 0x28d   :  { %v1498_v0 = vadd.f32 %v1487_v61, %v1473_v63  ;;  %v1476_v26 = vadd.f32 %v1468_v39, %v1449_v52  ;;  %v1979_v61 = vmul.f32 %v1976_v21, %v3777_v58  ;;  %v2053_v52 = vstv %s2612_s28 }
 0x28e   :  { %1908 = vrot.lane.b32.xlu1 %v1899_v4, %s2685_s25  ;;  %1910 = vrot.lane.b32.xlu0 %v1900_v57, %s2685_s25  ;;  %v2001_v4 = vstv %s2610_s24 }
 0x28f   :  { %v1513_v18 = vadd.f32 %v1509_v9, %v1498_v0  ;;  %v1978_v9 = vmul.f32 %v1976_v21, %v3775_v23  ;;  %v2002_v53 = vmul.f32 %v2001_v4, %v3798_v41  ;;  %v2004_v6 = vmul.f32 %v2001_v4, %v3814_v44 }
 0x290   :  { %v1489_v35 = vpop.permute.xlu1 %1488  ;;  %v1491_v24 = vpop.permute.xlu0 %1490 }
 0x291   :  { %v3839_v55 = vadd.f32 %v1522_v46, %v1513_v18  ;;  %v1499_v12 = vadd.f32 %v1489_v35, %v1474_v56  ;;  %v1500_v5 = vadd.f32 %v1491_v24, %v1475_v28  ;;  %v2003_v46 = vmul.f32 %v2001_v4, %v3812_v3 }
 0x292   :  { %1912 = vrot.lane.b32.xlu1 %v1901_v17, %s2685_s25  ;;  %1933 = vrot.lane.b32.xlu0 %v1925_v37, %s2686_s27  ;;  %v2028_v56 = vstv %s2611_s26 }
 0x293   :  { %v1514_v10 = vadd.f32 %v1510_v45, %v1499_v12  ;;  %v1515_v31 = vadd.f32 %v1511_v22, %v1500_v5  ;;  %v2005_v45 = vmul.f32 %v2001_v4, %v3829_v36  ;;  %v2029_v35 = vmul.f32 %v2028_v56, %v3758_v30 }
 0x294   :  { %v1493_v14 = vpop.permute.xlu1 %1492  ;;  %v3845_v54 = vpop.permute.xlu0 %1541  ;;  %v2030_v17 = vmul.f32 %v2028_v56, %v3775_v23  ;;  %v2031_v37 = vmul.f32 %v2028_v56, %v3777_v58 }
 0x295   :  { %v3850_v40 = vadd.f32 %v1523_v2, %v1514_v10  ;;  %v3852_v7 = vadd.f32 %v1524_v15, %v1515_v31  ;;  %v1501_v62 = vadd.f32 %v1493_v14, %v1476_v26  ;;  %v2032_v2 = vmul.f32 %v2028_v56, %v3796_v29 }
 0x296   :  { %1935 = vrot.lane.b32.xlu1 %v1926_v49, %s2686_s27  ;;  %1937 = vrot.lane.b32.xlu0 %v1927_v20, %s2686_s27  ;;  %v2054_v26 = vmul.f32 %v2053_v52, %v3798_v41  ;;  %v2055_v31 = vmul.f32 %v2053_v52, %v3812_v3  ;;  %v2056_v14 = vmul.f32 %v2053_v52, %v3814_v44  ;;  %v2080_v49 = vstv %s2613_s30 }
 0x297   :  { %v1516_v19 = vadd.f32 %v1512_v1, %v1501_v62  ;;  %v2057_v1 = vmul.f32 %v2053_v52, %v3829_v36  ;;  %v2081_v62 = vmul.f32 %v2080_v49, %v3758_v30 }
 0x298   :  { %v3858_v27 = vpop.permute.xlu1 %1543  ;;  %v3860_v43 = vpop.permute.xlu0 %1545 }
 0x299   :  { %v3864_v38 = vadd.f32 %v1525_v32, %v1516_v19 }
 0x29a   :  { %1939 = vrot.lane.b32.xlu1 %v1928_v51, %s2686_s27  ;;  %1958 = vrot.lane.b32.xlu0 %v1950_v34, %s2686_s27  ;;  %v2082_v51 = vmul.f32 %v2080_v49, %v3775_v23  ;;  %v2083_v34 = vmul.f32 %v2080_v49, %v3777_v58 }
 0x29c   :  { %v3868_v8 = vpop.permute.xlu1 %1547  ;;  %v3870_v25 = vpop.permute.xlu0 %1566 }
 0x29e   :  { %1960 = vrot.lane.b32.xlu1 %v1951_v11, %s2686_s27  ;;  %1962 = vrot.lane.b32.xlu0 %v1952_v48, %s2686_s27  ;;  %v2105_v11 = vstv %s2614_s4 }
 0x29f   :  { %v2107_v4 = vmul.f32 %v2105_v11, %v3812_v3  ;;  %v2109_v56 = vmul.f32 %v2105_v11, %v3829_v36 }
 0x2a0   :  { %v3876_v59 = vpop.permute.xlu1 %1568  ;;  %v3878_v16 = vpop.permute.xlu0 %1570 }
 0x2a2   :  { %1964 = vrot.lane.b32.xlu1 %v1953_v13, %s2686_s27  ;;  %1985 = vrot.lane.b32.xlu0 %v1977_v50, %s2687_s29  ;;  %v2084_v13 = vmul.f32 %v2080_v49, %v3796_v29  ;;  %v2106_v50 = vmul.f32 %v2105_v11, %v3798_v41 }
 0x2a4   :  { %v3884_v63 = vpop.permute.xlu1 %1572  ;;  %v3886_v39 = vpop.permute.xlu0 %1593 }
 0x2a6   :  { %1987 = vrot.lane.b32.xlu1 %v1978_v9, %s2687_s29  ;;  %1989 = vrot.lane.b32.xlu0 %v1979_v61, %s2687_s29 }
 0x2a8   :  { %v3892_v57 = vpop.permute.xlu1 %1595  ;;  %v3894_v42 = vpop.permute.xlu0 %1597 }
 0x2aa   :  { %1991 = vrot.lane.b32.xlu1 %v1980_v33, %s2687_s29  ;;  %2010 = vrot.lane.b32.xlu0 %v2002_v53, %s2687_s29  ;;  %v2108_v33 = vmul.f32 %v2105_v11, %v3814_v44  ;;  %v2132_v53 = vstv %s2615_s6 }
 0x2ab   :  { %v2135_v52 = vmul.f32 %v2132_v53, %v3777_v58  ;;  %v2136_v49 = vmul.f32 %v2132_v53, %v3796_v29 }
 0x2ac   :  { %v3900_v47 = vpop.permute.xlu1 %1599  ;;  %v3902_v0 = vpop.permute.xlu0 %1618 }
 0x2ae   :  { %2012 = vrot.lane.b32.xlu1 %v2003_v46, %s2687_s29  ;;  %2014 = vrot.lane.b32.xlu0 %v2004_v6, %s2687_s29 }
 0x2b0   :  { %v3908_v28 = vpop.permute.xlu1 %1620  ;;  %v3910_v18 = vpop.permute.xlu0 %1622 }
 0x2b2   :  { %2016 = vrot.lane.b32.xlu1 %v2005_v45, %s2687_s29  ;;  %2037 = vrot.lane.b32.xlu0 %v2029_v35, %s2688_s3  ;;  %v2133_v45 = vmul.f32 %v2132_v53, %v3758_v30 }
 0x2b4   :  { %v3916_v22 = vpop.permute.xlu1 %1624  ;;  %v3918_v24 = vpop.permute.xlu0 %1645 }
 0x2b6   :  { %2039 = vrot.lane.b32.xlu1 %v2030_v17, %s2688_s3  ;;  %2041 = vrot.lane.b32.xlu0 %v2031_v37, %s2688_s3  ;;  %v2134_v37 = vmul.f32 %v2132_v53, %v3775_v23 }
 0x2b8   :  { %v3924_v12 = vpop.permute.xlu1 %1647  ;;  %v3926_v5 = vpop.permute.xlu0 %1649 }
 0x2ba   :  { %2043 = vrot.lane.b32.xlu1 %v2032_v2, %s2688_s3  ;;  %2062 = vrot.lane.b32.xlu0 %v2054_v26, %s2688_s3  ;;  %v2157_v2 = vstv %s2616_s8  ;;  %v1553_v26 = vadd.f32 %v3845_v54, %v3839_v55  ;;  %v1555_v55 = vadd.f32 %v3860_v43, %v3852_v7  ;;  %v2212_v7 = vstv %s2619_s9 }
 0x2bb   :  { %v1556_v43 = vadd.f32 %v3868_v8, %v3864_v38 }
 0x2bc   :  { %v3932_v10 = vpop.permute.xlu1 %1651  ;;  %v3934_v15 = vpop.permute.xlu0 %1670 }
 0x2be   :  { %2064 = vrot.lane.b32.xlu1 %v2055_v31, %s2688_s3  ;;  %2066 = vrot.lane.b32.xlu0 %v2056_v14, %s2688_s3 }
 0x2c0   :  { %v3940_v20 = vpop.permute.xlu1 %1672  ;;  %v3942_v60 = vpop.permute.xlu0 %1674 }
 0x2c2   :  { %2068 = vrot.lane.b32.xlu1 %v2057_v1, %s2688_s3  ;;  %2089 = vrot.lane.b32.xlu0 %v2081_v62, %s2689_s5  ;;  %v2158_v1 = vmul.f32 %v2157_v2, %v3798_v41  ;;  %v1578_v62 = vadd.f32 %v3870_v25, %v1553_v26 }
 0x2c4   :  { %v3948_v32 = vpop.permute.xlu1 %1676  ;;  %v3950_v19 = vpop.permute.xlu0 %1697  ;;  %v1605_v54 = vadd.f32 %v3886_v39, %v1578_v62  ;;  %v4051_v62 = vld [vmem:[#allocation2 + $0x26] sm:$0xff] }
 0x2c6   :  { %2091 = vrot.lane.b32.xlu1 %v2082_v51, %s2689_s5  ;;  %2093 = vrot.lane.b32.xlu0 %v2083_v34, %s2689_s5  ;;  %v1554_v51 = vadd.f32 %v3858_v27, %v3850_v40  ;;  %v1630_v40 = vadd.f32 %v3902_v0, %v1605_v54  ;;  %v4013_v27 = vld [vmem:[#allocation2 + $0x6] sm:$0xff]  ;;  %v2161_v0 = vmul.f32 %v2157_v2, %v3829_v36 }
 0x2c8   :  { %v3956_v48 = vpop.permute.xlu1 %1699  ;;  %v3958_v21 = vpop.permute.xlu0 %1701  ;;  %v1579_v25 = vadd.f32 %v3876_v59, %v1554_v51  ;;  %v1657_v59 = vadd.f32 %v3918_v24, %v1630_v40  ;;  %v4067_v40 = vld [vmem:[#allocation3 + $0xe] sm:$0xff] }
 0x2ca   :  { %2095 = vrot.lane.b32.xlu1 %v2084_v13, %s2689_s5  ;;  %2114 = vrot.lane.b32.xlu0 %v2106_v50, %s2689_s5  ;;  %v2159_v13 = vmul.f32 %v2157_v2, %v3812_v3  ;;  %v2160_v50 = vmul.f32 %v2157_v2, %v3814_v44  ;;  %v1606_v39 = vadd.f32 %v3892_v57, %v1579_v25  ;;  %v4030_v57 = vld [vmem:[#allocation2 + $0xe] sm:$0xff] }
 0x2cb   :  { %v1682_v8 = vadd.f32 %v3934_v15, %v1657_v59  ;;  %v2214_v2 = vmul.f32 %v2212_v7, %v4030_v57 }
 0x2cc   :  { %v3964_v9 = vpop.permute.xlu1 %1703  ;;  %v3966_v61 = vpop.permute.xlu0 %1722 }
 0x2ce   :  { %2116 = vrot.lane.b32.xlu1 %v2107_v4, %s2689_s5  ;;  %2118 = vrot.lane.b32.xlu0 %v2108_v33, %s2689_s5  ;;  %v1580_v4 = vadd.f32 %v3878_v16, %v1555_v55 }
 0x2d0   :  { %v3972_v46 = vpop.permute.xlu1 %1724  ;;  %v3974_v6 = vpop.permute.xlu0 %1726  ;;  %v1607_v33 = vadd.f32 %v3894_v42, %v1580_v4  ;;  %v4032_v42 = vld [vmem:[#allocation2 + $0x1e] sm:$0xff] }
 0x2d1   :  { %v2215_v26 = vmul.f32 %v2212_v7, %v4032_v42 }
 0x2d2   :  { %2120 = vrot.lane.b32.xlu1 %v2109_v56, %s2689_s5  ;;  %2141 = vrot.lane.b32.xlu0 %v2133_v45, %s2690_s7  ;;  %v2213_v56 = vmul.f32 %v2212_v7, %v4013_v27  ;;  %v1581_v45 = vadd.f32 %v3884_v63, %v1556_v43  ;;  %v1632_v38 = vadd.f32 %v3910_v18, %v1607_v33 }
 0x2d3   :  { %v1709_v18 = vadd.f32 %v3950_v19, %v1682_v8  ;;  %v4053_v19 = vld [vmem:[#allocation3 + $0x6] sm:$0xff] }
 0x2d4   :  { %v3980_v35 = vpop.permute.xlu1 %1728  ;;  %v3982_v17 = vpop.permute.xlu0 %1749  ;;  %v1608_v24 = vadd.f32 %v3900_v47, %v1581_v45 }
 0x2d6   :  { %2143 = vrot.lane.b32.xlu1 %v2134_v37, %s2690_s7  ;;  %2145 = vrot.lane.b32.xlu0 %v2135_v52, %s2690_s7  ;;  %v1631_v37 = vadd.f32 %v3908_v28, %v1606_v39  ;;  %v1659_v28 = vadd.f32 %v3926_v5, %v1632_v38  ;;  %v1734_v5 = vadd.f32 %v3966_v61, %v1709_v18 }
 0x2d7   :  { %v2216_v61 = vmul.f32 %v2212_v7, %v4051_v62 }
 0x2d8   :  { %v3990_v31 = vpop.permute.xlu1 %1751  ;;  %v3992_v14 = vpop.permute.xlu0 %1753  ;;  %v1658_v63 = vadd.f32 %v3924_v12, %v1631_v37  ;;  %v1684_v12 = vadd.f32 %v3942_v60, %v1659_v28 }
 0x2da   :  { %2147 = vrot.lane.b32.xlu1 %v2136_v49, %s2690_s7  ;;  %2166 = vrot.lane.b32.xlu0 %v2158_v1, %s2690_s7  ;;  %v2237_v49 = vstv %s4008_s10  ;;  %v1633_v1 = vadd.f32 %v3916_v22, %v1608_v24  ;;  %v1683_v47 = vadd.f32 %v3940_v20, %v1658_v63  ;;  %v1711_v22 = vadd.f32 %v3958_v21, %v1684_v12  ;;  %v4069_v21 = vld [vmem:[#allocation3 + $0x1e] sm:$0xff] }
 0x2db   :  { %v1761_v20 = vadd.f32 %v3982_v17, %v1734_v5  ;;  %v1861_v17 = vstv %s4036_s12  ;;  %v2239_v33 = vmul.f32 %v2237_v49, %v4067_v40  ;;  %v2240_v59 = vmul.f32 %v2237_v49, %v4069_v21 }
 0x2dc   :  { %v4004_v34 = vpop.permute.xlu1 %1755  ;;  %v1775_v11 = vpop.permute.xlu0 %1774  ;;  %v1660_v51 = vadd.f32 %v3932_v10, %v1633_v1  ;;  %v1710_v55 = vadd.f32 %v3956_v48, %v1683_v47  ;;  %v1736_v10 = vadd.f32 %v3974_v6, %v1711_v22 }
 0x2dd   :  { %v1786_v48 = vadd.f32 %v1775_v11, %v1761_v20 }
 0x2de   :  { %2168 = vrot.lane.b32.xlu1 %v2159_v13, %s2690_s7  ;;  %2170 = vrot.lane.b32.xlu0 %v2160_v50, %s2690_s7  ;;  %v2238_v13 = vmul.f32 %v2237_v49, %v4053_v19  ;;  %v1848_v50 = vstv %s4024_s11  ;;  %v1685_v25 = vadd.f32 %v3948_v32, %v1660_v51  ;;  %v1735_v4 = vadd.f32 %v3972_v46, %v1710_v55 }
 0x2df   :  { %v1763_v32 = vadd.f32 %v3992_v14, %v1736_v10  ;;  %v1849_v6 = vmul.f32 %v1848_v50, %v3758_v30  ;;  %v1862_v30 = vmul.f32 %v1861_v17, %v3798_v41  ;;  %v1850_v63 = vmul.f32 %v1848_v50, %v3775_v23 }
 0x2e0   :  { %v1777_v53 = vpop.permute.xlu1 %1776  ;;  %v1779_v16 = vpop.permute.xlu0 %1778  ;;  %v1712_v7 = vadd.f32 %v3964_v9, %v1685_v25  ;;  %v1762_v43 = vadd.f32 %v3990_v31, %v1735_v4  ;;  %v4084_v31 = vld [vmem:[#allocation3 + $0x26] sm:$0xff]  ;;  %v2289_v55 = vstv %s4081_s14 }
 0x2e1   :  { %v1788_v9 = vadd.f32 %v1779_v16, %v1763_v32  ;;  %v2241_v16 = vmul.f32 %v2237_v49, %v4084_v31  ;;  %v1852_v49 = vmul.f32 %v1848_v50, %v3796_v29  ;;  %v2292_v32 = vmul.f32 %v2289_v55, %v4069_v21 }
 0x2e2   :  { %2172 = vrot.lane.b32.xlu1 %v2161_v0, %s2690_s7  ;;  %2221 = vrot.lane.b32.xlu0 %v2213_v56, %s2685_s25  ;;  %v2264_v0 = vstv %s4045_s13  ;;  %v1737_v56 = vadd.f32 %v3980_v35, %v1712_v7  ;;  %v1787_v45 = vadd.f32 %v1777_v53, %v1762_v43  ;;  %v1851_v35 = vmul.f32 %v1848_v50, %v3777_v58 }
 0x2e3   :  { %v2265_v18 = vmul.f32 %v2264_v0, %v4013_v27  ;;  %v1864_v58 = vmul.f32 %v1861_v17, %v3814_v44  ;;  %v2267_v51 = vmul.f32 %v2264_v0, %v4032_v42  ;;  %v1865_v44 = vmul.f32 %v1861_v17, %v3829_v36 }
 0x2e4   :  { %v1781_v52 = vpop.permute.xlu1 %1780  ;;  %v1802_v15 = vpop.permute.xlu0 %1801  ;;  %v1764_v14 = vadd.f32 %v4004_v34, %v1737_v56  ;;  %v1863_v34 = vmul.f32 %v1861_v17, %v3812_v3  ;;  %v2290_v50 = vmul.f32 %v2289_v55, %v4053_v19  ;;  %v2291_v43 = vmul.f32 %v2289_v55, %v4067_v40 }
 0x2e5   :  { %v1813_v46 = vadd.f32 %v1802_v15, %v1786_v48 }
 0x2e6   :  { %2223 = vrot.lane.b32.xlu1 %v2214_v2, %s2685_s25  ;;  %2225 = vrot.lane.b32.xlu0 %v2215_v26, %s2685_s25  ;;  %v1789_v15 = vadd.f32 %v1781_v52, %v1764_v14  ;;  %v2266_v52 = vmul.f32 %v2264_v0, %v4030_v57 }
 0x2e8   :  { %v1804_v60 = vpop.permute.xlu1 %1803  ;;  %v1806_v54 = vpop.permute.xlu0 %1805 }
 0x2e9   :  { %v1814_v38 = vadd.f32 %v1804_v60, %v1787_v45  ;;  %v1815_v8 = vadd.f32 %v1806_v54, %v1788_v9 }
 0x2ea   :  { %2227 = vrot.lane.b32.xlu1 %v2216_v61, %s2685_s25  ;;  %2246 = vrot.lane.b32.xlu0 %v2238_v13, %s2685_s25  ;;  %v2268_v13 = vmul.f32 %v2264_v0, %v4051_v62 }
 0x2ec   :  { %v1808_v39 = vpop.permute.xlu1 %1807  ;;  %v1827_v11 = vpop.permute.xlu0 %1826 }
 0x2ed   :  { %v1838_v37 = vadd.f32 %v1827_v11, %v1813_v46  ;;  %v1816_v23 = vadd.f32 %v1808_v39, %v1789_v15  ;;  %v2293_v11 = vmul.f32 %v2289_v55, %v4084_v31 }
 0x2ee   :  { %2248 = vrot.lane.b32.xlu1 %v2239_v33, %s2685_s25  ;;  %2250 = vrot.lane.b32.xlu0 %v2240_v59, %s2685_s25 }
 0x2ef   :  { %v1853_v24 = vadd.f32 %v1849_v6, %v1838_v37 }
 0x2f0   :  { %v1829_v28 = vpop.permute.xlu1 %1828  ;;  %v1831_v53 = vpop.permute.xlu0 %1830 }
 0x2f1   :  { %v1839_v2 = vadd.f32 %v1829_v28, %v1814_v38  ;;  %v1840_v26 = vadd.f32 %v1831_v53, %v1815_v8  ;;  %v1866_v41 = vadd.f32 %v1862_v30, %v1853_v24  ;;  %v2341_v38 = vstv %s2624_s15 }
 0x2f2   :  { %2252 = vrot.lane.b32.xlu1 %v2241_v16, %s2685_s25  ;;  %2273 = vrot.lane.b32.xlu0 %v2265_v18, %s2686_s27  ;;  %s2623_s25 = sld [smem:[#allocation4 + $0x2d]]  ;;  %v2342_v28 = vmul.f32 %v2341_v38, %v4053_v19  ;;  %v2343_v15 = vmul.f32 %v2341_v38, %v4067_v40 }
 0x2f3   :  { %v1854_v1 = vadd.f32 %v1850_v63, %v1839_v2  ;;  %v1855_v47 = vadd.f32 %v1851_v35, %v1840_v26  ;;  %v2344_v2 = vmul.f32 %v2341_v38, %v4069_v21 }
 0x2f4   :  { %v1833_v12 = vpop.permute.xlu1 %1832  ;;  %v1882_v5 = vpop.permute.xlu0 %1881 }
 0x2f5   :  { %v1841_v22 = vadd.f32 %v1833_v12, %v1816_v23  ;;  %v1893_v20 = vadd.f32 %v1882_v5, %v1866_v41  ;;  %v1867_v60 = vadd.f32 %v1863_v34, %v1854_v1  ;;  %v1868_v54 = vadd.f32 %v1864_v58, %v1855_v47 }
 0x2f6   :  { %2275 = vrot.lane.b32.xlu1 %v2266_v52, %s2686_s27  ;;  %2277 = vrot.lane.b32.xlu0 %v2267_v51, %s2686_s27  ;;  %v2368_v34 = vstv %s2625_s16  ;;  %v2345_v47 = vmul.f32 %v2341_v38, %v4084_v31 }
 0x2f7   :  { %v1856_v3 = vadd.f32 %v1852_v49, %v1841_v22  ;;  %v2369_v58 = vmul.f32 %v2368_v34, %v4013_v27  ;;  %v2370_v51 = vmul.f32 %v2368_v34, %v4030_v57  ;;  %v2371_v55 = vmul.f32 %v2368_v34, %v4032_v42 }
 0x2f8   :  { %v1884_v29 = vpop.permute.xlu1 %1883  ;;  %v1886_v61 = vpop.permute.xlu0 %1885  ;;  %v2316_v46 = vstv %s2623_s25 }
 0x2f9   :  { %v1894_v25 = vadd.f32 %v1884_v29, %v1867_v60  ;;  %v1895_v4 = vadd.f32 %v1886_v61, %v1868_v54  ;;  %v1869_v10 = vadd.f32 %v1865_v44, %v1856_v3  ;;  %v2317_v33 = vmul.f32 %v2316_v46, %v4013_v27 }
 0x2fa   :  { %2279 = vrot.lane.b32.xlu1 %v2268_v13, %s2686_s27  ;;  %2298 = vrot.lane.b32.xlu0 %v2290_v50, %s2686_s27  ;;  %v2318_v9 = vmul.f32 %v2316_v46, %v4030_v57  ;;  %v2319_v37 = vmul.f32 %v2316_v46, %v4032_v42  ;;  %v2320_v63 = vmul.f32 %v2316_v46, %v4051_v62 }
 0x2fb   :  { %v2372_v44 = vmul.f32 %v2368_v34, %v4051_v62 }
 0x2fc   :  { %v1888_v48 = vpop.permute.xlu1 %1887  ;;  %v1907_v7 = vpop.permute.xlu0 %1906 }
 0x2fd   :  { %v1896_v36 = vadd.f32 %v1888_v48, %v1869_v10  ;;  %v1918_v17 = vadd.f32 %v1907_v7, %v1893_v20 }
 0x2fe   :  { %2300 = vrot.lane.b32.xlu1 %v2291_v43, %s2686_s27  ;;  %2302 = vrot.lane.b32.xlu0 %v2292_v32, %s2686_s27  ;;  %v2420_v43 = vstv %s2627_s0 }
 0x2ff   :  { %v2421_v46 = vmul.f32 %v2420_v43, %v4013_v27 }
 0x300   :  { %v1909_v39 = vpop.permute.xlu1 %1908  ;;  %v1911_v6 = vpop.permute.xlu0 %1910 }
 0x301   :  { %v1919_v59 = vadd.f32 %v1909_v39, %v1894_v25  ;;  %v1920_v0 = vadd.f32 %v1911_v6, %v1895_v4 }
 0x302   :  { %2304 = vrot.lane.b32.xlu1 %v2293_v11, %s2686_s27  ;;  %2325 = vrot.lane.b32.xlu0 %v2317_v33, %s2687_s29  ;;  %s2626_s27 = sld [smem:[#allocation4 + $0x5f]] }
 0x304   :  { %v1913_v56 = vpop.permute.xlu1 %1912  ;;  %v1934_v45 = vpop.permute.xlu0 %1933 }
 0x305   :  { %v1921_v30 = vadd.f32 %v1913_v56, %v1896_v36  ;;  %v1945_v14 = vadd.f32 %v1934_v45, %v1918_v17 }
 0x306   :  { %2327 = vrot.lane.b32.xlu1 %v2318_v9, %s2687_s29  ;;  %2329 = vrot.lane.b32.xlu0 %v2319_v37, %s2687_s29 }
 0x308   :  { %v1936_v8 = vpop.permute.xlu1 %1935  ;;  %v1938_v24 = vpop.permute.xlu0 %1937  ;;  %v2393_v60 = vstv %s2626_s27 }
 0x309   :  { %v1946_v35 = vadd.f32 %v1936_v8, %v1919_v59  ;;  %v1947_v53 = vadd.f32 %v1938_v24, %v1920_v0  ;;  %v2394_v29 = vmul.f32 %v2393_v60, %v4053_v19  ;;  %v2395_v4 = vmul.f32 %v2393_v60, %v4067_v40 }
 0x30a   :  { %2331 = vrot.lane.b32.xlu1 %v2320_v63, %s2687_s29  ;;  %2350 = vrot.lane.b32.xlu0 %v2342_v28, %s2687_s29  ;;  %v2396_v10 = vmul.f32 %v2393_v60, %v4069_v21  ;;  %v2397_v17 = vmul.f32 %v2393_v60, %v4084_v31  ;;  %v2422_v59 = vmul.f32 %v2420_v43, %v4030_v57 }
 0x30b   :  { %v2423_v0 = vmul.f32 %v2420_v43, %v4032_v42 }
 0x30c   :  { %v1940_v16 = vpop.permute.xlu1 %1939  ;;  %v1959_v18 = vpop.permute.xlu0 %1958 }
 0x30d   :  { %v1948_v26 = vadd.f32 %v1940_v16, %v1921_v30  ;;  %v1970_v41 = vadd.f32 %v1959_v18, %v1945_v14  ;;  %v2424_v14 = vmul.f32 %v2420_v43, %v4051_v62 }
 0x30e   :  { %2352 = vrot.lane.b32.xlu1 %v2343_v15, %s2687_s29  ;;  %2354 = vrot.lane.b32.xlu0 %v2344_v2, %s2687_s29  ;;  %v2472_v15 = vstv %s2629_s17 }
 0x30f   :  { %v2473_v34 = vmul.f32 %v2472_v15, %v4013_v27 }
 0x310   :  { %v1961_v23 = vpop.permute.xlu1 %1960  ;;  %v1963_v1 = vpop.permute.xlu0 %1962 }
 0x311   :  { %v1971_v49 = vadd.f32 %v1961_v23, %v1946_v35  ;;  %v1972_v12 = vadd.f32 %v1963_v1, %v1947_v53 }
 0x312   :  { %2356 = vrot.lane.b32.xlu1 %v2345_v47, %s2687_s29  ;;  %2377 = vrot.lane.b32.xlu0 %v2369_v58, %s2688_s3  ;;  %s2628_s29 = sld [smem:[#allocation4 + $0x60]] }
 0x314   :  { %v1965_v5 = vpop.permute.xlu1 %1964  ;;  %v1986_v52 = vpop.permute.xlu0 %1985 }
 0x315   :  { %v1973_v22 = vadd.f32 %v1965_v5, %v1948_v26  ;;  %v1997_v20 = vadd.f32 %v1986_v52, %v1970_v41 }
 0x316   :  { %2379 = vrot.lane.b32.xlu1 %v2370_v51, %s2688_s3  ;;  %2381 = vrot.lane.b32.xlu0 %v2371_v55, %s2688_s3 }
 0x318   :  { %v1988_v54 = vpop.permute.xlu1 %1987  ;;  %v1990_v3 = vpop.permute.xlu0 %1989  ;;  %v2445_v9 = vstv %s2628_s29 }
 0x319   :  { %v1998_v61 = vadd.f32 %v1988_v54, %v1971_v49  ;;  %v1999_v13 = vadd.f32 %v1990_v3, %v1972_v12  ;;  %v2446_v38 = vmul.f32 %v2445_v9, %v4053_v19  ;;  %v2447_v35 = vmul.f32 %v2445_v9, %v4067_v40 }
 0x31a   :  { %2383 = vrot.lane.b32.xlu1 %v2372_v44, %s2688_s3  ;;  %2402 = vrot.lane.b32.xlu0 %v2394_v29, %s2688_s3  ;;  %v2448_v53 = vmul.f32 %v2445_v9, %v4069_v21  ;;  %v2449_v41 = vmul.f32 %v2445_v9, %v4084_v31  ;;  %v2474_v49 = vmul.f32 %v2472_v15, %v4030_v57 }
 0x31b   :  { %v2475_v12 = vmul.f32 %v2472_v15, %v4032_v42 }
 0x31c   :  { %v1992_v50 = vpop.permute.xlu1 %1991  ;;  %v2011_v25 = vpop.permute.xlu0 %2010 }
 0x31d   :  { %v2000_v48 = vadd.f32 %v1992_v50, %v1973_v22  ;;  %v2022_v7 = vadd.f32 %v2011_v25, %v1997_v20  ;;  %v2476_v20 = vmul.f32 %v2472_v15, %v4051_v62 }
 0x31e   :  { %2404 = vrot.lane.b32.xlu1 %v2395_v4, %s2688_s3  ;;  %2406 = vrot.lane.b32.xlu0 %v2396_v10, %s2688_s3 }
 0x320   :  { %v2013_v32 = vpop.permute.xlu1 %2012  ;;  %v2015_v36 = vpop.permute.xlu0 %2014 }
 0x321   :  { %v2023_v39 = vadd.f32 %v2013_v32, %v1998_v61  ;;  %v2024_v6 = vadd.f32 %v2015_v36, %v1999_v13 }
 0x322   :  { %2408 = vrot.lane.b32.xlu1 %v2397_v17, %s2688_s3  ;;  %2429 = vrot.lane.b32.xlu0 %v2421_v46, %s2689_s5  ;;  %s2630_s3 = sld [smem:[#allocation4 + $0x61]] }
 0x324   :  { %v2017_v11 = vpop.permute.xlu1 %2016  ;;  %v2038_v33 = vpop.permute.xlu0 %2037 }
 0x325   :  { %v2025_v56 = vadd.f32 %v2017_v11, %v2000_v48  ;;  %v2049_v45 = vadd.f32 %v2038_v33, %v2022_v7 }
 0x326   :  { %2431 = vrot.lane.b32.xlu1 %v2422_v59, %s2689_s5  ;;  %2433 = vrot.lane.b32.xlu0 %v2423_v0, %s2689_s5 }
 0x328   :  { %v2040_v37 = vpop.permute.xlu1 %2039  ;;  %v2042_v30 = vpop.permute.xlu0 %2041  ;;  %v2497_v51 = vstv %s2630_s3 }
 0x329   :  { %v2050_v8 = vadd.f32 %v2040_v37, %v2023_v39  ;;  %v2051_v24 = vadd.f32 %v2042_v30, %v2024_v6  ;;  %v2498_v60 = vmul.f32 %v2497_v51, %v4053_v19  ;;  %v2499_v61 = vmul.f32 %v2497_v51, %v4067_v40 }
 0x32a   :  { %2435 = vrot.lane.b32.xlu1 %v2424_v14, %s2689_s5  ;;  %2454 = vrot.lane.b32.xlu0 %v2446_v38, %s2689_s5  ;;  %v2500_v13 = vmul.f32 %v2497_v51, %v4069_v21  ;;  %v2501_v48 = vmul.f32 %v2497_v51, %v4084_v31 }
 0x32c   :  { %v2044_v63 = vpop.permute.xlu1 %2043  ;;  %v2063_v28 = vpop.permute.xlu0 %2062 }
 0x32d   :  { %v2052_v16 = vadd.f32 %v2044_v63, %v2025_v56  ;;  %v2074_v18 = vadd.f32 %v2063_v28, %v2049_v45  ;;  %v2201_v45 = vstv %s2618_s18 }
 0x32e   :  { %2456 = vrot.lane.b32.xlu1 %v2447_v35, %s2689_s5  ;;  %2458 = vrot.lane.b32.xlu0 %v2448_v53, %s2689_s5  ;;  %v2202_v38 = vmul.f32 %v2201_v45, %v4053_v19 }
 0x330   :  { %v2065_v2 = vpop.permute.xlu1 %2064  ;;  %v2067_v26 = vpop.permute.xlu0 %2066 }
 0x331   :  { %v2075_v23 = vadd.f32 %v2065_v2, %v2050_v8  ;;  %v2076_v1 = vadd.f32 %v2067_v26, %v2051_v24  ;;  %v2203_v2 = vmul.f32 %v2201_v45, %v4067_v40  ;;  %v2204_v26 = vmul.f32 %v2201_v45, %v4069_v21 }
 0x332   :  { %2460 = vrot.lane.b32.xlu1 %v2449_v41, %s2689_s5  ;;  %2481 = vrot.lane.b32.xlu0 %v2473_v34, %s2690_s7  ;;  %s2617_s5 = sld [smem:[#allocation4 + $0x2a]] }
 0x334   :  { %v2069_v47 = vpop.permute.xlu1 %2068  ;;  %v2090_v58 = vpop.permute.xlu0 %2089 }
 0x335   :  { %v2077_v5 = vadd.f32 %v2069_v47, %v2052_v16  ;;  %v2101_v52 = vadd.f32 %v2090_v58, %v2074_v18  ;;  %v2205_v58 = vmul.f32 %v2201_v45, %v4084_v31 }
 0x336   :  { %2483 = vrot.lane.b32.xlu1 %v2474_v49, %s2690_s7  ;;  %2485 = vrot.lane.b32.xlu0 %v2475_v12, %s2690_s7 }
 0x338   :  { %v2092_v55 = vpop.permute.xlu1 %2091  ;;  %v2094_v22 = vpop.permute.xlu0 %2093  ;;  %v2188_v59 = vstv %s2617_s5 }
 0x339   :  { %v2102_v54 = vadd.f32 %v2092_v55, %v2075_v23  ;;  %v2103_v3 = vadd.f32 %v2094_v22, %v2076_v1  ;;  %v2189_v37 = vmul.f32 %v2188_v59, %v4013_v27  ;;  %v2190_v8 = vmul.f32 %v2188_v59, %v4030_v57 }
 0x33a   :  { %2487 = vrot.lane.b32.xlu1 %v2476_v20, %s2690_s7  ;;  %2506 = vrot.lane.b32.xlu0 %v2498_v60, %s2690_s7  ;;  %v2191_v35 = vmul.f32 %v2188_v59, %v4032_v42  ;;  %v2192_v27 = vmul.f32 %v2188_v59, %v4051_v62 }
 0x33c   :  { %v2096_v44 = vpop.permute.xlu1 %2095  ;;  %v2115_v29 = vpop.permute.xlu0 %2114 }
 0x33d   :  { %v2104_v50 = vadd.f32 %v2096_v44, %v2077_v5  ;;  %v2126_v25 = vadd.f32 %v2115_v29, %v2101_v52 }
 0x33e   :  { %2508 = vrot.lane.b32.xlu1 %v2499_v61, %s2690_s7  ;;  %2510 = vrot.lane.b32.xlu0 %v2500_v13, %s2690_s7 }
 0x340   :  { %v2117_v4 = vpop.permute.xlu1 %2116  ;;  %v2119_v10 = vpop.permute.xlu0 %2118 }
 0x341   :  { %v2127_v7 = vadd.f32 %v2117_v4, %v2102_v54  ;;  %v2128_v43 = vadd.f32 %v2119_v10, %v2103_v3 }
 0x342   :  { %2512 = vrot.lane.b32.xlu1 %v2501_v48, %s2690_s7 }
 0x344   :  { %v2121_v32 = vpop.permute.xlu1 %2120  ;;  %v2142_v36 = vpop.permute.xlu0 %2141 }
 0x345   :  { %v2129_v17 = vadd.f32 %v2121_v32, %v2104_v50  ;;  %v2153_v46 = vadd.f32 %v2142_v36, %v2126_v25 }
 0x348   :  { %v2144_v39 = vpop.permute.xlu1 %2143  ;;  %v2146_v6 = vpop.permute.xlu0 %2145 }
 0x349   :  { %v2154_v11 = vadd.f32 %v2144_v39, %v2127_v7  ;;  %v2155_v33 = vadd.f32 %v2146_v6, %v2128_v43 }
 0x34c   :  { %v2148_v0 = vpop.permute.xlu1 %2147  ;;  %v2167_v56 = vpop.permute.xlu0 %2166 }
 0x34d   :  { %v2156_v9 = vadd.f32 %v2148_v0, %v2129_v17  ;;  %v2178_v30 = vadd.f32 %v2167_v56, %v2153_v46 }
 0x34f   :  { %v2193_v14 = vadd.f32 %v2189_v37, %v2178_v30 }
 0x350   :  { %v2169_v24 = vpop.permute.xlu1 %2168  ;;  %v2171_v63 = vpop.permute.xlu0 %2170 }
 0x351   :  { %v2179_v28 = vadd.f32 %v2169_v24, %v2154_v11  ;;  %v2180_v53 = vadd.f32 %v2171_v63, %v2155_v33  ;;  %v2206_v16 = vadd.f32 %v2202_v38, %v2193_v14 }
 0x353   :  { %v2194_v18 = vadd.f32 %v2190_v8, %v2179_v28  ;;  %v2195_v15 = vadd.f32 %v2191_v35, %v2180_v53 }
 0x354   :  { %v2173_v41 = vpop.permute.xlu1 %2172  ;;  %v2222_v34 = vpop.permute.xlu0 %2221 }
 0x355   :  { %v2181_v19 = vadd.f32 %v2173_v41, %v2156_v9  ;;  %v2233_v23 = vadd.f32 %v2222_v34, %v2206_v16  ;;  %v2207_v57 = vadd.f32 %v2203_v2, %v2194_v18  ;;  %v2208_v1 = vadd.f32 %v2204_v26, %v2195_v15 }
 0x357   :  { %v2196_v47 = vadd.f32 %v2192_v27, %v2181_v19 }
 0x358   :  { %v2224_v42 = vpop.permute.xlu1 %2223  ;;  %v2226_v49 = vpop.permute.xlu0 %2225 }
 0x359   :  { %v2234_v12 = vadd.f32 %v2224_v42, %v2207_v57  ;;  %v2235_v5 = vadd.f32 %v2226_v49, %v2208_v1  ;;  %v2209_v52 = vadd.f32 %v2205_v58, %v2196_v47 }
 0x35c   :  { %v2228_v51 = vpop.permute.xlu1 %2227  ;;  %v2247_v40 = vpop.permute.xlu0 %2246 }
 0x35d   :  { %v2236_v55 = vadd.f32 %v2228_v51, %v2209_v52  ;;  %v2258_v45 = vadd.f32 %v2247_v40, %v2233_v23 }
 0x360   :  { %v2249_v21 = vpop.permute.xlu1 %2248  ;;  %v2251_v22 = vpop.permute.xlu0 %2250 }
 0x361   :  { %v2259_v14 = vadd.f32 %v2249_v21, %v2234_v12  ;;  %v2260_v38 = vadd.f32 %v2251_v22, %v2235_v5 }
 0x364   :  { %v2253_v62 = vpop.permute.xlu1 %2252  ;;  %v2274_v20 = vpop.permute.xlu0 %2273 }
 0x365   :  { %v2285_v9 = vadd.f32 %v2274_v20, %v2258_v45  ;;  %v2261_v16 = vadd.f32 %v2253_v62, %v2236_v55 }
 0x368   :  { %v2276_v60 = vpop.permute.xlu1 %2275  ;;  %v2278_v54 = vpop.permute.xlu0 %2277 }
 0x369   :  { %v2286_v24 = vadd.f32 %v2276_v60, %v2259_v14  ;;  %v2287_v63 = vadd.f32 %v2278_v54, %v2260_v38 }
 0x36c   :  { %v2280_v3 = vpop.permute.xlu1 %2279  ;;  %v2299_v44 = vpop.permute.xlu0 %2298 }
 0x36d   :  { %v2310_v8 = vadd.f32 %v2299_v44, %v2285_v9  ;;  %v2288_v26 = vadd.f32 %v2280_v3, %v2261_v16 }
 0x370   :  { %v2301_v29 = vpop.permute.xlu1 %2300  ;;  %v2303_v61 = vpop.permute.xlu0 %2302 }
 0x371   :  { %v2311_v18 = vadd.f32 %v2301_v29, %v2286_v24  ;;  %v2312_v15 = vadd.f32 %v2303_v61, %v2287_v63 }
 0x374   :  { %v2305_v13 = vpop.permute.xlu1 %2304  ;;  %v2326_v31 = vpop.permute.xlu0 %2325 }
 0x375   :  { %v2337_v28 = vadd.f32 %v2326_v31, %v2310_v8  ;;  %v2313_v57 = vadd.f32 %v2305_v13, %v2288_v26 }
 0x378   :  { %v2328_v50 = vpop.permute.xlu1 %2327  ;;  %v2330_v25 = vpop.permute.xlu0 %2329 }
 0x379   :  { %v2338_v27 = vadd.f32 %v2328_v50, %v2311_v18  ;;  %v2339_v41 = vadd.f32 %v2330_v25, %v2312_v15 }
 0x37c   :  { %v2332_v4 = vpop.permute.xlu1 %2331  ;;  %v2351_v10 = vpop.permute.xlu0 %2350 }
 0x37d   :  { %v2362_v2 = vadd.f32 %v2351_v10, %v2337_v28  ;;  %v2340_v42 = vadd.f32 %v2332_v4, %v2313_v57 }
 0x380   :  { %v2353_v48 = vpop.permute.xlu1 %2352  ;;  %v2355_v7 = vpop.permute.xlu0 %2354 }
 0x381   :  { %v2363_v1 = vadd.f32 %v2353_v48, %v2338_v27  ;;  %v2364_v47 = vadd.f32 %v2355_v7, %v2339_v41 }
 0x384   :  { %v2357_v43 = vpop.permute.xlu1 %2356  ;;  %v2378_v32 = vpop.permute.xlu0 %2377 }
 0x385   :  { %v2389_v34 = vadd.f32 %v2378_v32, %v2362_v2  ;;  %v2365_v40 = vadd.f32 %v2357_v43, %v2340_v42 }
 0x388   :  { %v2380_v36 = vpop.permute.xlu1 %2379  ;;  %v2382_v17 = vpop.permute.xlu0 %2381 }
 0x389   :  { %v2390_v49 = vadd.f32 %v2380_v36, %v2363_v1  ;;  %v2391_v12 = vadd.f32 %v2382_v17, %v2364_v47 }
 0x38c   :  { %v2384_v46 = vpop.permute.xlu1 %2383  ;;  %v2403_v39 = vpop.permute.xlu0 %2402 }
 0x38d   :  { %v2414_v58 = vadd.f32 %v2403_v39, %v2389_v34  ;;  %v2392_v62 = vadd.f32 %v2384_v46, %v2365_v40 }
 0x390   :  { %v2405_v6 = vpop.permute.xlu1 %2404  ;;  %v2407_v11 = vpop.permute.xlu0 %2406 }
 0x391   :  { %v2415_v55 = vadd.f32 %v2405_v6, %v2390_v49  ;;  %v2416_v21 = vadd.f32 %v2407_v11, %v2391_v12 }
 0x394   :  { %v2409_v33 = vpop.permute.xlu1 %2408  ;;  %v2430_v59 = vpop.permute.xlu0 %2429 }
 0x395   :  { %v2441_v5 = vadd.f32 %v2430_v59, %v2414_v58  ;;  %v2417_v29 = vadd.f32 %v2409_v33, %v2392_v62 }
 0x398   :  { %v2432_v0 = vpop.permute.xlu1 %2431  ;;  %v2434_v56 = vpop.permute.xlu0 %2433 }
 0x399   :  { %v2442_v20 = vadd.f32 %v2432_v0, %v2415_v55  ;;  %v2443_v60 = vadd.f32 %v2434_v56, %v2416_v21 }
 0x39c   :  { %v2436_v37 = vpop.permute.xlu1 %2435  ;;  %v2455_v30 = vpop.permute.xlu0 %2454 }
 0x39d   :  { %v2466_v22 = vadd.f32 %v2455_v30, %v2441_v5  ;;  %v2444_v50 = vadd.f32 %v2436_v37, %v2417_v29 }
 0x3a0   :  { %v2457_v35 = vpop.permute.xlu1 %2456  ;;  %v2459_v53 = vpop.permute.xlu0 %2458 }
 0x3a1   :  { %v2467_v61 = vadd.f32 %v2457_v35, %v2442_v20  ;;  %v2468_v13 = vadd.f32 %v2459_v53, %v2443_v60 }
 0x3a4   :  { %v2461_v19 = vpop.permute.xlu1 %2460  ;;  %v2482_v23 = vpop.permute.xlu0 %2481 }
 0x3a5   :  { %v2493_v54 = vadd.f32 %v2482_v23, %v2466_v22  ;;  %v2469_v7 = vadd.f32 %v2461_v19, %v2444_v50 }
 0x3a8   :  { %v2484_v52 = vpop.permute.xlu1 %2483  ;;  %v2486_v51 = vpop.permute.xlu0 %2485 }
 0x3a9   :  { %v2494_v25 = vadd.f32 %v2484_v52, %v2467_v61  ;;  %v2495_v4 = vadd.f32 %v2486_v51, %v2468_v13 }
 0x3ac   :  { %v2488_v3 = vpop.permute.xlu1 %2487  ;;  %v2507_v44 = vpop.permute.xlu0 %2506 }
 0x3ad   :  { %v2518_v31 = vadd.f32 %v2507_v44, %v2493_v54  ;;  %v2496_v36 = vadd.f32 %v2488_v3, %v2469_v7 }
 0x3af   :  { %2523 = vst.msk [vmem:[%s4205_s2] sm:$0xff] %vm2522_vm3, %v2518_v31 }
 0x3b0   :  { %v2509_v10 = vpop.permute.xlu1 %2508  ;;  %v2511_v48 = vpop.permute.xlu0 %2510 }
 0x3b1   :  { %v2519_v43 = vadd.f32 %v2509_v10, %v2494_v25  ;;  %v2520_v32 = vadd.f32 %v2511_v48, %v2495_v4 }
 0x3b3   :  { %2524 = vst.msk [vmem:[%s4205_s2 + $0x8] sm:$0xff] %vm2522_vm3, %v2519_v43  ;;  %2525 = vst.msk [vmem:[%s4205_s2 + $0x10] sm:$0xff] %vm2522_vm3, %v2520_v32 }
 0x3b4   :  { %v2513_v17 = vpop.permute.xlu1 %2512 }
 0x3b5   :  { %v2521_v46 = vadd.f32 %v2513_v17, %v2496_v36 }
 0x3b7   :  { %2526 = vst.msk [vmem:[%s4205_s2 + $0x18] sm:$0xff] %vm2522_vm3, %v2521_v46 }
 0x3b8   :  { %2531 = vsyncpa [#allocation5], 1 }
 0x3b9   :  { %2532 = vsyncpa [#allocation6], 1 }

</bundles_post_ra>
